<compile_context>
chip_gen: v7x
topology: tpu7x:2x2x1
jax: 0.10.0
libtpu: 0.0.40
codegen_flags: <defaults>
</compile_context>

<pallas_src>
import math

import jax
import jax.numpy as jnp
import numpy as np
from jax.experimental import pallas as pl
from jax.experimental.pallas import tpu as pltpu

LEAKY_SLOPE = 0.01        # PyTorch nn.LeakyReLU default negative_slope
BN_EPS = 1e-5

# Set to jnp.bfloat16 to feed the MXU bf16 operands on v6e/v7x (accumulation stays f32 via
# preferred_element_type).  Kept at f32 so the 2e-4 reference check below is exact.
MXU_DTYPE = jnp.float32


# ---------------------------------------------------------------------------
# Fused kernel: conv1(+BN)+LeakyReLU -> conv2(+BN) -> residual add, per H-tile
# ---------------------------------------------------------------------------
def _make_kernel(th, w, c, n_tiles, rem):
    hs = th + 2               # y1 rows per tile (1-row halo each side for conv2)
    k9 = 9 * c

    def _fill_patch(patch_ref, src, rows):
        # im2col into the VMEM scratch: patch[r, x, (kh*3+kw)*C : +C] = src[r+kh, x+kw, :]
        for kh in range(3):
            for kw in range(3):
                t = (kh * 3 + kw) * c
                patch_ref[0:rows, :, t:t + c] = src[kh:kh + rows, kw:kw + w, :]

    def kernel(xt_ref, w1_ref, sh1_ref, w2_ref, sh2_ref, o_ref, patch_ref, y1_ref):
        # ---- conv1 (+ folded BN scale): ONE (hs*w, 9C) x (9C, C) matmul ----
        _fill_patch(patch_ref, xt_ref, hs)
        p1 = patch_ref[...].reshape(hs * w, k9).astype(w1_ref.dtype)
        z1 = jnp.dot(p1, w1_ref[...], preferred_element_type=jnp.float32) + sh1_ref[...]
        y1 = jnp.where(z1 > 0, z1, LEAKY_SLOPE * z1).reshape(hs, w, c)

        # reflect-pad y1 along W (left/right image edges are tile edges)
        y1_ref[:, 1:w + 1, :] = y1
        y1_ref[:, 0:1, :] = y1[:, 1:2, :]
        y1_ref[:, w + 1:w + 2, :] = y1[:, w - 2:w - 1, :]

        i = pl.program_id(1)

        @pl.when(i == 0)                       # top image edge: y1[-1] := y1[1]
        def _():
            y1_ref[0:1] = y1_ref[2:3]

        @pl.when(i == n_tiles - 1)             # bottom image edge: y1[H] := y1[H-2]
        def _():
            y1_ref[rem + 1:rem + 2] = y1_ref[rem - 1:rem]

        # ---- conv2 (+ folded BN scale): again a single big-K matmul ----
        _fill_patch(patch_ref, y1_ref, th)
        p2 = patch_ref[0:th].reshape(th * w, k9).astype(w2_ref.dtype)
        z2 = jnp.dot(p2, w2_ref[...], preferred_element_type=jnp.float32) + sh2_ref[...]

        # residual comes from the already-resident x slab (no second HBM read of x)
        o_ref[...] = xt_ref[2:th + 2, 1:w + 1, :] + z2.reshape(th, w, c)

    return kernel


def _fused_call(x_tiles, w1, sh1, w2, sh2, th, n_tiles, rem, vmem_limit):
    n, _, _, wp, c = x_tiles.shape
    w = wp - 2
    k9 = 9 * c

    kernel = _make_kernel(th, w, c, n_tiles, rem)

    in_specs = [
        # pre-overlapped input tiles: one (th+4, W+2, C) slab per grid step
        pl.BlockSpec((None, None, th + 4, wp, c), lambda b, i: (b, i, 0, 0, 0)),
        # weights / shifts: constant index_map -> fetched into VMEM once, reused every step
        pl.BlockSpec((k9, c), lambda b, i: (0, 0)),
        pl.BlockSpec((1, c), lambda b, i: (0, 0)),
        pl.BlockSpec((k9, c), lambda b, i: (0, 0)),
        pl.BlockSpec((1, c), lambda b, i: (0, 0)),
    ]

    return pl.pallas_call(
        kernel,
        grid=(n, n_tiles),
        in_specs=in_specs,
        out_specs=pl.BlockSpec((None, None, th, w, c), lambda b, i: (b, i, 0, 0, 0)),
        out_shape=jax.ShapeDtypeStruct((n, n_tiles, th, w, c), jnp.float32),
        scratch_shapes=[
            pltpu.VMEM((th + 2, w, k9), jnp.float32),     # im2col patch (reused by both convs)
            pltpu.VMEM((th + 2, w + 2, c), jnp.float32),  # y1, reflect-padded along W
        ],
        compiler_params=pltpu.CompilerParams(
            dimension_semantics=("parallel", "parallel"),
            vmem_limit_bytes=vmem_limit),
    )(x_tiles, w1, sh1, w2, sh2)


# ---------------------------------------------------------------------------
# Plain-JAX glue: VMEM budget, tile choice, parameter folding, forward wrapper
# ---------------------------------------------------------------------------
def _vmem_budget():
    """Generation-aware VMEM limits (v5e/v6e: 128 MiB, v7x: 64 MiB per TensorCore)."""
    try:
        cap = int(pltpu.get_tpu_info().vmem_capacity_bytes)
    except Exception:
        cap = 64 * 1024 * 1024
    limit = min(int(cap * 0.75), 96 * 1024 * 1024)
    return limit, int(limit * 0.55)


def _choose_tile_h(n, h, w, c, tile_budget_bytes):
    """Tile height: as large as the VMEM budget allows (fewer grid steps), multiple of 8
    when tiling, and >= 2 grid steps total so both v7x TensorCores get work."""
    # approx bytes of VMEM per output row: input slab (2x buffered) + 9C im2col patch +
    # y1 scratch + output tile (2x buffered)
    row_bytes = 4 * ((w + 2) * c * 2 + w * 9 * c + (w + 2) * c + w * c * 2)
    max_rows = max(8, tile_budget_bytes // max(row_bytes, 1))
    th = min(h, max_rows)
    if th < h:
        th = max(8, (th // 8) * 8)
    if n * math.ceil(h / th) < 2 and h >= 16:          # keep both v7x TCs busy
        th = min(th, max(8, math.ceil(math.ceil(h / 2) / 8) * 8))
    n_tiles = math.ceil(h / th)
    rem = h - (n_tiles - 1) * th                       # rows in the (possibly ragged) last tile
    return th, n_tiles, rem


def _fold_conv_bn(w_oihw, bias, gamma, beta, mean, var):
    """PyTorch Conv2d (O,I,3,3) + eval-mode BatchNorm2d -> (9*I, O) weight with the BN scale
    folded in (tap-major rows, matching the im2col lane order), plus a (1, O) shift."""
    c_out = w_oihw.shape[0]
    s = gamma / jnp.sqrt(var + BN_EPS)                                  # (O,)
    w_flat = jnp.transpose(w_oihw, (2, 3, 1, 0)).reshape(-1, c_out)     # (9*I, O)
    w_flat = (w_flat * s[None, :]).astype(MXU_DTYPE)
    shift = ((bias - mean) * s + beta).astype(jnp.float32)
    return w_flat, shift[None, :]


@jax.jit
def residual_block_forward(x_nchw, params):
    """ResidualBlock.forward: x + BN2(Conv2(LeakyReLU(BN1(Conv1(x)))))   (NCHW in/out).
    BatchNorm runs in eval mode (running statistics folded into the conv weights)."""
    n, c, h, w = x_nchw.shape
    x_nhwc = jnp.transpose(x_nchw, (0, 2, 3, 1))

    # Reflect-pad: 1 col in W (conv1's padding); 2 rows in H (conv1's padding plus one extra
    # halo row per side -- the outermost rows only feed y1 halo rows that the kernel
    # overwrites with the correct y1-level reflection).  Requires H >= 3, W >= 2.
    xpad = jnp.pad(x_nhwc, ((0, 0), (2, 2), (1, 1), (0, 0)), mode="reflect")

    vmem_limit, tile_budget = _vmem_budget()
    th, n_tiles, rem = _choose_tile_h(n, h, w, c, tile_budget)

    # Pre-overlapped tile layout (N, n_tiles, th+4, W+2, C): removes the in-kernel concat
    # and the separate halo stream.  Rows past the image (ragged last tile) are edge-padded
    # filler; the corresponding output rows are sliced off below.
    extra = n_tiles * th - h
    if extra > 0:
        xpad = jnp.pad(xpad, ((0, 0), (0, extra), (0, 0), (0, 0)), mode="edge")
    x_tiles = jnp.stack([xpad[:, i * th:i * th + th + 4] for i in range(n_tiles)], axis=1)

    w1t, sh1 = _fold_conv_bn(params["w1"], params["b1"], params["g1"],
                             params["be1"], params["rm1"], params["rv1"])
    w2t, sh2 = _fold_conv_bn(params["w2"], params["b2"], params["g2"],
                             params["be2"], params["rm2"], params["rv2"])

    y_tiles = _fused_call(x_tiles, w1t, sh1, w2t, sh2, th, n_tiles, rem, vmem_limit)
    y = y_tiles.reshape(n, n_tiles * th, w, c)[:, :h]          # drop ragged-tile padding
    return jnp.transpose(y, (0, 3, 1, 2))                      # NHWC -> NCHW


# ---------------------------------------------------------------------------
# Pure-JAX reference (correctness sanity check)
# ---------------------------------------------------------------------------
def _ref_conv_block(x_nchw, w, b, g, be, rm, rv, use_act):
    xp = jnp.pad(x_nchw, ((0, 0), (0, 0), (1, 1), (1, 1)), mode="reflect")
    y = jax.lax.conv_general_dilated(
        xp, w, window_strides=(1, 1), padding="VALID",
        dimension_numbers=("NCHW", "OIHW", "NCHW"))
    y = y + b[None, :, None, None]
    y = (y - rm[None, :, None, None]) / jnp.sqrt(rv + BN_EPS)[None, :, None, None]
    y = y * g[None, :, None, None] + be[None, :, None, None]
    if use_act:
        y = jnp.where(y > 0, y, LEAKY_SLOPE * y)
    return y


def _ref_forward(x, p):
    h = _ref_conv_block(x, p["w1"], p["b1"], p["g1"], p["be1"], p["rm1"], p["rv1"], True)
    h = _ref_conv_block(h, p["w2"], p["b2"], p["g2"], p["be2"], p["rm2"], p["rv2"], False)
    return x + h


# ---------------------------------------------------------------------------
# Deterministic parameter init (shapes per ResidualBlock(channels=C))
# ---------------------------------------------------------------------------
def init_params(key, channels):
    ks = jax.random.split(key, 12)
    c = channels
    return {
        "w1":  0.1 * jax.random.normal(ks[0], (c, c, 3, 3), jnp.float32),
        "b1":  0.05 * jax.random.normal(ks[1], (c,), jnp.float32),
        "g1":  jax.random.uniform(ks[2], (c,), jnp.float32, 0.5, 1.5),
        "be1": 0.05 * jax.random.normal(ks[3], (c,), jnp.float32),
        "rm1": 0.05 * jax.random.normal(ks[4], (c,), jnp.float32),
        "rv1": jax.random.uniform(ks[5], (c,), jnp.float32, 0.5, 1.5),
        "w2":  0.1 * jax.random.normal(ks[6], (c, c, 3, 3), jnp.float32),
        "b2":  0.05 * jax.random.normal(ks[7], (c,), jnp.float32),
        "g2":  jax.random.uniform(ks[8], (c,), jnp.float32, 0.5, 1.5),
        "be2": 0.05 * jax.random.normal(ks[9], (c,), jnp.float32),
        "rm2": 0.05 * jax.random.normal(ks[10], (c,), jnp.float32),
        "rv2": jax.random.uniform(ks[11], (c,), jnp.float32, 0.5, 1.5),
    }


if __name__ == "__main__":
    key = jax.random.PRNGKey(0)
    k_x, k_p = jax.random.split(key)

    N, C, H, W = 2, 4, 16, 16
    x = jax.random.normal(k_x, (N, C, H, W), jnp.float32)
    params = init_params(k_p, C)

    out = jax.block_until_ready(residual_block_forward(x, params))
    ref = jax.block_until_ready(_ref_forward(x, params))
    assert out.shape == (N, C, H, W)
    assert np.allclose(np.asarray(out), np.asarray(ref), atol=2e-4, rtol=2e-4)

    # ragged H (not a multiple of the tile height) + batch=1 -> exercises the
    # pre-overlapped ragged-last-tile path and the forced 2-tile split (v7x dual-TC).
    x2 = jax.random.normal(k_x, (1, C, 23, W), jnp.float32)
    out2 = jax.block_until_ready(residual_block_forward(x2, params))
    ref2 = jax.block_until_ready(_ref_forward(x2, params))
    assert np.allclose(np.asarray(out2), np.asarray(ref2), atol=2e-4, rtol=2e-4)

    print("KERNEL_OK")
</pallas_src>

<mosaic_0001>
module attributes {stable_mosaic.version = 11 : i64} {
  func.func @kernel(%arg0: i32, %arg1: i32, %arg2: memref<1x1x20x18x4xf32, #tpu.memory_space<vmem>>, %arg3: memref<36x4xf32, #tpu.memory_space<vmem>>, %arg4: memref<1x4xf32, #tpu.memory_space<vmem>>, %arg5: memref<36x4xf32, #tpu.memory_space<vmem>>, %arg6: memref<1x4xf32, #tpu.memory_space<vmem>>, %arg7: memref<1x1x16x16x4xf32, #tpu.memory_space<vmem>>, %arg8: memref<18x16x36xf32, #tpu.memory_space<vmem>>, %arg9: memref<18x18x4xf32, #tpu.memory_space<vmem>>) attributes {dimension_semantics = [#tpu.dimension_semantics<parallel>, #tpu.dimension_semantics<parallel>], iteration_bounds = array<i64: 2, 1>, scalar_prefetch = 0 : i64, scratch_operands = 2 : i64, tpu.core_type = #tpu.core_type<tc>, window_params = [{transform_indices = @transform_0, window_bounds = array<i64: 1, 1, 20, 18, 4>}, {pipeline_mode = #tpu.pipeline_mode<synchronous>, transform_indices = @transform_1, window_bounds = array<i64: 36, 4>}, {pipeline_mode = #tpu.pipeline_mode<synchronous>, transform_indices = @transform_2, window_bounds = array<i64: 1, 4>}, {pipeline_mode = #tpu.pipeline_mode<synchronous>, transform_indices = @transform_3, window_bounds = array<i64: 36, 4>}, {pipeline_mode = #tpu.pipeline_mode<synchronous>, transform_indices = @transform_4, window_bounds = array<i64: 1, 4>}, {transform_indices = @transform_5, window_bounds = array<i64: 1, 1, 16, 16, 4>}]} {
    %c0 = arith.constant 0 : index
    %c0_0 = arith.constant 0 : index
    %c0_1 = arith.constant 0 : index
    %c0_2 = arith.constant 0 : index
    %c0_3 = arith.constant 0 : index
    %0 = vector.load %arg2[%c0, %c0_0, %c0_1, %c0_2, %c0_3] : memref<1x1x20x18x4xf32, #tpu.memory_space<vmem>>, vector<1x1x18x16x4xf32>
    %1 = vector.shape_cast %0 : vector<1x1x18x16x4xf32> to vector<18x16x4xf32>
    %c0_4 = arith.constant 0 : index
    %c0_5 = arith.constant 0 : index
    %c0_6 = arith.constant 0 : index
    %2 = vector.load %arg8[%c0_4, %c0_5, %c0_6] : memref<18x16x36xf32, #tpu.memory_space<vmem>>, vector<18x16x4xf32>
    tpu.vector_store %arg8[%c0_4, %c0_5, %c0_6], %1 {strides = array<i32>} : memref<18x16x36xf32, #tpu.memory_space<vmem>>, vector<18x16x4xf32>,
    %c0_7 = arith.constant 0 : index
    %c0_8 = arith.constant 0 : index
    %c0_9 = arith.constant 0 : index
    %c1 = arith.constant 1 : index
    %c0_10 = arith.constant 0 : index
    %3 = vector.load %arg2[%c0_7, %c0_8, %c0_9, %c1, %c0_10] : memref<1x1x20x18x4xf32, #tpu.memory_space<vmem>>, vector<1x1x18x16x4xf32>
    %4 = vector.shape_cast %3 : vector<1x1x18x16x4xf32> to vector<18x16x4xf32>
    %c0_11 = arith.constant 0 : index
    %c0_12 = arith.constant 0 : index
    %c4 = arith.constant 4 : index
    %5 = vector.load %arg8[%c0_11, %c0_12, %c4] : memref<18x16x36xf32, #tpu.memory_space<vmem>>, vector<18x16x4xf32>
    tpu.vector_store %arg8[%c0_11, %c0_12, %c4], %4 {strides = array<i32>} : memref<18x16x36xf32, #tpu.memory_space<vmem>>, vector<18x16x4xf32>,
    %c0_13 = arith.constant 0 : index
    %c0_14 = arith.constant 0 : index
    %c0_15 = arith.constant 0 : index
    %c2 = arith.constant 2 : index
    %c0_16 = arith.constant 0 : index
    %6 = vector.load %arg2[%c0_13, %c0_14, %c0_15, %c2, %c0_16] : memref<1x1x20x18x4xf32, #tpu.memory_space<vmem>>, vector<1x1x18x16x4xf32>
    %7 = vector.shape_cast %6 : vector<1x1x18x16x4xf32> to vector<18x16x4xf32>
    %c0_17 = arith.constant 0 : index
    %c0_18 = arith.constant 0 : index
    %c8 = arith.constant 8 : index
    %8 = vector.load %arg8[%c0_17, %c0_18, %c8] : memref<18x16x36xf32, #tpu.memory_space<vmem>>, vector<18x16x4xf32>
    tpu.vector_store %arg8[%c0_17, %c0_18, %c8], %7 {strides = array<i32>} : memref<18x16x36xf32, #tpu.memory_space<vmem>>, vector<18x16x4xf32>,
    %c0_19 = arith.constant 0 : index
    %c0_20 = arith.constant 0 : index
    %c1_21 = arith.constant 1 : index
    %c0_22 = arith.constant 0 : index
    %c0_23 = arith.constant 0 : index
    %9 = vector.load %arg2[%c0_19, %c0_20, %c1_21, %c0_22, %c0_23] : memref<1x1x20x18x4xf32, #tpu.memory_space<vmem>>, vector<1x1x18x16x4xf32>
    %10 = vector.shape_cast %9 : vector<1x1x18x16x4xf32> to vector<18x16x4xf32>
    %c0_24 = arith.constant 0 : index
    %c0_25 = arith.constant 0 : index
    %c12 = arith.constant 12 : index
    %11 = vector.load %arg8[%c0_24, %c0_25, %c12] : memref<18x16x36xf32, #tpu.memory_space<vmem>>, vector<18x16x4xf32>
    tpu.vector_store %arg8[%c0_24, %c0_25, %c12], %10 {strides = array<i32>} : memref<18x16x36xf32, #tpu.memory_space<vmem>>, vector<18x16x4xf32>,
    %c0_26 = arith.constant 0 : index
    %c0_27 = arith.constant 0 : index
    %c1_28 = arith.constant 1 : index
    %c1_29 = arith.constant 1 : index
    %c0_30 = arith.constant 0 : index
    %12 = vector.load %arg2[%c0_26, %c0_27, %c1_28, %c1_29, %c0_30] : memref<1x1x20x18x4xf32, #tpu.memory_space<vmem>>, vector<1x1x18x16x4xf32>
    %13 = vector.shape_cast %12 : vector<1x1x18x16x4xf32> to vector<18x16x4xf32>
    %c0_31 = arith.constant 0 : index
    %c0_32 = arith.constant 0 : index
    %c16 = arith.constant 16 : index
    %14 = vector.load %arg8[%c0_31, %c0_32, %c16] : memref<18x16x36xf32, #tpu.memory_space<vmem>>, vector<18x16x4xf32>
    tpu.vector_store %arg8[%c0_31, %c0_32, %c16], %13 {strides = array<i32>} : memref<18x16x36xf32, #tpu.memory_space<vmem>>, vector<18x16x4xf32>,
    %c0_33 = arith.constant 0 : index
    %c0_34 = arith.constant 0 : index
    %c1_35 = arith.constant 1 : index
    %c2_36 = arith.constant 2 : index
    %c0_37 = arith.constant 0 : index
    %15 = vector.load %arg2[%c0_33, %c0_34, %c1_35, %c2_36, %c0_37] : memref<1x1x20x18x4xf32, #tpu.memory_space<vmem>>, vector<1x1x18x16x4xf32>
    %16 = vector.shape_cast %15 : vector<1x1x18x16x4xf32> to vector<18x16x4xf32>
    %c0_38 = arith.constant 0 : index
    %c0_39 = arith.constant 0 : index
    %c20 = arith.constant 20 : index
    %17 = vector.load %arg8[%c0_38, %c0_39, %c20] : memref<18x16x36xf32, #tpu.memory_space<vmem>>, vector<18x16x4xf32>
    tpu.vector_store %arg8[%c0_38, %c0_39, %c20], %16 {strides = array<i32>} : memref<18x16x36xf32, #tpu.memory_space<vmem>>, vector<18x16x4xf32>,
    %c0_40 = arith.constant 0 : index
    %c0_41 = arith.constant 0 : index
    %c2_42 = arith.constant 2 : index
    %c0_43 = arith.constant 0 : index
    %c0_44 = arith.constant 0 : index
    %18 = vector.load %arg2[%c0_40, %c0_41, %c2_42, %c0_43, %c0_44] : memref<1x1x20x18x4xf32, #tpu.memory_space<vmem>>, vector<1x1x18x16x4xf32>
    %19 = vector.shape_cast %18 : vector<1x1x18x16x4xf32> to vector<18x16x4xf32>
    %c0_45 = arith.constant 0 : index
    %c0_46 = arith.constant 0 : index
    %c24 = arith.constant 24 : index
    %20 = vector.load %arg8[%c0_45, %c0_46, %c24] : memref<18x16x36xf32, #tpu.memory_space<vmem>>, vector<18x16x4xf32>
    tpu.vector_store %arg8[%c0_45, %c0_46, %c24], %19 {strides = array<i32>} : memref<18x16x36xf32, #tpu.memory_space<vmem>>, vector<18x16x4xf32>,
    %c0_47 = arith.constant 0 : index
    %c0_48 = arith.constant 0 : index
    %c2_49 = arith.constant 2 : index
    %c1_50 = arith.constant 1 : index
    %c0_51 = arith.constant 0 : index
    %21 = vector.load %arg2[%c0_47, %c0_48, %c2_49, %c1_50, %c0_51] : memref<1x1x20x18x4xf32, #tpu.memory_space<vmem>>, vector<1x1x18x16x4xf32>
    %22 = vector.shape_cast %21 : vector<1x1x18x16x4xf32> to vector<18x16x4xf32>
    %c0_52 = arith.constant 0 : index
    %c0_53 = arith.constant 0 : index
    %c28 = arith.constant 28 : index
    %23 = vector.load %arg8[%c0_52, %c0_53, %c28] : memref<18x16x36xf32, #tpu.memory_space<vmem>>, vector<18x16x4xf32>
    tpu.vector_store %arg8[%c0_52, %c0_53, %c28], %22 {strides = array<i32>} : memref<18x16x36xf32, #tpu.memory_space<vmem>>, vector<18x16x4xf32>,
    %c0_54 = arith.constant 0 : index
    %c0_55 = arith.constant 0 : index
    %c2_56 = arith.constant 2 : index
    %c2_57 = arith.constant 2 : index
    %c0_58 = arith.constant 0 : index
    %24 = vector.load %arg2[%c0_54, %c0_55, %c2_56, %c2_57, %c0_58] : memref<1x1x20x18x4xf32, #tpu.memory_space<vmem>>, vector<1x1x18x16x4xf32>
    %25 = vector.shape_cast %24 : vector<1x1x18x16x4xf32> to vector<18x16x4xf32>
    %c0_59 = arith.constant 0 : index
    %c0_60 = arith.constant 0 : index
    %c32 = arith.constant 32 : index
    %26 = vector.load %arg8[%c0_59, %c0_60, %c32] : memref<18x16x36xf32, #tpu.memory_space<vmem>>, vector<18x16x4xf32>
    tpu.vector_store %arg8[%c0_59, %c0_60, %c32], %25 {strides = array<i32>} : memref<18x16x36xf32, #tpu.memory_space<vmem>>, vector<18x16x4xf32>,
    %c0_61 = arith.constant 0 : index
    %c0_62 = arith.constant 0 : index
    %c0_63 = arith.constant 0 : index
    %27 = vector.load %arg8[%c0_61, %c0_62, %c0_63] : memref<18x16x36xf32, #tpu.memory_space<vmem>>, vector<18x16x36xf32>
    %28 = vector.shape_cast %27 : vector<18x16x36xf32> to vector<288x36xf32>
    %c0_64 = arith.constant 0 : index
    %c0_65 = arith.constant 0 : index
    %29 = vector.load %arg3[%c0_64, %c0_65] : memref<36x4xf32, #tpu.memory_space<vmem>>, vector<36x4xf32>
    %cst = arith.constant dense<0.000000e+00> : vector<288x4xf32>
    %30 = tpu.matmul %28, %29, %cst {dimension_numbers = #tpu.dot_dimension_numbers<[1], [0], [0], [1], [0, 0, 1, 1], [], []>} : vector<288x36xf32>, vector<36x4xf32>, vector<288x4xf32> -> vector<288x4xf32>
    %c0_66 = arith.constant 0 : index
    %c0_67 = arith.constant 0 : index
    %31 = vector.load %arg4[%c0_66, %c0_67] : memref<1x4xf32, #tpu.memory_space<vmem>>, vector<1x4xf32>
    %32 = vector.broadcast %31 : vector<1x4xf32> to vector<288x4xf32>
    %33 = arith.addf %30, %32 : vector<288x4xf32>
    %cst_68 = arith.constant 0.000000e+00 : f32
    %34 = vector.broadcast %cst_68 : f32 to vector<288x4xf32>
    %35 = arith.cmpf ogt, %33, %34 : vector<288x4xf32>
    %cst_69 = arith.constant 0.00999999977 : f32
    %36 = vector.broadcast %cst_69 : f32 to vector<288x4xf32>
    %37 = arith.mulf %36, %33 : vector<288x4xf32>
    %38 = arith.select %35, %33, %37 : vector<288x4xi1>, vector<288x4xf32>
    %39 = vector.shape_cast %38 : vector<288x4xf32> to vector<18x16x4xf32>
    %c0_70 = arith.constant 0 : index
    %c1_71 = arith.constant 1 : index
    %c0_72 = arith.constant 0 : index
    %40 = vector.load %arg9[%c0_70, %c1_71, %c0_72] : memref<18x18x4xf32, #tpu.memory_space<vmem>>, vector<18x16x4xf32>
    tpu.vector_store %arg9[%c0_70, %c1_71, %c0_72], %39 {strides = array<i32>} : memref<18x18x4xf32, #tpu.memory_space<vmem>>, vector<18x16x4xf32>,
    %41 = vector.extract_strided_slice %39 {offsets = [0, 1, 0], sizes = [18, 1, 4], strides = [1, 1, 1]} : vector<18x16x4xf32> to vector<18x1x4xf32>
    %c0_73 = arith.constant 0 : index
    %c0_74 = arith.constant 0 : index
    %c0_75 = arith.constant 0 : index
    %42 = vector.load %arg9[%c0_73, %c0_74, %c0_75] : memref<18x18x4xf32, #tpu.memory_space<vmem>>, vector<18x1x4xf32>
    tpu.vector_store %arg9[%c0_73, %c0_74, %c0_75], %41 {strides = array<i32>} : memref<18x18x4xf32, #tpu.memory_space<vmem>>, vector<18x1x4xf32>,
    %43 = vector.extract_strided_slice %39 {offsets = [0, 14, 0], sizes = [18, 1, 4], strides = [1, 1, 1]} : vector<18x16x4xf32> to vector<18x1x4xf32>
    %c0_76 = arith.constant 0 : index
    %c17 = arith.constant 17 : index
    %c0_77 = arith.constant 0 : index
    %44 = vector.load %arg9[%c0_76, %c17, %c0_77] : memref<18x18x4xf32, #tpu.memory_space<vmem>>, vector<18x1x4xf32>
    tpu.vector_store %arg9[%c0_76, %c17, %c0_77], %43 {strides = array<i32>} : memref<18x18x4xf32, #tpu.memory_space<vmem>>, vector<18x1x4xf32>,
    %c0_i32 = arith.constant 0 : i32
    %45 = arith.cmpi eq, %arg1, %c0_i32 : i32
    %46 = arith.extui %45 : i1 to i32
    %c0_i32_78 = arith.constant 0 : i32
    %47 = arith.cmpi ne, %46, %c0_i32_78 : i32
    scf.if %47 {
      %c2_153 = arith.constant 2 : index
      %c0_154 = arith.constant 0 : index
      %c0_155 = arith.constant 0 : index
      %83 = vector.load %arg9[%c2_153, %c0_154, %c0_155] : memref<18x18x4xf32, #tpu.memory_space<vmem>>, vector<1x18x4xf32>
      %c0_156 = arith.constant 0 : index
      %c0_157 = arith.constant 0 : index
      %c0_158 = arith.constant 0 : index
      %84 = vector.load %arg9[%c0_156, %c0_157, %c0_158] : memref<18x18x4xf32, #tpu.memory_space<vmem>>, vector<1x18x4xf32>
      tpu.vector_store %arg9[%c0_156, %c0_157, %c0_158], %83 {strides = array<i32>} : memref<18x18x4xf32, #tpu.memory_space<vmem>>, vector<1x18x4xf32>,
    } else {
    }
    %c0_i32_79 = arith.constant 0 : i32
    %48 = arith.cmpi eq, %arg1, %c0_i32_79 : i32
    %49 = arith.extui %48 : i1 to i32
    %c0_i32_80 = arith.constant 0 : i32
    %50 = arith.cmpi ne, %49, %c0_i32_80 : i32
    scf.if %50 {
      %c15 = arith.constant 15 : index
      %c0_153 = arith.constant 0 : index
      %c0_154 = arith.constant 0 : index
      %83 = vector.load %arg9[%c15, %c0_153, %c0_154] : memref<18x18x4xf32, #tpu.memory_space<vmem>>, vector<1x18x4xf32>
      %c17_155 = arith.constant 17 : index
      %c0_156 = arith.constant 0 : index
      %c0_157 = arith.constant 0 : index
      %84 = vector.load %arg9[%c17_155, %c0_156, %c0_157] : memref<18x18x4xf32, #tpu.memory_space<vmem>>, vector<1x18x4xf32>
      tpu.vector_store %arg9[%c17_155, %c0_156, %c0_157], %83 {strides = array<i32>} : memref<18x18x4xf32, #tpu.memory_space<vmem>>, vector<1x18x4xf32>,
    } else {
    }
    %c0_81 = arith.constant 0 : index
    %c0_82 = arith.constant 0 : index
    %c0_83 = arith.constant 0 : index
    %51 = vector.load %arg9[%c0_81, %c0_82, %c0_83] : memref<18x18x4xf32, #tpu.memory_space<vmem>>, vector<16x16x4xf32>
    %c0_84 = arith.constant 0 : index
    %c0_85 = arith.constant 0 : index
    %c0_86 = arith.constant 0 : index
    %52 = vector.load %arg8[%c0_84, %c0_85, %c0_86] : memref<18x16x36xf32, #tpu.memory_space<vmem>>, vector<16x16x4xf32>
    tpu.vector_store %arg8[%c0_84, %c0_85, %c0_86], %51 {strides = array<i32>} : memref<18x16x36xf32, #tpu.memory_space<vmem>>, vector<16x16x4xf32>,
    %c0_87 = arith.constant 0 : index
    %c1_88 = arith.constant 1 : index
    %c0_89 = arith.constant 0 : index
    %53 = vector.load %arg9[%c0_87, %c1_88, %c0_89] : memref<18x18x4xf32, #tpu.memory_space<vmem>>, vector<16x16x4xf32>
    %c0_90 = arith.constant 0 : index
    %c0_91 = arith.constant 0 : index
    %c4_92 = arith.constant 4 : index
    %54 = vector.load %arg8[%c0_90, %c0_91, %c4_92] : memref<18x16x36xf32, #tpu.memory_space<vmem>>, vector<16x16x4xf32>
    tpu.vector_store %arg8[%c0_90, %c0_91, %c4_92], %53 {strides = array<i32>} : memref<18x16x36xf32, #tpu.memory_space<vmem>>, vector<16x16x4xf32>,
    %c0_93 = arith.constant 0 : index
    %c2_94 = arith.constant 2 : index
    %c0_95 = arith.constant 0 : index
    %55 = vector.load %arg9[%c0_93, %c2_94, %c0_95] : memref<18x18x4xf32, #tpu.memory_space<vmem>>, vector<16x16x4xf32>
    %c0_96 = arith.constant 0 : index
    %c0_97 = arith.constant 0 : index
    %c8_98 = arith.constant 8 : index
    %56 = vector.load %arg8[%c0_96, %c0_97, %c8_98] : memref<18x16x36xf32, #tpu.memory_space<vmem>>, vector<16x16x4xf32>
    tpu.vector_store %arg8[%c0_96, %c0_97, %c8_98], %55 {strides = array<i32>} : memref<18x16x36xf32, #tpu.memory_space<vmem>>, vector<16x16x4xf32>,
    %c1_99 = arith.constant 1 : index
    %c0_100 = arith.constant 0 : index
    %c0_101 = arith.constant 0 : index
    %57 = vector.load %arg9[%c1_99, %c0_100, %c0_101] : memref<18x18x4xf32, #tpu.memory_space<vmem>>, vector<16x16x4xf32>
    %c0_102 = arith.constant 0 : index
    %c0_103 = arith.constant 0 : index
    %c12_104 = arith.constant 12 : index
    %58 = vector.load %arg8[%c0_102, %c0_103, %c12_104] : memref<18x16x36xf32, #tpu.memory_space<vmem>>, vector<16x16x4xf32>
    tpu.vector_store %arg8[%c0_102, %c0_103, %c12_104], %57 {strides = array<i32>} : memref<18x16x36xf32, #tpu.memory_space<vmem>>, vector<16x16x4xf32>,
    %c1_105 = arith.constant 1 : index
    %c1_106 = arith.constant 1 : index
    %c0_107 = arith.constant 0 : index
    %59 = vector.load %arg9[%c1_105, %c1_106, %c0_107] : memref<18x18x4xf32, #tpu.memory_space<vmem>>, vector<16x16x4xf32>
    %c0_108 = arith.constant 0 : index
    %c0_109 = arith.constant 0 : index
    %c16_110 = arith.constant 16 : index
    %60 = vector.load %arg8[%c0_108, %c0_109, %c16_110] : memref<18x16x36xf32, #tpu.memory_space<vmem>>, vector<16x16x4xf32>
    tpu.vector_store %arg8[%c0_108, %c0_109, %c16_110], %59 {strides = array<i32>} : memref<18x16x36xf32, #tpu.memory_space<vmem>>, vector<16x16x4xf32>,
    %c1_111 = arith.constant 1 : index
    %c2_112 = arith.constant 2 : index
    %c0_113 = arith.constant 0 : index
    %61 = vector.load %arg9[%c1_111, %c2_112, %c0_113] : memref<18x18x4xf32, #tpu.memory_space<vmem>>, vector<16x16x4xf32>
    %c0_114 = arith.constant 0 : index
    %c0_115 = arith.constant 0 : index
    %c20_116 = arith.constant 20 : index
    %62 = vector.load %arg8[%c0_114, %c0_115, %c20_116] : memref<18x16x36xf32, #tpu.memory_space<vmem>>, vector<16x16x4xf32>
    tpu.vector_store %arg8[%c0_114, %c0_115, %c20_116], %61 {strides = array<i32>} : memref<18x16x36xf32, #tpu.memory_space<vmem>>, vector<16x16x4xf32>,
    %c2_117 = arith.constant 2 : index
    %c0_118 = arith.constant 0 : index
    %c0_119 = arith.constant 0 : index
    %63 = vector.load %arg9[%c2_117, %c0_118, %c0_119] : memref<18x18x4xf32, #tpu.memory_space<vmem>>, vector<16x16x4xf32>
    %c0_120 = arith.constant 0 : index
    %c0_121 = arith.constant 0 : index
    %c24_122 = arith.constant 24 : index
    %64 = vector.load %arg8[%c0_120, %c0_121, %c24_122] : memref<18x16x36xf32, #tpu.memory_space<vmem>>, vector<16x16x4xf32>
    tpu.vector_store %arg8[%c0_120, %c0_121, %c24_122], %63 {strides = array<i32>} : memref<18x16x36xf32, #tpu.memory_space<vmem>>, vector<16x16x4xf32>,
    %c2_123 = arith.constant 2 : index
    %c1_124 = arith.constant 1 : index
    %c0_125 = arith.constant 0 : index
    %65 = vector.load %arg9[%c2_123, %c1_124, %c0_125] : memref<18x18x4xf32, #tpu.memory_space<vmem>>, vector<16x16x4xf32>
    %c0_126 = arith.constant 0 : index
    %c0_127 = arith.constant 0 : index
    %c28_128 = arith.constant 28 : index
    %66 = vector.load %arg8[%c0_126, %c0_127, %c28_128] : memref<18x16x36xf32, #tpu.memory_space<vmem>>, vector<16x16x4xf32>
    tpu.vector_store %arg8[%c0_126, %c0_127, %c28_128], %65 {strides = array<i32>} : memref<18x16x36xf32, #tpu.memory_space<vmem>>, vector<16x16x4xf32>,
    %c2_129 = arith.constant 2 : index
    %c2_130 = arith.constant 2 : index
    %c0_131 = arith.constant 0 : index
    %67 = vector.load %arg9[%c2_129, %c2_130, %c0_131] : memref<18x18x4xf32, #tpu.memory_space<vmem>>, vector<16x16x4xf32>
    %c0_132 = arith.constant 0 : index
    %c0_133 = arith.constant 0 : index
    %c32_134 = arith.constant 32 : index
    %68 = vector.load %arg8[%c0_132, %c0_133, %c32_134] : memref<18x16x36xf32, #tpu.memory_space<vmem>>, vector<16x16x4xf32>
    tpu.vector_store %arg8[%c0_132, %c0_133, %c32_134], %67 {strides = array<i32>} : memref<18x16x36xf32, #tpu.memory_space<vmem>>, vector<16x16x4xf32>,
    %c0_135 = arith.constant 0 : index
    %c0_136 = arith.constant 0 : index
    %c0_137 = arith.constant 0 : index
    %69 = vector.load %arg8[%c0_135, %c0_136, %c0_137] : memref<18x16x36xf32, #tpu.memory_space<vmem>>, vector<16x16x36xf32>
    %70 = vector.shape_cast %69 : vector<16x16x36xf32> to vector<256x36xf32>
    %c0_138 = arith.constant 0 : index
    %c0_139 = arith.constant 0 : index
    %71 = vector.load %arg5[%c0_138, %c0_139] : memref<36x4xf32, #tpu.memory_space<vmem>>, vector<36x4xf32>
    %cst_140 = arith.constant dense<0.000000e+00> : vector<256x4xf32>
    %72 = tpu.matmul %70, %71, %cst_140 {dimension_numbers = #tpu.dot_dimension_numbers<[1], [0], [0], [1], [0, 0, 1, 1], [], []>} : vector<256x36xf32>, vector<36x4xf32>, vector<256x4xf32> -> vector<256x4xf32>
    %c0_141 = arith.constant 0 : index
    %c0_142 = arith.constant 0 : index
    %73 = vector.load %arg6[%c0_141, %c0_142] : memref<1x4xf32, #tpu.memory_space<vmem>>, vector<1x4xf32>
    %74 = vector.broadcast %73 : vector<1x4xf32> to vector<256x4xf32>
    %75 = arith.addf %72, %74 : vector<256x4xf32>
    %c0_143 = arith.constant 0 : index
    %c0_144 = arith.constant 0 : index
    %c2_145 = arith.constant 2 : index
    %c1_146 = arith.constant 1 : index
    %c0_147 = arith.constant 0 : index
    %76 = vector.load %arg2[%c0_143, %c0_144, %c2_145, %c1_146, %c0_147] : memref<1x1x20x18x4xf32, #tpu.memory_space<vmem>>, vector<1x1x16x16x4xf32>
    %77 = vector.shape_cast %76 : vector<1x1x16x16x4xf32> to vector<16x16x4xf32>
    %78 = vector.shape_cast %75 : vector<256x4xf32> to vector<16x16x4xf32>
    %79 = arith.addf %77, %78 : vector<16x16x4xf32>
    %c0_148 = arith.constant 0 : index
    %c0_149 = arith.constant 0 : index
    %c0_150 = arith.constant 0 : index
    %c0_151 = arith.constant 0 : index
    %c0_152 = arith.constant 0 : index
    %80 = vector.load %arg7[%c0_148, %c0_149, %c0_150, %c0_151, %c0_152] : memref<1x1x16x16x4xf32, #tpu.memory_space<vmem>>, vector<1x1x16x16x4xf32>
    %81 = vector.shape_cast %80 : vector<1x1x16x16x4xf32> to vector<16x16x4xf32>
    %82 = vector.shape_cast %79 : vector<16x16x4xf32> to vector<1x1x16x16x4xf32>
    tpu.vector_store %arg7[%c0_148, %c0_149, %c0_150, %c0_151, %c0_152], %82 {strides = array<i32>} : memref<1x1x16x16x4xf32, #tpu.memory_space<vmem>>, vector<1x1x16x16x4xf32>,
    return
  }
  func.func @transform_0(%arg0: i32, %arg1: i32) -> (i32, i32, i32, i32, i32) {
    %c0_i32 = arith.constant 0 : i32
    %c0_i32_0 = arith.constant 0 : i32
    %c0_i32_1 = arith.constant 0 : i32
    %c0_i32_2 = arith.constant 0 : i32
    return %arg0, %arg1, %c0_i32, %c0_i32_0, %c0_i32_1 : i32, i32, i32, i32, i32
  }
  func.func @transform_1(%arg0: i32, %arg1: i32) -> (i32, i32) {
    %c0_i32 = arith.constant 0 : i32
    %c0_i32_0 = arith.constant 0 : i32
    %c0_i32_1 = arith.constant 0 : i32
    return %c0_i32, %c0_i32_0 : i32, i32
  }
  func.func @transform_2(%arg0: i32, %arg1: i32) -> (i32, i32) {
    %c0_i32 = arith.constant 0 : i32
    %c0_i32_0 = arith.constant 0 : i32
    %c0_i32_1 = arith.constant 0 : i32
    return %c0_i32, %c0_i32_0 : i32, i32
  }
  func.func @transform_3(%arg0: i32, %arg1: i32) -> (i32, i32) {
    %c0_i32 = arith.constant 0 : i32
    %c0_i32_0 = arith.constant 0 : i32
    %c0_i32_1 = arith.constant 0 : i32
    return %c0_i32, %c0_i32_0 : i32, i32
  }
  func.func @transform_4(%arg0: i32, %arg1: i32) -> (i32, i32) {
    %c0_i32 = arith.constant 0 : i32
    %c0_i32_0 = arith.constant 0 : i32
    %c0_i32_1 = arith.constant 0 : i32
    return %c0_i32, %c0_i32_0 : i32, i32
  }
  func.func @transform_5(%arg0: i32, %arg1: i32) -> (i32, i32, i32, i32, i32) {
    %c0_i32 = arith.constant 0 : i32
    %c0_i32_0 = arith.constant 0 : i32
    %c0_i32_1 = arith.constant 0 : i32
    %c0_i32_2 = arith.constant 0 : i32
    return %arg0, %arg1, %c0_i32, %c0_i32_0, %c0_i32_1 : i32, i32, i32, i32, i32
  }
}

</mosaic_0001>

<bundles_post_ra>
// kernel: residual_block_forward.1
= control target key start
LH: loop header
LB: loop body
LE: loop exit
PB: predicated region body
PF: predicated region fallthrough
CT: control target
= control target key end

     0   :  { %s5480_s18 = smov 0   ;;  %s5482_s19 = smov 0   ;;  %s7911_s0 = inlined_call_operand.vmem [shape: f32[2,1,20,18,4], index: 0, kind: input, shape index: {}]   ;;  %s7912_s1 = inlined_call_operand.vmem [shape: f32[36,4], index: 1, kind: input, shape index: {}]   ;;  %s7913_s2 = inlined_call_operand.vmem [shape: f32[1,4], index: 2, kind: input, shape index: {}]   ;;  %s7914_s3 = inlined_call_operand.vmem [shape: f32[36,4], index: 3, kind: input, shape index: {}]   ;;  %s7915_s4 = inlined_call_operand.vmem [shape: f32[1,4], index: 4, kind: input, shape index: {}]   ;;  %s7916_s5 = inlined_call_operand.vmem [shape: f32[2,1,16,16,4], index: 5, kind: output, shape index: {}]  }
   0x1   :  { %s5484_s20 = smov 0  }
   0x2 LB: > { %s27_s21 = sadd.s32 1, %s5436_s19  ;;  %p4842_p0 = scmp.ge.s32.totalorder %s5440_s20, 1  ;;  %s5440_s20 = sphi %s5484_s20, %s15_s20   ;;  %s5436_s19 = sphi %s5482_s19, %s8074_s19   ;;  %s5432_s18 = sphi %s5480_s18, %s8073_s18  }
   0x3   : > { %p29_p1 = scmp.ge.s32.totalorder %s27_s21, 2  ;;  %p207_p2 = scmp.lt.s32.totalorder %s5440_s20, 3 }
   0x5   : > { %s8076_s21 = smov (%p29_p1, %s27_s21), 0  ;;  %p208_p3 = pnand %p4842_p0, %p207_p2 }
   0x7   : > { %211 = sbr.rel (%p208_p3) target bundleno = 1714 (0x6b2), region = 40 }
   0xe   : > { %p243_p4 = scmp.lt.s32.totalorder %s5432_s18, 1  ;;  %s5442_s26 = smov 4   ;;  %vm297_vm0 = vcmask 31744   ;;  %vm514_vm1 = vcmask 64544   ;;  %vm731_vm2 = vcmask 97344   ;;  %vm949_vm3 = vcmask 130144  }
   0xf   : > { %s5443_s27 = smov 8   ;;  %s5444_s28 = smov 12   ;;  %vm1166_vm4 = vcmask 162944   ;;  %vm1383_vm5 = vcmask 195744   ;;  %vm2229_vm6 = vcmask 1043456   ;;  %vm1601_vm7 = vcmask 228544  }
  0x10   : > { %s8078_s18 = smov (!%p243_p4, %s5432_s18), 1  ;;  %s5445_s29 = smov 16   ;;  %vm1818_vm8 = vcmask 261344   ;;  %vm2035_vm9 = vcmask 294144   ;;  %vm7959_vm10 = vcmask 293888   ;;  %vm2641_vm12 = vcmask 30726  }
  0x11   : > { %s5385_s22 = smul.u32 480, %s8078_s18  ;;  %s5446_s30 = smov 20   ;;  %vm2622_vm14 = vcmask 25601  }
  0x12   : > { %s5447_s6 = smov 24   ;;  %s5448_s17 = smov 28  }
  0x13   : > { %s5504_s25 = scalar_lea.vmem %s7911_s0, %s5385_s22  ;;  %s5449_s22 = smov 32  }
  0x14   : > { %v334_v0 = vld [vmem:[%s5504_s25 + $0x1] sm:$0xff]  ;;  %v5508_v1 = vld [vmem:[%s5504_s25 + $0x19] sm:$0xff]  ;;  %v335_v2 = vld [vmem:[%s5504_s25 + $0x9] sm:$0xff] }
  0x15   : > { %406 = vrot.lane.b32.xlu0 %v334_v0, %s5442_s26  ;;  %410 = vrot.lane.b32.xlu1 %v5508_v1, %s5442_s26  ;;  %v5515_v3 = vld [vmem:[%s5504_s25 + $0x21] sm:$0xff]  ;;  %v5521_v4 = vld [vmem:[%s5504_s25 + $0x31] sm:$0xff] }
  0x16   : > { %v5524_v5 = vld [vmem:[%s5504_s25 + $0x39] sm:$0xff]  ;;  %v5531_v6 = vld [vmem:[%s5504_s25 + $0x49] sm:$0xff]  ;;  %v5534_v7 = vld [vmem:[%s5504_s25 + $0x51] sm:$0xff] }
  0x17   : > { %v5541_v8 = vld [vmem:[%s5504_s25 + $0x61] sm:$0xff]  ;;  %v5544_v9 = vld [vmem:[%s5504_s25 + $0x69] sm:$0xff]  ;;  %v5551_v10 = vld [vmem:[%s5504_s25 + $0x79] sm:$0xff] }
  0x18   : > { %v5554_v11 = vld [vmem:[%s5504_s25 + $0x81] sm:$0xff]  ;;  %v5562_v13 = vld [vmem:[%s5504_s25 + $0x18] sm:$0xff]  ;;  %v5581_v18 = vld [vmem:[%s5504_s25 + $0x30] sm:$0xff] }
  0x19   : > { %408 = vrot.lane.b32.xlu0 %v335_v2, %s5442_s26  ;;  %412 = vrot.lane.b32.xlu1 %v5515_v3, %s5442_s26  ;;  %v261_v12 = vld [vmem:[%s5504_s25] sm:$0xff]  ;;  %v5565_v14 = vld [vmem:[%s5504_s25 + $0x91] sm:$0xff]  ;;  %300 = vst.msk [vmem:[#allocation2 + $0x10] sm:$0xff] %vm297_vm0, %v5562_v13  ;;  %302 = vst.msk [vmem:[#allocation2 + $0x20] sm:$0xff] %vm297_vm0, %v5581_v18 }
  0x1a   : > { %v5568_v15 = vld [vmem:[%s5504_s25 + $0x99] sm:$0xff]  ;;  %298 = vst.msk [vmem:[#allocation2] sm:$0xff] %vm297_vm0, %v261_v12  ;;  %v262_v16 = vld [vmem:[%s5504_s25 + $0x8] sm:$0xff]  ;;  %v5601_v22 = vld [vmem:[%s5504_s25 + $0xb1] sm:$0xff] }
  0x1b   : > { %299 = vst.msk [vmem:[#allocation2 + $0x8] sm:$0xff] %vm297_vm0, %v262_v16  ;;  %v5576_v17 = vld [vmem:[%s5504_s25 + $0x20] sm:$0xff]  ;;  %v5584_v19 = vld [vmem:[%s5504_s25 + $0x38] sm:$0xff]  ;;  %v5595_v20 = vld [vmem:[%s5504_s25 + $0x48] sm:$0xff] }
  0x1c   : > { %301 = vst.msk [vmem:[#allocation2 + $0x18] sm:$0xff] %vm297_vm0, %v5576_v17  ;;  %303 = vst.msk [vmem:[#allocation2 + $0x28] sm:$0xff] %vm297_vm0, %v5584_v19  ;;  %v5598_v21 = vld [vmem:[%s5504_s25 + $0xa9] sm:$0xff]  ;;  %v5611_v24 = vld [vmem:[%s5504_s25 + $0x60] sm:$0xff] }
  0x1d   : > { %414 = vrot.lane.b32.xlu0 %v5521_v4, %s5442_s26  ;;  %416 = vrot.lane.b32.xlu1 %v5524_v5, %s5442_s26  ;;  %304 = vst.msk [vmem:[#allocation2 + $0x30] sm:$0xff] %vm297_vm0, %v5595_v20  ;;  %v5606_v23 = vld [vmem:[%s5504_s25 + $0x50] sm:$0xff]  ;;  %v5614_v25 = vld [vmem:[%s5504_s25 + $0x68] sm:$0xff]  ;;  %306 = vst.msk [vmem:[#allocation2 + $0x40] sm:$0xff] %vm297_vm0, %v5611_v24 }
  0x1e   : > { %305 = vst.msk [vmem:[#allocation2 + $0x38] sm:$0xff] %vm297_vm0, %v5606_v23  ;;  %307 = vst.msk [vmem:[#allocation2 + $0x48] sm:$0xff] %vm297_vm0, %v5614_v25  ;;  %v5621_v26 = vld [vmem:[%s5504_s25 + $0x78] sm:$0xff]  ;;  %v5624_v27 = vld [vmem:[%s5504_s25 + $0x80] sm:$0xff] }
  0x1f   : > { %v5631_v28 = vld [vmem:[%s5504_s25 + $0xc1] sm:$0xff]  ;;  %308 = vst.msk [vmem:[#allocation2 + $0x50] sm:$0xff] %vm297_vm0, %v5621_v26  ;;  %309 = vst.msk [vmem:[#allocation2 + $0x58] sm:$0xff] %vm297_vm0, %v5624_v27  ;;  %v5638_v29 = vld [vmem:[%s5504_s25 + $0xc9] sm:$0xff] }
  0x20   : > { %v5641_v30 = vld [vmem:[%s5504_s25 + $0x90] sm:$0xff]  ;;  %v5644_v31 = vld [vmem:[%s5504_s25 + $0x98] sm:$0xff]  ;;  %v5651_v32 = vld [vmem:[%s5504_s25 + $0xa8] sm:$0xff] }
  0x21   : > { %418 = vrot.lane.b32.xlu0 %v5531_v6, %s5442_s26  ;;  %420 = vrot.lane.b32.xlu1 %v5534_v7, %s5442_s26  ;;  %310 = vst.msk [vmem:[#allocation2 + $0x60] sm:$0xff] %vm297_vm0, %v5641_v30  ;;  %311 = vst.msk [vmem:[#allocation2 + $0x68] sm:$0xff] %vm297_vm0, %v5644_v31  ;;  %v5654_v33 = vld [vmem:[%s5504_s25 + $0xb0] sm:$0xff]  ;;  %v5657_v34 = vld [vmem:[%s5504_s25 + $0xd9] sm:$0xff] }
  0x22   : > { %v5660_v35 = vld [vmem:[%s5504_s25 + $0xe1] sm:$0xff]  ;;  %312 = vst.msk [vmem:[#allocation2 + $0x70] sm:$0xff] %vm297_vm0, %v5651_v32  ;;  %313 = vst.msk [vmem:[#allocation2 + $0x78] sm:$0xff] %vm297_vm0, %v5654_v33  ;;  %v5673_v38 = vld [vmem:[%s5504_s25 + $0xd8] sm:$0xff] }
  0x23   : > { %v5667_v36 = vld [vmem:[%s5504_s25 + $0xc0] sm:$0xff]  ;;  %v5670_v37 = vld [vmem:[%s5504_s25 + $0xc8] sm:$0xff]  ;;  %316 = vst.msk [vmem:[#allocation2 + $0x90] sm:$0xff] %vm297_vm0, %v5673_v38  ;;  %v5689_v40 = vld [vmem:[%s5504_s25 + $0xf0] sm:$0xff] }
  0x24   : > { %314 = vst.msk [vmem:[#allocation2 + $0x80] sm:$0xff] %vm297_vm0, %v5667_v36  ;;  %315 = vst.msk [vmem:[#allocation2 + $0x88] sm:$0xff] %vm297_vm0, %v5670_v37  ;;  %v5686_v39 = vld [vmem:[%s5504_s25 + $0xe0] sm:$0xff]  ;;  %v5696_v41 = vld [vmem:[%s5504_s25 + $0xf8] sm:$0xff] }
  0x25   : > { %422 = vrot.lane.b32.xlu0 %v5541_v8, %s5442_s26  ;;  %424 = vrot.lane.b32.xlu1 %v5544_v9, %s5442_s26  ;;  %317 = vst.msk [vmem:[#allocation2 + $0x98] sm:$0xff] %vm297_vm0, %v5686_v39  ;;  %318 = vst.msk [vmem:[#allocation2 + $0xa0] sm:$0xff] %vm297_vm0, %v5689_v40  ;;  %v5699_v42 = vld [vmem:[%s5504_s25 + $0x108] sm:$0xff]  ;;  %v5702_v43 = vld [vmem:[%s5504_s25 + $0x110] sm:$0xff] }
  0x26   : > { %319 = vst.msk [vmem:[#allocation2 + $0xa8] sm:$0xff] %vm297_vm0, %v5696_v41  ;;  %320 = vst.msk [vmem:[#allocation2 + $0xb0] sm:$0xff] %vm297_vm0, %v5699_v42  ;;  %v5711_v44 = vld [vmem:[%s5504_s25 + $0x120] sm:$0xff]  ;;  %v5714_v45 = vld [vmem:[%s5504_s25 + $0x128] sm:$0xff] }
  0x27   : > { %321 = vst.msk [vmem:[#allocation2 + $0xb8] sm:$0xff] %vm297_vm0, %v5702_v43  ;;  %322 = vst.msk [vmem:[#allocation2 + $0xc0] sm:$0xff] %vm297_vm0, %v5711_v44  ;;  %v5725_v46 = vld [vmem:[%s5504_s25 + $0xf1] sm:$0xff]  ;;  %v5728_v47 = vld [vmem:[%s5504_s25 + $0xf9] sm:$0xff] }
  0x28   : > { %323 = vst.msk [vmem:[#allocation2 + $0xc8] sm:$0xff] %vm297_vm0, %v5714_v45  ;;  %v5731_v48 = vld [vmem:[%s5504_s25 + $0x138] sm:$0xff]  ;;  %v5736_v49 = vld [vmem:[%s5504_s25 + $0x140] sm:$0xff]  ;;  %v5745_v50 = vld [vmem:[%s5504_s25 + $0x109] sm:$0xff] }
  0x29   : > { %426 = vrot.lane.b32.xlu0 %v5551_v10, %s5442_s26  ;;  %428 = vrot.lane.b32.xlu1 %v5554_v11, %s5442_s26  ;;  %324 = vst.msk [vmem:[#allocation2 + $0xd0] sm:$0xff] %vm297_vm0, %v5731_v48  ;;  %325 = vst.msk [vmem:[#allocation2 + $0xd8] sm:$0xff] %vm297_vm0, %v5736_v49  ;;  %v5748_v51 = vld [vmem:[%s5504_s25 + $0x111] sm:$0xff]  ;;  %v5765_v54 = vld [vmem:[%s5504_s25 + $0x121] sm:$0xff] }
  0x2a   : > { %v5751_v52 = vld [vmem:[%s5504_s25 + $0x150] sm:$0xff]  ;;  %v5756_v53 = vld [vmem:[%s5504_s25 + $0x158] sm:$0xff]  ;;  %7960 = vst [vmem:[#allocation4_spill] sm:$0xff] %v5765_v54  ;;  %v5771_v56 = vld [vmem:[%s5504_s25 + $0x168] sm:$0xff] }
  0x2b   : > { %326 = vst.msk [vmem:[#allocation2 + $0xe0] sm:$0xff] %vm297_vm0, %v5751_v52  ;;  %327 = vst.msk [vmem:[#allocation2 + $0xe8] sm:$0xff] %vm297_vm0, %v5756_v53  ;;  %v5768_v55 = vld [vmem:[%s5504_s25 + $0x129] sm:$0xff]  ;;  %v5785_v58 = vld [vmem:[%s5504_s25 + $0x139] sm:$0xff] }
  0x2c   : > { %7961 = vst [vmem:[#allocation5_spill] sm:$0xff] %v5768_v55  ;;  %328 = vst.msk [vmem:[#allocation2 + $0xf0] sm:$0xff] %vm297_vm0, %v5771_v56  ;;  %v5776_v57 = vld [vmem:[%s5504_s25 + $0x170] sm:$0xff]  ;;  %v5788_v59 = vld [vmem:[%s5504_s25 + $0x141] sm:$0xff] }
  0x2d   : > { %430 = vrot.lane.b32.xlu0 %v5565_v14, %s5442_s26  ;;  %432 = vrot.lane.b32.xlu1 %v5568_v15, %s5442_s26  ;;  %329 = vst.msk [vmem:[#allocation2 + $0xf8] sm:$0xff] %vm297_vm0, %v5776_v57  ;;  %7962 = vst [vmem:[#allocation6_spill] sm:$0xff] %v5785_v58  ;;  %v5791_v60 = vld [vmem:[%s5504_s25 + $0x180] sm:$0xff]  ;;  %v5796_v61 = vld [vmem:[%s5504_s25 + $0x188] sm:$0xff] }
  0x2e   : > { %7963 = vst [vmem:[#allocation7_spill] sm:$0xff] %v5788_v59  ;;  %330 = vst.msk [vmem:[#allocation2 + $0x100] sm:$0xff] %vm297_vm0, %v5791_v60  ;;  %v5805_v62 = vld [vmem:[%s5504_s25 + $0x151] sm:$0xff]  ;;  %v5808_v63 = vld [vmem:[%s5504_s25 + $0x159] sm:$0xff] }
  0x2f   : > { %331 = vst.msk [vmem:[#allocation2 + $0x108] sm:$0xff] %vm297_vm0, %v5796_v61  ;;  %7964 = vst [vmem:[#allocation8_spill] sm:$0xff] %v5805_v62  ;;  %v5811_v0 = vld [vmem:[%s5504_s25 + $0x198] sm:$0xff]  ;;  %v5816_v2 = vld [vmem:[%s5504_s25 + $0x1a0] sm:$0xff] }
  0x30   : > { %7965 = vst [vmem:[#allocation9_spill] sm:$0xff] %v5808_v63  ;;  %332 = vst.msk [vmem:[#allocation2 + $0x110] sm:$0xff] %vm297_vm0, %v5811_v0  ;;  %v5825_v12 = vld [vmem:[%s5504_s25 + $0x169] sm:$0xff]  ;;  %v5828_v16 = vld [vmem:[%s5504_s25 + $0x171] sm:$0xff] }
  0x31   : > { %434 = vrot.lane.b32.xlu0 %v5598_v21, %s5442_s26  ;;  %436 = vrot.lane.b32.xlu1 %v5601_v22, %s5442_s26  ;;  %333 = vst.msk [vmem:[#allocation2 + $0x118] sm:$0xff] %vm297_vm0, %v5816_v2  ;;  %7966 = vst [vmem:[#allocation10_spill] sm:$0xff] %v5825_v12 }
  0x32   : > { %7967 = vst [vmem:[#allocation11_spill] sm:$0xff] %v5828_v16 }
  0x35   : > { %438 = vrot.lane.b32.xlu0 %v5631_v28, %s5442_s26  ;;  %440 = vrot.lane.b32.xlu1 %v5638_v29, %s5442_s26 }
  0x39   : > { %442 = vrot.lane.b32.xlu0 %v5657_v34, %s5442_s26  ;;  %444 = vrot.lane.b32.xlu1 %v5660_v35, %s5442_s26 }
  0x3d   : > { %446 = vrot.lane.b32.xlu0 %v5725_v46, %s5442_s26  ;;  %448 = vrot.lane.b32.xlu1 %v5728_v47, %s5442_s26 }
  0x41   : > { %450 = vrot.lane.b32.xlu0 %v5745_v50, %s5442_s26  ;;  %452 = vrot.lane.b32.xlu1 %v5748_v51, %s5442_s26 }
  0x45   : > { %454 = vrot.lane.b32.xlu0 %v5765_v54, %s5442_s26  ;;  %456 = vrot.lane.b32.xlu1 %v5768_v55, %s5442_s26 }
  0x49   : > { %458 = vrot.lane.b32.xlu0 %v5785_v58, %s5442_s26  ;;  %460 = vrot.lane.b32.xlu1 %v5788_v59, %s5442_s26  ;;  %v5835_v59 = vld [vmem:[%s5504_s25 + $0x181] sm:$0xff]  ;;  %v5838_v58 = vld [vmem:[%s5504_s25 + $0x189] sm:$0xff] }
  0x4a   : > { %7968 = vst [vmem:[#allocation12_spill] sm:$0xff] %v5835_v59  ;;  %7969 = vst [vmem:[#allocation13_spill] sm:$0xff] %v5838_v58 }
  0x4d   : > { %462 = vrot.lane.b32.xlu0 %v5805_v62, %s5442_s26  ;;  %464 = vrot.lane.b32.xlu1 %v5808_v63, %s5442_s26  ;;  %v5845_v63 = vld [vmem:[%s5504_s25 + $0x199] sm:$0xff]  ;;  %v5848_v62 = vld [vmem:[%s5504_s25 + $0x1a1] sm:$0xff] }
  0x4e   : > { %7970 = vst [vmem:[#allocation14_spill] sm:$0xff] %v5845_v63  ;;  %7971 = vst [vmem:[#allocation15_spill] sm:$0xff] %v5848_v62 }
  0x51   : > { %466 = vrot.lane.b32.xlu0 %v5825_v12, %s5442_s26  ;;  %468 = vrot.lane.b32.xlu1 %v5828_v16, %s5442_s26  ;;  %v551_v16 = vld [vmem:[%s5504_s25 + $0x2] sm:$0xff]  ;;  %v552_v12 = vld [vmem:[%s5504_s25 + $0xa] sm:$0xff] }
  0x55   : > { %470 = vrot.lane.b32.xlu0 %v5835_v59, %s5442_s26  ;;  %472 = vrot.lane.b32.xlu1 %v5838_v58, %s5442_s26  ;;  %v5859_v58 = vld [vmem:[%s5504_s25 + $0x1a] sm:$0xff]  ;;  %v5862_v59 = vld [vmem:[%s5504_s25 + $0x22] sm:$0xff] }
  0x56   : > { %7972 = vst [vmem:[#allocation16_spill] sm:$0xff] %v5859_v58  ;;  %7973 = vst [vmem:[#allocation17_spill] sm:$0xff] %v5862_v59 }
  0x59   : > { %474 = vrot.lane.b32.xlu0 %v5845_v63, %s5442_s26  ;;  %476 = vrot.lane.b32.xlu1 %v5848_v62, %s5442_s26  ;;  %v5869_v62 = vld [vmem:[%s5504_s25 + $0x32] sm:$0xff]  ;;  %v5872_v63 = vld [vmem:[%s5504_s25 + $0x3a] sm:$0xff] }
  0x5a   : > { %7974 = vst [vmem:[#allocation18_spill] sm:$0xff] %v5869_v62  ;;  %7975 = vst [vmem:[#allocation19_spill] sm:$0xff] %v5872_v63 }
  0x5d   : > { %623 = vrot.lane.b32.xlu0 %v551_v16, %s5443_s27  ;;  %625 = vrot.lane.b32.xlu1 %v552_v12, %s5443_s27  ;;  %v5879_v12 = vld [vmem:[%s5504_s25 + $0x4a] sm:$0xff]  ;;  %v5882_v16 = vld [vmem:[%s5504_s25 + $0x52] sm:$0xff] }
  0x5e   : > { %7976 = vst [vmem:[#allocation20_spill] sm:$0xff] %v5879_v12  ;;  %7977 = vst [vmem:[#allocation21_spill] sm:$0xff] %v5882_v16 }
  0x61   : > { %627 = vrot.lane.b32.xlu0 %v5859_v58, %s5443_s27  ;;  %629 = vrot.lane.b32.xlu1 %v5862_v59, %s5443_s27  ;;  %v5889_v59 = vld [vmem:[%s5504_s25 + $0x62] sm:$0xff]  ;;  %v5892_v58 = vld [vmem:[%s5504_s25 + $0x6a] sm:$0xff] }
  0x62   : > { %7978 = vst [vmem:[#allocation22_spill] sm:$0xff] %v5889_v59  ;;  %7979 = vst [vmem:[#allocation23_spill] sm:$0xff] %v5892_v58 }
  0x65   : > { %631 = vrot.lane.b32.xlu0 %v5869_v62, %s5443_s27  ;;  %633 = vrot.lane.b32.xlu1 %v5872_v63, %s5443_s27  ;;  %v5899_v63 = vld [vmem:[%s5504_s25 + $0x7a] sm:$0xff]  ;;  %v5902_v62 = vld [vmem:[%s5504_s25 + $0x82] sm:$0xff] }
  0x66   : > { %7980 = vst [vmem:[#allocation24_spill] sm:$0xff] %v5899_v63  ;;  %7981 = vst [vmem:[#allocation25_spill] sm:$0xff] %v5902_v62 }
  0x69   : > { %635 = vrot.lane.b32.xlu0 %v5879_v12, %s5443_s27  ;;  %637 = vrot.lane.b32.xlu1 %v5882_v16, %s5443_s27  ;;  %v5909_v16 = vld [vmem:[%s5504_s25 + $0x92] sm:$0xff]  ;;  %v5912_v12 = vld [vmem:[%s5504_s25 + $0x9a] sm:$0xff] }
  0x6a   : > { %7982 = vst [vmem:[#allocation26_spill] sm:$0xff] %v5909_v16  ;;  %7983 = vst [vmem:[#allocation27_spill] sm:$0xff] %v5912_v12 }
  0x6d   : > { %639 = vrot.lane.b32.xlu0 %v5889_v59, %s5443_s27  ;;  %641 = vrot.lane.b32.xlu1 %v5892_v58, %s5443_s27  ;;  %v5919_v58 = vld [vmem:[%s5504_s25 + $0xaa] sm:$0xff]  ;;  %v5922_v59 = vld [vmem:[%s5504_s25 + $0xb2] sm:$0xff] }
  0x6e   : > { %7984 = vst [vmem:[#allocation28_spill] sm:$0xff] %v5919_v58  ;;  %7985 = vst [vmem:[#allocation29_spill] sm:$0xff] %v5922_v59 }
  0x71   : > { %643 = vrot.lane.b32.xlu0 %v5899_v63, %s5443_s27  ;;  %645 = vrot.lane.b32.xlu1 %v5902_v62, %s5443_s27  ;;  %v5929_v62 = vld [vmem:[%s5504_s25 + $0xc2] sm:$0xff]  ;;  %v5932_v63 = vld [vmem:[%s5504_s25 + $0xca] sm:$0xff] }
  0x72   : > { %7986 = vst [vmem:[#allocation30_spill] sm:$0xff] %v5929_v62  ;;  %7987 = vst [vmem:[#allocation31_spill] sm:$0xff] %v5932_v63 }
  0x75   : > { %647 = vrot.lane.b32.xlu0 %v5909_v16, %s5443_s27  ;;  %649 = vrot.lane.b32.xlu1 %v5912_v12, %s5443_s27  ;;  %v5939_v12 = vld [vmem:[%s5504_s25 + $0xda] sm:$0xff]  ;;  %v5942_v16 = vld [vmem:[%s5504_s25 + $0xe2] sm:$0xff] }
  0x76   : > { %7988 = vst [vmem:[#allocation32_spill] sm:$0xff] %v5939_v12  ;;  %7989 = vst [vmem:[#allocation33_spill] sm:$0xff] %v5942_v16 }
  0x79   : > { %651 = vrot.lane.b32.xlu0 %v5919_v58, %s5443_s27  ;;  %653 = vrot.lane.b32.xlu1 %v5922_v59, %s5443_s27  ;;  %v5949_v59 = vld [vmem:[%s5504_s25 + $0xf2] sm:$0xff]  ;;  %v5952_v58 = vld [vmem:[%s5504_s25 + $0xfa] sm:$0xff] }
  0x7a   : > { %7990 = vst [vmem:[#allocation34_spill] sm:$0xff] %v5949_v59  ;;  %7991 = vst [vmem:[#allocation35_spill] sm:$0xff] %v5952_v58 }
  0x7d   : > { %655 = vrot.lane.b32.xlu0 %v5929_v62, %s5443_s27  ;;  %657 = vrot.lane.b32.xlu1 %v5932_v63, %s5443_s27  ;;  %v5959_v63 = vld [vmem:[%s5504_s25 + $0x10a] sm:$0xff]  ;;  %v5962_v62 = vld [vmem:[%s5504_s25 + $0x112] sm:$0xff] }
  0x7e   : > { %7992 = vst [vmem:[#allocation36_spill] sm:$0xff] %v5959_v63  ;;  %7993 = vst [vmem:[#allocation37_spill] sm:$0xff] %v5962_v62 }
  0x81   : > { %659 = vrot.lane.b32.xlu0 %v5939_v12, %s5443_s27  ;;  %661 = vrot.lane.b32.xlu1 %v5942_v16, %s5443_s27 }
  0x85   : > { %663 = vrot.lane.b32.xlu0 %v5949_v59, %s5443_s27  ;;  %665 = vrot.lane.b32.xlu1 %v5952_v58, %s5443_s27  ;;  %v5971_v58 = vld [vmem:[%s5504_s25 + $0x122] sm:$0xff]  ;;  %v5974_v59 = vld [vmem:[%s5504_s25 + $0x12a] sm:$0xff] }
  0x86   : > { %7994 = vst [vmem:[#allocation38_spill] sm:$0xff] %v5971_v58  ;;  %7995 = vst [vmem:[#allocation39_spill] sm:$0xff] %v5974_v59 }
  0x87   : > { %v407_v12 = vpop.permute.xlu0 %406  ;;  %v411_v55 = vpop.permute.xlu1 %410 }
  0x88   : > { %515 = vst.msk [vmem:[#allocation2] sm:$0xff] %vm514_vm1, %v407_v12  ;;  %517 = vst.msk [vmem:[#allocation2 + $0x10] sm:$0xff] %vm514_vm1, %v411_v55  ;;  %v5983_v55 = vld [vmem:[%s5504_s25 + $0x13a] sm:$0xff]  ;;  %v5986_v12 = vld [vmem:[%s5504_s25 + $0x142] sm:$0xff] }
  0x89   : > { %667 = vrot.lane.b32.xlu0 %v5959_v63, %s5443_s27  ;;  %669 = vrot.lane.b32.xlu1 %v5962_v62, %s5443_s27  ;;  %7996 = vst [vmem:[#allocation40_spill] sm:$0xff] %v5983_v55  ;;  %7997 = vst [vmem:[#allocation41_spill] sm:$0xff] %v5986_v12 }
  0x8b   : > { %v409_v16 = vpop.permute.xlu0 %408  ;;  %v413_v54 = vpop.permute.xlu1 %412 }
  0x8c   : > { %516 = vst.msk [vmem:[#allocation2 + $0x8] sm:$0xff] %vm514_vm1, %v409_v16  ;;  %518 = vst.msk [vmem:[#allocation2 + $0x18] sm:$0xff] %vm514_vm1, %v413_v54  ;;  %v5995_v54 = vld [vmem:[%s5504_s25 + $0x152] sm:$0xff]  ;;  %v5998_v16 = vld [vmem:[%s5504_s25 + $0x15a] sm:$0xff] }
  0x8d   : > { %671 = vrot.lane.b32.xlu0 %v5971_v58, %s5443_s27  ;;  %673 = vrot.lane.b32.xlu1 %v5974_v59, %s5443_s27  ;;  %7998 = vst [vmem:[#allocation42_spill] sm:$0xff] %v5995_v54  ;;  %7999 = vst [vmem:[#allocation43_spill] sm:$0xff] %v5998_v16 }
  0x8f   : > { %v415_v62 = vpop.permute.xlu0 %414  ;;  %v417_v63 = vpop.permute.xlu1 %416 }
  0x90   : > { %519 = vst.msk [vmem:[#allocation2 + $0x20] sm:$0xff] %vm514_vm1, %v415_v62  ;;  %520 = vst.msk [vmem:[#allocation2 + $0x28] sm:$0xff] %vm514_vm1, %v417_v63  ;;  %v6007_v62 = vld [vmem:[%s5504_s25 + $0x16a] sm:$0xff]  ;;  %v6010_v63 = vld [vmem:[%s5504_s25 + $0x172] sm:$0xff] }
  0x91   : > { %675 = vrot.lane.b32.xlu0 %v5983_v55, %s5443_s27  ;;  %677 = vrot.lane.b32.xlu1 %v5986_v12, %s5443_s27  ;;  %8000 = vst [vmem:[#allocation44_spill] sm:$0xff] %v6007_v62  ;;  %8001 = vst [vmem:[#allocation45_spill] sm:$0xff] %v6010_v63 }
  0x93   : > { %v419_v59 = vpop.permute.xlu0 %418  ;;  %v421_v58 = vpop.permute.xlu1 %420 }
  0x94   : > { %521 = vst.msk [vmem:[#allocation2 + $0x30] sm:$0xff] %vm514_vm1, %v419_v59  ;;  %522 = vst.msk [vmem:[#allocation2 + $0x38] sm:$0xff] %vm514_vm1, %v421_v58  ;;  %v6019_v58 = vld [vmem:[%s5504_s25 + $0x182] sm:$0xff]  ;;  %v6022_v59 = vld [vmem:[%s5504_s25 + $0x18a] sm:$0xff] }
  0x95   : > { %679 = vrot.lane.b32.xlu0 %v5995_v54, %s5443_s27  ;;  %681 = vrot.lane.b32.xlu1 %v5998_v16, %s5443_s27 }
  0x97   : > { %v423_v12 = vpop.permute.xlu0 %422  ;;  %v425_v55 = vpop.permute.xlu1 %424 }
  0x98   : > { %523 = vst.msk [vmem:[#allocation2 + $0x40] sm:$0xff] %vm514_vm1, %v423_v12  ;;  %524 = vst.msk [vmem:[#allocation2 + $0x48] sm:$0xff] %vm514_vm1, %v425_v55  ;;  %v6031_v55 = vld [vmem:[%s5504_s25 + $0x19a] sm:$0xff]  ;;  %v6034_v12 = vld [vmem:[%s5504_s25 + $0x1a2] sm:$0xff] }
  0x99   : > { %683 = vrot.lane.b32.xlu0 %v6007_v62, %s5443_s27  ;;  %685 = vrot.lane.b32.xlu1 %v6010_v63, %s5443_s27 }
  0x9b   : > { %v427_v16 = vpop.permute.xlu0 %426  ;;  %v429_v54 = vpop.permute.xlu1 %428 }
  0x9c   : > { %525 = vst.msk [vmem:[#allocation2 + $0x50] sm:$0xff] %vm514_vm1, %v427_v16  ;;  %526 = vst.msk [vmem:[#allocation2 + $0x58] sm:$0xff] %vm514_vm1, %v429_v54 }
  0x9d   : > { %687 = vrot.lane.b32.xlu0 %v6019_v58, %s5443_s27  ;;  %689 = vrot.lane.b32.xlu1 %v6022_v59, %s5443_s27 }
  0x9f   : > { %v431_v63 = vpop.permute.xlu0 %430  ;;  %v433_v62 = vpop.permute.xlu1 %432 }
  0xa0   : > { %527 = vst.msk [vmem:[#allocation2 + $0x60] sm:$0xff] %vm514_vm1, %v431_v63  ;;  %528 = vst.msk [vmem:[#allocation2 + $0x68] sm:$0xff] %vm514_vm1, %v433_v62 }
  0xa1   : > { %691 = vrot.lane.b32.xlu0 %v6031_v55, %s5443_s27  ;;  %693 = vrot.lane.b32.xlu1 %v6034_v12, %s5443_s27 }
  0xa3   : > { %v435_v54 = vpop.permute.xlu0 %434  ;;  %v437_v16 = vpop.permute.xlu1 %436 }
  0xa4   : > { %529 = vst.msk [vmem:[#allocation2 + $0x70] sm:$0xff] %vm514_vm1, %v435_v54  ;;  %530 = vst.msk [vmem:[#allocation2 + $0x78] sm:$0xff] %vm514_vm1, %v437_v16 }
  0xa5   : > { %841 = vrot.lane.b32.xlu0 %v5562_v13, %s5444_s28  ;;  %843 = vrot.lane.b32.xlu1 %v5576_v17, %s5444_s28 }
  0xa7   : > { %v439_v62 = vpop.permute.xlu0 %438  ;;  %v441_v63 = vpop.permute.xlu1 %440 }
  0xa8   : > { %531 = vst.msk [vmem:[#allocation2 + $0x80] sm:$0xff] %vm514_vm1, %v439_v62  ;;  %532 = vst.msk [vmem:[#allocation2 + $0x88] sm:$0xff] %vm514_vm1, %v441_v63 }
  0xa9   : > { %845 = vrot.lane.b32.xlu0 %v5581_v18, %s5444_s28  ;;  %847 = vrot.lane.b32.xlu1 %v5584_v19, %s5444_s28 }
  0xab   : > { %v443_v54 = vpop.permute.xlu0 %442  ;;  %v445_v16 = vpop.permute.xlu1 %444 }
  0xac   : > { %533 = vst.msk [vmem:[#allocation2 + $0x90] sm:$0xff] %vm514_vm1, %v443_v54  ;;  %534 = vst.msk [vmem:[#allocation2 + $0x98] sm:$0xff] %vm514_vm1, %v445_v16 }
  0xad   : > { %849 = vrot.lane.b32.xlu0 %v5595_v20, %s5444_s28  ;;  %851 = vrot.lane.b32.xlu1 %v5606_v23, %s5444_s28 }
  0xaf   : > { %v447_v13 = vpop.permute.xlu0 %446  ;;  %v449_v17 = vpop.permute.xlu1 %448 }
  0xb0   : > { %535 = vst.msk [vmem:[#allocation2 + $0xa0] sm:$0xff] %vm514_vm1, %v447_v13  ;;  %536 = vst.msk [vmem:[#allocation2 + $0xa8] sm:$0xff] %vm514_vm1, %v449_v17 }
  0xb1   : > { %853 = vrot.lane.b32.xlu0 %v5611_v24, %s5444_s28  ;;  %855 = vrot.lane.b32.xlu1 %v5614_v25, %s5444_s28 }
  0xb3   : > { %v451_v18 = vpop.permute.xlu0 %450  ;;  %v453_v19 = vpop.permute.xlu1 %452 }
  0xb4   : > { %537 = vst.msk [vmem:[#allocation2 + $0xb0] sm:$0xff] %vm514_vm1, %v451_v18  ;;  %538 = vst.msk [vmem:[#allocation2 + $0xb8] sm:$0xff] %vm514_vm1, %v453_v19 }
  0xb5   : > { %857 = vrot.lane.b32.xlu0 %v5621_v26, %s5444_s28  ;;  %859 = vrot.lane.b32.xlu1 %v5624_v27, %s5444_s28 }
  0xb7   : > { %v455_v20 = vpop.permute.xlu0 %454  ;;  %v457_v23 = vpop.permute.xlu1 %456 }
  0xb8   : > { %539 = vst.msk [vmem:[#allocation2 + $0xc0] sm:$0xff] %vm514_vm1, %v455_v20  ;;  %540 = vst.msk [vmem:[#allocation2 + $0xc8] sm:$0xff] %vm514_vm1, %v457_v23  ;;  %v6145_v23 = vld [vmem:[%s5504_s25 + $0x1b0] sm:$0xff] }
  0xb9   : > { %861 = vrot.lane.b32.xlu0 %v5641_v30, %s5444_s28  ;;  %863 = vrot.lane.b32.xlu1 %v5644_v31, %s5444_s28 }
  0xbb   : > { %v459_v24 = vpop.permute.xlu0 %458  ;;  %v461_v25 = vpop.permute.xlu1 %460 }
  0xbc   : > { %541 = vst.msk [vmem:[#allocation2 + $0xd0] sm:$0xff] %vm514_vm1, %v459_v24  ;;  %542 = vst.msk [vmem:[#allocation2 + $0xd8] sm:$0xff] %vm514_vm1, %v461_v25  ;;  %v6148_v24 = vld [vmem:[%s5504_s25 + $0x1b8] sm:$0xff] }
  0xbd   : > { %865 = vrot.lane.b32.xlu0 %v5651_v32, %s5444_s28  ;;  %867 = vrot.lane.b32.xlu1 %v5654_v33, %s5444_s28 }
  0xbf   : > { %v463_v26 = vpop.permute.xlu0 %462  ;;  %v465_v27 = vpop.permute.xlu1 %464 }
  0xc0   : > { %543 = vst.msk [vmem:[#allocation2 + $0xe0] sm:$0xff] %vm514_vm1, %v463_v26  ;;  %544 = vst.msk [vmem:[#allocation2 + $0xe8] sm:$0xff] %vm514_vm1, %v465_v27 }
  0xc1   : > { %869 = vrot.lane.b32.xlu0 %v5667_v36, %s5444_s28  ;;  %871 = vrot.lane.b32.xlu1 %v5670_v37, %s5444_s28 }
  0xc3   : > { %v467_v30 = vpop.permute.xlu0 %466  ;;  %v469_v31 = vpop.permute.xlu1 %468 }
  0xc4   : > { %545 = vst.msk [vmem:[#allocation2 + $0xf0] sm:$0xff] %vm514_vm1, %v467_v30  ;;  %546 = vst.msk [vmem:[#allocation2 + $0xf8] sm:$0xff] %vm514_vm1, %v469_v31 }
  0xc5   : > { %873 = vrot.lane.b32.xlu0 %v5673_v38, %s5444_s28  ;;  %875 = vrot.lane.b32.xlu1 %v5686_v39, %s5444_s28 }
  0xc7   : > { %v471_v32 = vpop.permute.xlu0 %470  ;;  %v473_v33 = vpop.permute.xlu1 %472 }
  0xc8   : > { %547 = vst.msk [vmem:[#allocation2 + $0x100] sm:$0xff] %vm514_vm1, %v471_v32  ;;  %548 = vst.msk [vmem:[#allocation2 + $0x108] sm:$0xff] %vm514_vm1, %v473_v33 }
  0xc9   : > { %877 = vrot.lane.b32.xlu0 %v5689_v40, %s5444_s28  ;;  %879 = vrot.lane.b32.xlu1 %v5696_v41, %s5444_s28 }
  0xcb   : > { %v475_v36 = vpop.permute.xlu0 %474  ;;  %v477_v37 = vpop.permute.xlu1 %476 }
  0xcc   : > { %549 = vst.msk [vmem:[#allocation2 + $0x110] sm:$0xff] %vm514_vm1, %v475_v36  ;;  %550 = vst.msk [vmem:[#allocation2 + $0x118] sm:$0xff] %vm514_vm1, %v477_v37 }
  0xcd   : > { %881 = vrot.lane.b32.xlu0 %v5699_v42, %s5444_s28  ;;  %883 = vrot.lane.b32.xlu1 %v5702_v43, %s5444_s28 }
  0xcf   : > { %v624_v38 = vpop.permute.xlu0 %623  ;;  %v626_v39 = vpop.permute.xlu1 %625 }
  0xd0   : > { %732 = vst.msk [vmem:[#allocation2] sm:$0xff] %vm731_vm2, %v624_v38  ;;  %733 = vst.msk [vmem:[#allocation2 + $0x8] sm:$0xff] %vm731_vm2, %v626_v39 }
  0xd1   : > { %885 = vrot.lane.b32.xlu0 %v5711_v44, %s5444_s28  ;;  %887 = vrot.lane.b32.xlu1 %v5714_v45, %s5444_s28 }
  0xd3   : > { %v628_v40 = vpop.permute.xlu0 %627  ;;  %v630_v62 = vpop.permute.xlu1 %629 }
  0xd4   : > { %734 = vst.msk [vmem:[#allocation2 + $0x10] sm:$0xff] %vm731_vm2, %v628_v40  ;;  %735 = vst.msk [vmem:[#allocation2 + $0x18] sm:$0xff] %vm731_vm2, %v630_v62  ;;  %v8006_v62 = vld [vmem:[#allocation8_spill] sm:$0xff] }
  0xd5   : > { %889 = vrot.lane.b32.xlu0 %v5731_v48, %s5444_s28  ;;  %891 = vrot.lane.b32.xlu1 %v5736_v49, %s5444_s28 }
  0xd7   : > { %v632_v63 = vpop.permute.xlu0 %631  ;;  %v634_v54 = vpop.permute.xlu1 %633 }
  0xd8   : > { %736 = vst.msk [vmem:[#allocation2 + $0x20] sm:$0xff] %vm731_vm2, %v632_v63  ;;  %737 = vst.msk [vmem:[#allocation2 + $0x28] sm:$0xff] %vm731_vm2, %v634_v54  ;;  %v8007_v63 = vld [vmem:[#allocation9_spill] sm:$0xff] }
  0xd9   : > { %893 = vrot.lane.b32.xlu0 %v5751_v52, %s5444_s28  ;;  %895 = vrot.lane.b32.xlu1 %v5756_v53, %s5444_s28 }
  0xdb   : > { %v636_v16 = vpop.permute.xlu0 %635  ;;  %v638_v13 = vpop.permute.xlu1 %637 }
  0xdc   : > { %738 = vst.msk [vmem:[#allocation2 + $0x30] sm:$0xff] %vm731_vm2, %v636_v16  ;;  %739 = vst.msk [vmem:[#allocation2 + $0x38] sm:$0xff] %vm731_vm2, %v638_v13  ;;  %v8008_v13 = vld [vmem:[#allocation10_spill] sm:$0xff] }
  0xdd   : > { %897 = vrot.lane.b32.xlu0 %v5771_v56, %s5444_s28  ;;  %899 = vrot.lane.b32.xlu1 %v5776_v57, %s5444_s28 }
  0xdf   : > { %v640_v17 = vpop.permute.xlu0 %639  ;;  %v642_v18 = vpop.permute.xlu1 %641 }
  0xe0   : > { %740 = vst.msk [vmem:[#allocation2 + $0x40] sm:$0xff] %vm731_vm2, %v640_v17  ;;  %741 = vst.msk [vmem:[#allocation2 + $0x48] sm:$0xff] %vm731_vm2, %v642_v18  ;;  %v8009_v17 = vld [vmem:[#allocation11_spill] sm:$0xff] }
  0xe1   : > { %901 = vrot.lane.b32.xlu0 %v5791_v60, %s5444_s28  ;;  %903 = vrot.lane.b32.xlu1 %v5796_v61, %s5444_s28 }
  0xe3   : > { %v644_v19 = vpop.permute.xlu0 %643  ;;  %v646_v20 = vpop.permute.xlu1 %645 }
  0xe4   : > { %742 = vst.msk [vmem:[#allocation2 + $0x50] sm:$0xff] %vm731_vm2, %v644_v19  ;;  %743 = vst.msk [vmem:[#allocation2 + $0x58] sm:$0xff] %vm731_vm2, %v646_v20  ;;  %v8010_v20 = vld [vmem:[#allocation12_spill] sm:$0xff] }
  0xe5   : > { %905 = vrot.lane.b32.xlu0 %v5811_v0, %s5444_s28  ;;  %907 = vrot.lane.b32.xlu1 %v5816_v2, %s5444_s28 }
  0xe7   : > { %v648_v25 = vpop.permute.xlu0 %647  ;;  %v650_v26 = vpop.permute.xlu1 %649 }
  0xe8   : > { %744 = vst.msk [vmem:[#allocation2 + $0x60] sm:$0xff] %vm731_vm2, %v648_v25  ;;  %745 = vst.msk [vmem:[#allocation2 + $0x68] sm:$0xff] %vm731_vm2, %v650_v26  ;;  %v8011_v25 = vld [vmem:[#allocation13_spill] sm:$0xff] }
  0xe9   : > { %909 = vrot.lane.b32.xlu0 %v6145_v23, %s5444_s28  ;;  %911 = vrot.lane.b32.xlu1 %v6148_v24, %s5444_s28 }
  0xeb   : > { %v652_v27 = vpop.permute.xlu0 %651  ;;  %v654_v30 = vpop.permute.xlu1 %653 }
  0xec   : > { %746 = vst.msk [vmem:[#allocation2 + $0x70] sm:$0xff] %vm731_vm2, %v652_v27  ;;  %747 = vst.msk [vmem:[#allocation2 + $0x78] sm:$0xff] %vm731_vm2, %v654_v30  ;;  %v8012_v30 = vld [vmem:[#allocation14_spill] sm:$0xff] }
  0xed   : > { %1058 = vrot.lane.b32.xlu0 %v5508_v1, %s5445_s29  ;;  %1060 = vrot.lane.b32.xlu1 %v5515_v3, %s5445_s29 }
  0xef   : > { %v656_v31 = vpop.permute.xlu0 %655  ;;  %v658_v32 = vpop.permute.xlu1 %657 }
  0xf0   : > { %748 = vst.msk [vmem:[#allocation2 + $0x80] sm:$0xff] %vm731_vm2, %v656_v31  ;;  %749 = vst.msk [vmem:[#allocation2 + $0x88] sm:$0xff] %vm731_vm2, %v658_v32  ;;  %v8013_v31 = vld [vmem:[#allocation15_spill] sm:$0xff]  ;;  %v4916_v32 = vld [vmem:[%s5504_s25 + $0x1b1] sm:$0xff] }
  0xf1   : > { %1062 = vrot.lane.b32.xlu0 %v5521_v4, %s5445_s29  ;;  %1064 = vrot.lane.b32.xlu1 %v5524_v5, %s5445_s29 }
  0xf3   : > { %v660_v33 = vpop.permute.xlu0 %659  ;;  %v662_v36 = vpop.permute.xlu1 %661 }
  0xf4   : > { %750 = vst.msk [vmem:[#allocation2 + $0x90] sm:$0xff] %vm731_vm2, %v660_v33  ;;  %751 = vst.msk [vmem:[#allocation2 + $0x98] sm:$0xff] %vm731_vm2, %v662_v36  ;;  %v4917_v33 = vld [vmem:[%s5504_s25 + $0x1b9] sm:$0xff] }
  0xf5   : > { %1066 = vrot.lane.b32.xlu0 %v5531_v6, %s5445_s29  ;;  %1068 = vrot.lane.b32.xlu1 %v5534_v7, %s5445_s29 }
  0xf7   : > { %v664_v1 = vpop.permute.xlu0 %663  ;;  %v666_v3 = vpop.permute.xlu1 %665 }
  0xf8   : > { %752 = vst.msk [vmem:[#allocation2 + $0xa0] sm:$0xff] %vm731_vm2, %v664_v1  ;;  %753 = vst.msk [vmem:[#allocation2 + $0xa8] sm:$0xff] %vm731_vm2, %v666_v3 }
  0xf9   : > { %1070 = vrot.lane.b32.xlu0 %v5541_v8, %s5445_s29  ;;  %1072 = vrot.lane.b32.xlu1 %v5544_v9, %s5445_s29 }
  0xfb   : > { %v668_v4 = vpop.permute.xlu0 %667  ;;  %v670_v5 = vpop.permute.xlu1 %669 }
  0xfc   : > { %754 = vst.msk [vmem:[#allocation2 + $0xb0] sm:$0xff] %vm731_vm2, %v668_v4  ;;  %755 = vst.msk [vmem:[#allocation2 + $0xb8] sm:$0xff] %vm731_vm2, %v670_v5  ;;  %v8014_v5 = vld [vmem:[#allocation16_spill] sm:$0xff] }
  0xfd   : > { %1074 = vrot.lane.b32.xlu0 %v5551_v10, %s5445_s29  ;;  %1076 = vrot.lane.b32.xlu1 %v5554_v11, %s5445_s29 }
  0xff   : > { %v672_v6 = vpop.permute.xlu0 %671  ;;  %v674_v7 = vpop.permute.xlu1 %673 }
 0x100   : > { %756 = vst.msk [vmem:[#allocation2 + $0xc0] sm:$0xff] %vm731_vm2, %v672_v6  ;;  %757 = vst.msk [vmem:[#allocation2 + $0xc8] sm:$0xff] %vm731_vm2, %v674_v7  ;;  %v8015_v6 = vld [vmem:[#allocation17_spill] sm:$0xff] }
 0x101   : > { %1078 = vrot.lane.b32.xlu0 %v5565_v14, %s5445_s29  ;;  %1080 = vrot.lane.b32.xlu1 %v5568_v15, %s5445_s29 }
 0x103   : > { %v676_v8 = vpop.permute.xlu0 %675  ;;  %v678_v9 = vpop.permute.xlu1 %677 }
 0x104   : > { %758 = vst.msk [vmem:[#allocation2 + $0xd0] sm:$0xff] %vm731_vm2, %v676_v8  ;;  %759 = vst.msk [vmem:[#allocation2 + $0xd8] sm:$0xff] %vm731_vm2, %v678_v9  ;;  %v8016_v9 = vld [vmem:[#allocation18_spill] sm:$0xff] }
 0x105   : > { %1082 = vrot.lane.b32.xlu0 %v5598_v21, %s5445_s29  ;;  %1084 = vrot.lane.b32.xlu1 %v5601_v22, %s5445_s29 }
 0x107   : > { %v680_v10 = vpop.permute.xlu0 %679  ;;  %v682_v11 = vpop.permute.xlu1 %681 }
 0x108   : > { %760 = vst.msk [vmem:[#allocation2 + $0xe0] sm:$0xff] %vm731_vm2, %v680_v10  ;;  %761 = vst.msk [vmem:[#allocation2 + $0xe8] sm:$0xff] %vm731_vm2, %v682_v11  ;;  %v8017_v10 = vld [vmem:[#allocation19_spill] sm:$0xff] }
 0x109   : > { %1086 = vrot.lane.b32.xlu0 %v5631_v28, %s5445_s29  ;;  %1088 = vrot.lane.b32.xlu1 %v5638_v29, %s5445_s29 }
 0x10b   : > { %v684_v14 = vpop.permute.xlu0 %683  ;;  %v686_v15 = vpop.permute.xlu1 %685 }
 0x10c   : > { %762 = vst.msk [vmem:[#allocation2 + $0xf0] sm:$0xff] %vm731_vm2, %v684_v14  ;;  %763 = vst.msk [vmem:[#allocation2 + $0xf8] sm:$0xff] %vm731_vm2, %v686_v15  ;;  %v8018_v15 = vld [vmem:[#allocation20_spill] sm:$0xff] }
 0x10d   : > { %1090 = vrot.lane.b32.xlu0 %v5657_v34, %s5445_s29  ;;  %1092 = vrot.lane.b32.xlu1 %v5660_v35, %s5445_s29 }
 0x10f   : > { %v688_v21 = vpop.permute.xlu0 %687  ;;  %v690_v22 = vpop.permute.xlu1 %689 }
 0x110   : > { %764 = vst.msk [vmem:[#allocation2 + $0x100] sm:$0xff] %vm731_vm2, %v688_v21  ;;  %765 = vst.msk [vmem:[#allocation2 + $0x108] sm:$0xff] %vm731_vm2, %v690_v22  ;;  %v8019_v21 = vld [vmem:[#allocation21_spill] sm:$0xff] }
 0x111   : > { %1094 = vrot.lane.b32.xlu0 %v5725_v46, %s5445_s29  ;;  %1096 = vrot.lane.b32.xlu1 %v5728_v47, %s5445_s29  ;;  %v8002_v46 = vld [vmem:[#allocation4_spill] sm:$0xff]  ;;  %v8003_v47 = vld [vmem:[#allocation5_spill] sm:$0xff] }
 0x113   : > { %v692_v28 = vpop.permute.xlu0 %691  ;;  %v694_v29 = vpop.permute.xlu1 %693 }
 0x114   : > { %766 = vst.msk [vmem:[#allocation2 + $0x110] sm:$0xff] %vm731_vm2, %v692_v28  ;;  %767 = vst.msk [vmem:[#allocation2 + $0x118] sm:$0xff] %vm731_vm2, %v694_v29  ;;  %v8020_v29 = vld [vmem:[#allocation22_spill] sm:$0xff] }
 0x115   : > { %1098 = vrot.lane.b32.xlu0 %v5745_v50, %s5445_s29  ;;  %1100 = vrot.lane.b32.xlu1 %v5748_v51, %s5445_s29  ;;  %v8004_v50 = vld [vmem:[#allocation6_spill] sm:$0xff]  ;;  %v8005_v51 = vld [vmem:[#allocation7_spill] sm:$0xff] }
 0x117   : > { %v842_v34 = vpop.permute.xlu0 %841  ;;  %v844_v35 = vpop.permute.xlu1 %843 }
 0x118   : > { %950 = vst.msk [vmem:[#allocation2] sm:$0xff] %vm949_vm3, %v842_v34  ;;  %951 = vst.msk [vmem:[#allocation2 + $0x8] sm:$0xff] %vm949_vm3, %v844_v35  ;;  %v8021_v34 = vld [vmem:[#allocation23_spill] sm:$0xff] }
 0x119   : > { %1102 = vrot.lane.b32.xlu0 %v8002_v46, %s5445_s29  ;;  %1104 = vrot.lane.b32.xlu1 %v8003_v47, %s5445_s29  ;;  %v8022_v47 = vld [vmem:[#allocation24_spill] sm:$0xff] }
 0x11b   : > { %v846_v37 = vpop.permute.xlu0 %845  ;;  %v848_v38 = vpop.permute.xlu1 %847 }
 0x11c   : > { %952 = vst.msk [vmem:[#allocation2 + $0x10] sm:$0xff] %vm949_vm3, %v846_v37  ;;  %953 = vst.msk [vmem:[#allocation2 + $0x18] sm:$0xff] %vm949_vm3, %v848_v38  ;;  %v8023_v37 = vld [vmem:[#allocation25_spill] sm:$0xff] }
 0x11d   : > { %1106 = vrot.lane.b32.xlu0 %v8004_v50, %s5445_s29  ;;  %1108 = vrot.lane.b32.xlu1 %v8005_v51, %s5445_s29  ;;  %v8024_v51 = vld [vmem:[#allocation26_spill] sm:$0xff] }
 0x11f   : > { %v850_v39 = vpop.permute.xlu0 %849  ;;  %v852_v40 = vpop.permute.xlu1 %851 }
 0x120   : > { %954 = vst.msk [vmem:[#allocation2 + $0x20] sm:$0xff] %vm949_vm3, %v850_v39  ;;  %955 = vst.msk [vmem:[#allocation2 + $0x28] sm:$0xff] %vm949_vm3, %v852_v40  ;;  %v8025_v39 = vld [vmem:[#allocation27_spill] sm:$0xff] }
 0x121   : > { %1110 = vrot.lane.b32.xlu0 %v8006_v62, %s5445_s29  ;;  %1112 = vrot.lane.b32.xlu1 %v8007_v63, %s5445_s29  ;;  %v8026_v63 = vld [vmem:[#allocation28_spill] sm:$0xff] }
 0x123   : > { %v854_v54 = vpop.permute.xlu0 %853  ;;  %v856_v16 = vpop.permute.xlu1 %855 }
 0x124   : > { %956 = vst.msk [vmem:[#allocation2 + $0x30] sm:$0xff] %vm949_vm3, %v854_v54  ;;  %957 = vst.msk [vmem:[#allocation2 + $0x38] sm:$0xff] %vm949_vm3, %v856_v16  ;;  %v8027_v54 = vld [vmem:[#allocation29_spill] sm:$0xff] }
 0x125   : > { %1114 = vrot.lane.b32.xlu0 %v8008_v13, %s5445_s29  ;;  %1116 = vrot.lane.b32.xlu1 %v8009_v17, %s5445_s29  ;;  %v8028_v17 = vld [vmem:[#allocation30_spill] sm:$0xff] }
 0x127   : > { %v858_v18 = vpop.permute.xlu0 %857  ;;  %v860_v19 = vpop.permute.xlu1 %859 }
 0x128   : > { %958 = vst.msk [vmem:[#allocation2 + $0x40] sm:$0xff] %vm949_vm3, %v858_v18  ;;  %959 = vst.msk [vmem:[#allocation2 + $0x48] sm:$0xff] %vm949_vm3, %v860_v19  ;;  %v8029_v18 = vld [vmem:[#allocation31_spill] sm:$0xff] }
 0x129   : > { %1118 = vrot.lane.b32.xlu0 %v8010_v20, %s5445_s29  ;;  %1120 = vrot.lane.b32.xlu1 %v8011_v25, %s5445_s29  ;;  %v8030_v25 = vld [vmem:[#allocation32_spill] sm:$0xff] }
 0x12b   : > { %v862_v26 = vpop.permute.xlu0 %861  ;;  %v864_v27 = vpop.permute.xlu1 %863 }
 0x12c   : > { %960 = vst.msk [vmem:[#allocation2 + $0x50] sm:$0xff] %vm949_vm3, %v862_v26  ;;  %961 = vst.msk [vmem:[#allocation2 + $0x58] sm:$0xff] %vm949_vm3, %v864_v27  ;;  %v8031_v26 = vld [vmem:[#allocation33_spill] sm:$0xff] }
 0x12d   : > { %1122 = vrot.lane.b32.xlu0 %v8012_v30, %s5445_s29  ;;  %1124 = vrot.lane.b32.xlu1 %v8013_v31, %s5445_s29  ;;  %v8032_v31 = vld [vmem:[#allocation34_spill] sm:$0xff] }
 0x12f   : > { %v866_v36 = vpop.permute.xlu0 %865  ;;  %v868_v1 = vpop.permute.xlu1 %867 }
 0x130   : > { %962 = vst.msk [vmem:[#allocation2 + $0x60] sm:$0xff] %vm949_vm3, %v866_v36  ;;  %963 = vst.msk [vmem:[#allocation2 + $0x68] sm:$0xff] %vm949_vm3, %v868_v1  ;;  %v8034_v1 = vld [vmem:[#allocation36_spill] sm:$0xff] }
 0x131   : > { %1126 = vrot.lane.b32.xlu0 %v4916_v32, %s5445_s29  ;;  %1128 = vrot.lane.b32.xlu1 %v4917_v33, %s5445_s29  ;;  %v8033_v32 = vld [vmem:[#allocation35_spill] sm:$0xff] }
 0x133   : > { %v870_v3 = vpop.permute.xlu0 %869  ;;  %v872_v4 = vpop.permute.xlu1 %871 }
 0x134   : > { %964 = vst.msk [vmem:[#allocation2 + $0x70] sm:$0xff] %vm949_vm3, %v870_v3  ;;  %965 = vst.msk [vmem:[#allocation2 + $0x78] sm:$0xff] %vm949_vm3, %v872_v4  ;;  %v8035_v3 = vld [vmem:[#allocation37_spill] sm:$0xff] }
 0x135   : > { %1275 = vrot.lane.b32.xlu0 %v8014_v5, %s5446_s30  ;;  %1277 = vrot.lane.b32.xlu1 %v8015_v6, %s5446_s30  ;;  %v8036_v6 = vld [vmem:[#allocation38_spill] sm:$0xff] }
 0x137   : > { %v874_v7 = vpop.permute.xlu0 %873  ;;  %v876_v8 = vpop.permute.xlu1 %875 }
 0x138   : > { %966 = vst.msk [vmem:[#allocation2 + $0x80] sm:$0xff] %vm949_vm3, %v874_v7  ;;  %967 = vst.msk [vmem:[#allocation2 + $0x88] sm:$0xff] %vm949_vm3, %v876_v8  ;;  %v8037_v7 = vld [vmem:[#allocation39_spill] sm:$0xff] }
 0x139   : > { %1279 = vrot.lane.b32.xlu0 %v8016_v9, %s5446_s30  ;;  %1281 = vrot.lane.b32.xlu1 %v8017_v10, %s5446_s30  ;;  %v8038_v10 = vld [vmem:[#allocation40_spill] sm:$0xff] }
 0x13b   : > { %v878_v11 = vpop.permute.xlu0 %877  ;;  %v880_v14 = vpop.permute.xlu1 %879 }
 0x13c   : > { %968 = vst.msk [vmem:[#allocation2 + $0x90] sm:$0xff] %vm949_vm3, %v878_v11  ;;  %969 = vst.msk [vmem:[#allocation2 + $0x98] sm:$0xff] %vm949_vm3, %v880_v14  ;;  %v8039_v11 = vld [vmem:[#allocation41_spill] sm:$0xff] }
 0x13d   : > { %1283 = vrot.lane.b32.xlu0 %v8018_v15, %s5446_s30  ;;  %1285 = vrot.lane.b32.xlu1 %v8019_v21, %s5446_s30  ;;  %v8040_v21 = vld [vmem:[#allocation42_spill] sm:$0xff] }
 0x13f   : > { %v882_v22 = vpop.permute.xlu0 %881  ;;  %v884_v28 = vpop.permute.xlu1 %883 }
 0x140   : > { %970 = vst.msk [vmem:[#allocation2 + $0xa0] sm:$0xff] %vm949_vm3, %v882_v22  ;;  %971 = vst.msk [vmem:[#allocation2 + $0xa8] sm:$0xff] %vm949_vm3, %v884_v28  ;;  %v8041_v22 = vld [vmem:[#allocation43_spill] sm:$0xff] }
 0x141   : > { %1287 = vrot.lane.b32.xlu0 %v8020_v29, %s5446_s30  ;;  %1289 = vrot.lane.b32.xlu1 %v8021_v34, %s5446_s30  ;;  %v8042_v34 = vld [vmem:[#allocation44_spill] sm:$0xff] }
 0x143   : > { %v886_v35 = vpop.permute.xlu0 %885  ;;  %v888_v46 = vpop.permute.xlu1 %887 }
 0x144   : > { %972 = vst.msk [vmem:[#allocation2 + $0xb0] sm:$0xff] %vm949_vm3, %v886_v35  ;;  %973 = vst.msk [vmem:[#allocation2 + $0xb8] sm:$0xff] %vm949_vm3, %v888_v46  ;;  %v8043_v35 = vld [vmem:[#allocation45_spill] sm:$0xff] }
 0x145   : > { %1291 = vrot.lane.b32.xlu0 %v8022_v47, %s5446_s30  ;;  %1293 = vrot.lane.b32.xlu1 %v8023_v37, %s5446_s30 }
 0x147   : > { %v890_v38 = vpop.permute.xlu0 %889  ;;  %v892_v50 = vpop.permute.xlu1 %891 }
 0x148   : > { %974 = vst.msk [vmem:[#allocation2 + $0xc0] sm:$0xff] %vm949_vm3, %v890_v38  ;;  %975 = vst.msk [vmem:[#allocation2 + $0xc8] sm:$0xff] %vm949_vm3, %v892_v50  ;;  %v6367_v50 = vld [vmem:[%s5504_s25 + $0x1b2] sm:$0xff] }
 0x149   : > { %1295 = vrot.lane.b32.xlu0 %v8024_v51, %s5446_s30  ;;  %1297 = vrot.lane.b32.xlu1 %v8025_v39, %s5446_s30 }
 0x14b   : > { %v894_v40 = vpop.permute.xlu0 %893  ;;  %v896_v62 = vpop.permute.xlu1 %895 }
 0x14c   : > { %976 = vst.msk [vmem:[#allocation2 + $0xd0] sm:$0xff] %vm949_vm3, %v894_v40  ;;  %977 = vst.msk [vmem:[#allocation2 + $0xd8] sm:$0xff] %vm949_vm3, %v896_v62  ;;  %v4956_v62 = vld [vmem:[%s5504_s25 + $0x48] sm:$0xff] }
 0x14d   : > { %1299 = vrot.lane.b32.xlu0 %v8026_v63, %s5446_s30  ;;  %1301 = vrot.lane.b32.xlu1 %v8027_v54, %s5446_s30  ;;  %v4957_v63 = vld [vmem:[%s5504_s25 + $0x50] sm:$0xff] }
 0x14f   : > { %v898_v16 = vpop.permute.xlu0 %897  ;;  %v900_v13 = vpop.permute.xlu1 %899 }
 0x150   : > { %978 = vst.msk [vmem:[#allocation2 + $0xe0] sm:$0xff] %vm949_vm3, %v898_v16  ;;  %979 = vst.msk [vmem:[#allocation2 + $0xe8] sm:$0xff] %vm949_vm3, %v900_v13  ;;  %v4958_v13 = vld [vmem:[%s5504_s25 + $0x60] sm:$0xff] }
 0x151   : > { %1303 = vrot.lane.b32.xlu0 %v8028_v17, %s5446_s30  ;;  %1305 = vrot.lane.b32.xlu1 %v8029_v18, %s5446_s30  ;;  %v4959_v17 = vld [vmem:[%s5504_s25 + $0x68] sm:$0xff] }
 0x153   : > { %v902_v19 = vpop.permute.xlu0 %901  ;;  %v904_v20 = vpop.permute.xlu1 %903 }
 0x154   : > { %980 = vst.msk [vmem:[#allocation2 + $0xf0] sm:$0xff] %vm949_vm3, %v902_v19  ;;  %981 = vst.msk [vmem:[#allocation2 + $0xf8] sm:$0xff] %vm949_vm3, %v904_v20  ;;  %v4960_v20 = vld [vmem:[%s5504_s25 + $0x78] sm:$0xff] }
 0x155   : > { %1307 = vrot.lane.b32.xlu0 %v8030_v25, %s5446_s30  ;;  %1309 = vrot.lane.b32.xlu1 %v8031_v26, %s5446_s30  ;;  %v4961_v25 = vld [vmem:[%s5504_s25 + $0x80] sm:$0xff] }
 0x157   : > { %v906_v27 = vpop.permute.xlu0 %905  ;;  %v908_v30 = vpop.permute.xlu1 %907 }
 0x158   : > { %982 = vst.msk [vmem:[#allocation2 + $0x100] sm:$0xff] %vm949_vm3, %v906_v27  ;;  %983 = vst.msk [vmem:[#allocation2 + $0x108] sm:$0xff] %vm949_vm3, %v908_v30  ;;  %v4962_v30 = vld [vmem:[%s5504_s25 + $0x90] sm:$0xff] }
 0x159   : > { %1311 = vrot.lane.b32.xlu0 %v8032_v31, %s5446_s30  ;;  %1313 = vrot.lane.b32.xlu1 %v8033_v32, %s5446_s30  ;;  %v4963_v31 = vld [vmem:[%s5504_s25 + $0x98] sm:$0xff] }
 0x15b   : > { %v910_v33 = vpop.permute.xlu0 %909  ;;  %v912_v36 = vpop.permute.xlu1 %911 }
 0x15c   : > { %984 = vst.msk [vmem:[#allocation2 + $0x110] sm:$0xff] %vm949_vm3, %v910_v33  ;;  %985 = vst.msk [vmem:[#allocation2 + $0x118] sm:$0xff] %vm949_vm3, %v912_v36  ;;  %v4964_v36 = vld [vmem:[%s5504_s25 + $0xa8] sm:$0xff] }
 0x15d   : > { %1315 = vrot.lane.b32.xlu0 %v8034_v1, %s5446_s30  ;;  %1317 = vrot.lane.b32.xlu1 %v8035_v3, %s5446_s30  ;;  %v4965_v1 = vld [vmem:[%s5504_s25 + $0xb0] sm:$0xff] }
 0x15f   : > { %v1059_v4 = vpop.permute.xlu0 %1058  ;;  %v1061_v5 = vpop.permute.xlu1 %1060 }
 0x160   : > { %1167 = vst.msk [vmem:[#allocation2] sm:$0xff] %vm1166_vm4, %v1059_v4  ;;  %1168 = vst.msk [vmem:[#allocation2 + $0x8] sm:$0xff] %vm1166_vm4, %v1061_v5  ;;  %v4966_v5 = vld [vmem:[%s5504_s25 + $0xc0] sm:$0xff] }
 0x161   : > { %1319 = vrot.lane.b32.xlu0 %v8036_v6, %s5446_s30  ;;  %1321 = vrot.lane.b32.xlu1 %v8037_v7, %s5446_s30  ;;  %v4967_v6 = vld [vmem:[%s5504_s25 + $0xc8] sm:$0xff] }
 0x163   : > { %v1063_v8 = vpop.permute.xlu0 %1062  ;;  %v1065_v9 = vpop.permute.xlu1 %1064 }
 0x164   : > { %1169 = vst.msk [vmem:[#allocation2 + $0x10] sm:$0xff] %vm1166_vm4, %v1063_v8  ;;  %1170 = vst.msk [vmem:[#allocation2 + $0x18] sm:$0xff] %vm1166_vm4, %v1065_v9  ;;  %v4968_v9 = vld [vmem:[%s5504_s25 + $0xd8] sm:$0xff] }
 0x165   : > { %1323 = vrot.lane.b32.xlu0 %v8038_v10, %s5446_s30  ;;  %1325 = vrot.lane.b32.xlu1 %v8039_v11, %s5446_s30  ;;  %v4969_v10 = vld [vmem:[%s5504_s25 + $0xe0] sm:$0xff] }
 0x167   : > { %v1067_v14 = vpop.permute.xlu0 %1066  ;;  %v1069_v15 = vpop.permute.xlu1 %1068 }
 0x168   : > { %1171 = vst.msk [vmem:[#allocation2 + $0x20] sm:$0xff] %vm1166_vm4, %v1067_v14  ;;  %1172 = vst.msk [vmem:[#allocation2 + $0x28] sm:$0xff] %vm1166_vm4, %v1069_v15  ;;  %v4970_v15 = vld [vmem:[%s5504_s25 + $0xf0] sm:$0xff] }
 0x169   : > { %1327 = vrot.lane.b32.xlu0 %v8040_v21, %s5446_s30  ;;  %1329 = vrot.lane.b32.xlu1 %v8041_v22, %s5446_s30 }
 0x16b   : > { %v1071_v28 = vpop.permute.xlu0 %1070  ;;  %v1073_v29 = vpop.permute.xlu1 %1072 }
 0x16c   : > { %1173 = vst.msk [vmem:[#allocation2 + $0x30] sm:$0xff] %vm1166_vm4, %v1071_v28  ;;  %1174 = vst.msk [vmem:[#allocation2 + $0x38] sm:$0xff] %vm1166_vm4, %v1073_v29 }
 0x16d   : > { %1331 = vrot.lane.b32.xlu0 %v8042_v34, %s5446_s30  ;;  %1333 = vrot.lane.b32.xlu1 %v8043_v35, %s5446_s30 }
 0x16f   : > { %v1075_v46 = vpop.permute.xlu0 %1074  ;;  %v1077_v47 = vpop.permute.xlu1 %1076 }
 0x170   : > { %1175 = vst.msk [vmem:[#allocation2 + $0x40] sm:$0xff] %vm1166_vm4, %v1075_v46  ;;  %1176 = vst.msk [vmem:[#allocation2 + $0x48] sm:$0xff] %vm1166_vm4, %v1077_v47 }
 0x171   : > { %1335 = vrot.lane.b32.xlu0 %v6019_v58, %s5446_s30  ;;  %1337 = vrot.lane.b32.xlu1 %v6022_v59, %s5446_s30  ;;  %v6370_v58 = vld [vmem:[%s5504_s25 + $0x1ba] sm:$0xff] }
 0x173   : > { %v1079_v37 = vpop.permute.xlu0 %1078  ;;  %v1081_v38 = vpop.permute.xlu1 %1080 }
 0x174   : > { %1177 = vst.msk [vmem:[#allocation2 + $0x50] sm:$0xff] %vm1166_vm4, %v1079_v37  ;;  %1178 = vst.msk [vmem:[#allocation2 + $0x58] sm:$0xff] %vm1166_vm4, %v1081_v38  ;;  %v2110_v37 = vld [vmem:[%s7912_s1 + $0x10] sm:$0xff] }
 0x175   : > { %1339 = vrot.lane.b32.xlu0 %v6031_v55, %s5446_s30  ;;  %1341 = vrot.lane.b32.xlu1 %v6034_v12, %s5446_s30  ;;  %v4954_v55 = vld [vmem:[%s5504_s25 + $0x30] sm:$0xff]  ;;  %v4955_v12 = vld [vmem:[%s5504_s25 + $0x38] sm:$0xff] }
 0x177   : > { %v1083_v51 = vpop.permute.xlu0 %1082  ;;  %v1085_v59 = vpop.permute.xlu1 %1084 }
 0x178   : > { %1179 = vst.msk [vmem:[#allocation2 + $0x60] sm:$0xff] %vm1166_vm4, %v1083_v51  ;;  %1180 = vst.msk [vmem:[#allocation2 + $0x68] sm:$0xff] %vm1166_vm4, %v1085_v59  ;;  %v4991_v59 = vld [vmem:[%s5504_s25 + $0x39] sm:$0xff] }
 0x179   : > { %1343 = vrot.lane.b32.xlu0 %v6367_v50, %s5446_s30  ;;  %1345 = vrot.lane.b32.xlu1 %v6370_v58, %s5446_s30 }
 0x17b   : > { %v1087_v39 = vpop.permute.xlu0 %1086  ;;  %v1089_v40 = vpop.permute.xlu1 %1088 }
 0x17c   : > { %1181 = vst.msk [vmem:[#allocation2 + $0x70] sm:$0xff] %vm1166_vm4, %v1087_v39  ;;  %1182 = vst.msk [vmem:[#allocation2 + $0x78] sm:$0xff] %vm1166_vm4, %v1089_v40 }
 0x17d   : > { %1493 = vrot.lane.b32.xlu0 %v4954_v55, %s5447_s6  ;;  %1495 = vrot.lane.b32.xlu1 %v4955_v12, %s5447_s6 }
 0x17f   : > { %v1091_v54 = vpop.permute.xlu0 %1090  ;;  %v1093_v16 = vpop.permute.xlu1 %1092 }
 0x180   : > { %1183 = vst.msk [vmem:[#allocation2 + $0x80] sm:$0xff] %vm1166_vm4, %v1091_v54  ;;  %1184 = vst.msk [vmem:[#allocation2 + $0x88] sm:$0xff] %vm1166_vm4, %v1093_v16 }
 0x181   : > { %1497 = vrot.lane.b32.xlu0 %v4956_v62, %s5447_s6  ;;  %1499 = vrot.lane.b32.xlu1 %v4957_v63, %s5447_s6  ;;  %v4992_v62 = vld [vmem:[%s5504_s25 + $0x49] sm:$0xff]  ;;  %v4993_v63 = vld [vmem:[%s5504_s25 + $0x51] sm:$0xff] }
 0x183   : > { %v1095_v18 = vpop.permute.xlu0 %1094  ;;  %v1097_v19 = vpop.permute.xlu1 %1096 }
 0x184   : > { %1185 = vst.msk [vmem:[#allocation2 + $0x90] sm:$0xff] %vm1166_vm4, %v1095_v18  ;;  %1186 = vst.msk [vmem:[#allocation2 + $0x98] sm:$0xff] %vm1166_vm4, %v1097_v19 }
 0x185   : > { %1501 = vrot.lane.b32.xlu0 %v4958_v13, %s5447_s6  ;;  %1503 = vrot.lane.b32.xlu1 %v4959_v17, %s5447_s6  ;;  %v5028_v13 = vld [vmem:[%s5504_s25 + $0x4a] sm:$0xff]  ;;  %v5029_v17 = vld [vmem:[%s5504_s25 + $0x52] sm:$0xff] }
 0x187   : > { %v1099_v26 = vpop.permute.xlu0 %1098  ;;  %v1101_v27 = vpop.permute.xlu1 %1100 }
 0x188   : > { %1187 = vst.msk [vmem:[#allocation2 + $0xa0] sm:$0xff] %vm1166_vm4, %v1099_v26  ;;  %1188 = vst.msk [vmem:[#allocation2 + $0xa8] sm:$0xff] %vm1166_vm4, %v1101_v27 }
 0x189   : > { %1505 = vrot.lane.b32.xlu0 %v4960_v20, %s5447_s6  ;;  %1507 = vrot.lane.b32.xlu1 %v4961_v25, %s5447_s6  ;;  %v4994_v20 = vld [vmem:[%s5504_s25 + $0x61] sm:$0xff]  ;;  %v4995_v25 = vld [vmem:[%s5504_s25 + $0x69] sm:$0xff] }
 0x18b   : > { %v1103_v32 = vpop.permute.xlu0 %1102  ;;  %v1105_v33 = vpop.permute.xlu1 %1104 }
 0x18c   : > { %1189 = vst.msk [vmem:[#allocation2 + $0xb0] sm:$0xff] %vm1166_vm4, %v1103_v32  ;;  %1190 = vst.msk [vmem:[#allocation2 + $0xb8] sm:$0xff] %vm1166_vm4, %v1105_v33 }
 0x18d   : > { %1509 = vrot.lane.b32.xlu0 %v4962_v30, %s5447_s6  ;;  %1511 = vrot.lane.b32.xlu1 %v4963_v31, %s5447_s6  ;;  %v5030_v30 = vld [vmem:[%s5504_s25 + $0x62] sm:$0xff]  ;;  %v5031_v31 = vld [vmem:[%s5504_s25 + $0x6a] sm:$0xff] }
 0x18f   : > { %v1107_v3 = vpop.permute.xlu0 %1106  ;;  %v1109_v4 = vpop.permute.xlu1 %1108 }
 0x190   : > { %1191 = vst.msk [vmem:[#allocation2 + $0xc0] sm:$0xff] %vm1166_vm4, %v1107_v3  ;;  %1192 = vst.msk [vmem:[#allocation2 + $0xc8] sm:$0xff] %vm1166_vm4, %v1109_v4 }
 0x191   : > { %1513 = vrot.lane.b32.xlu0 %v4964_v36, %s5447_s6  ;;  %1515 = vrot.lane.b32.xlu1 %v4965_v1, %s5447_s6  ;;  %v4996_v36 = vld [vmem:[%s5504_s25 + $0x79] sm:$0xff]  ;;  %v4997_v1 = vld [vmem:[%s5504_s25 + $0x81] sm:$0xff] }
 0x193   : > { %v1111_v7 = vpop.permute.xlu0 %1110  ;;  %v1113_v8 = vpop.permute.xlu1 %1112 }
 0x194   : > { %1193 = vst.msk [vmem:[#allocation2 + $0xd0] sm:$0xff] %vm1166_vm4, %v1111_v7  ;;  %1194 = vst.msk [vmem:[#allocation2 + $0xd8] sm:$0xff] %vm1166_vm4, %v1113_v8 }
 0x195   : > { %1517 = vrot.lane.b32.xlu0 %v4966_v5, %s5447_s6  ;;  %1519 = vrot.lane.b32.xlu1 %v4967_v6, %s5447_s6  ;;  %v5032_v5 = vld [vmem:[%s5504_s25 + $0x7a] sm:$0xff]  ;;  %v5033_v6 = vld [vmem:[%s5504_s25 + $0x82] sm:$0xff] }
 0x197   : > { %v1115_v11 = vpop.permute.xlu0 %1114  ;;  %v1117_v14 = vpop.permute.xlu1 %1116 }
 0x198   : > { %1195 = vst.msk [vmem:[#allocation2 + $0xe0] sm:$0xff] %vm1166_vm4, %v1115_v11  ;;  %1196 = vst.msk [vmem:[#allocation2 + $0xe8] sm:$0xff] %vm1166_vm4, %v1117_v14 }
 0x199   : > { %1521 = vrot.lane.b32.xlu0 %v4968_v9, %s5447_s6  ;;  %1523 = vrot.lane.b32.xlu1 %v4969_v10, %s5447_s6  ;;  %v4998_v9 = vld [vmem:[%s5504_s25 + $0x91] sm:$0xff]  ;;  %v4999_v10 = vld [vmem:[%s5504_s25 + $0x99] sm:$0xff] }
 0x19b   : > { %v1119_v21 = vpop.permute.xlu0 %1118  ;;  %v1121_v22 = vpop.permute.xlu1 %1120 }
 0x19c   : > { %1197 = vst.msk [vmem:[#allocation2 + $0xf0] sm:$0xff] %vm1166_vm4, %v1119_v21  ;;  %1198 = vst.msk [vmem:[#allocation2 + $0xf8] sm:$0xff] %vm1166_vm4, %v1121_v22  ;;  %v5035_v21 = vld [vmem:[%s5504_s25 + $0x9a] sm:$0xff] }
 0x19d   : > { %1525 = vrot.lane.b32.xlu0 %v4970_v15, %s5447_s6  ;;  %1527 = vrot.lane.b32.xlu1 %v5696_v41, %s5447_s6  ;;  %v5034_v15 = vld [vmem:[%s5504_s25 + $0x92] sm:$0xff] }
 0x19f   : > { %v1123_v28 = vpop.permute.xlu0 %1122  ;;  %v1125_v29 = vpop.permute.xlu1 %1124 }
 0x1a0   : > { %1199 = vst.msk [vmem:[#allocation2 + $0x100] sm:$0xff] %vm1166_vm4, %v1123_v28  ;;  %1200 = vst.msk [vmem:[#allocation2 + $0x108] sm:$0xff] %vm1166_vm4, %v1125_v29  ;;  %v5000_v29 = vld [vmem:[%s5504_s25 + $0xa9] sm:$0xff] }
 0x1a1   : > { %1529 = vrot.lane.b32.xlu0 %v5699_v42, %s5447_s6  ;;  %1531 = vrot.lane.b32.xlu1 %v5702_v43, %s5447_s6 }
 0x1a3   : > { %v1127_v34 = vpop.permute.xlu0 %1126  ;;  %v1129_v35 = vpop.permute.xlu1 %1128 }
 0x1a4   : > { %1201 = vst.msk [vmem:[#allocation2 + $0x110] sm:$0xff] %vm1166_vm4, %v1127_v34  ;;  %1202 = vst.msk [vmem:[#allocation2 + $0x118] sm:$0xff] %vm1166_vm4, %v1129_v35  ;;  %v5001_v34 = vld [vmem:[%s5504_s25 + $0xb1] sm:$0xff] }
 0x1a5   : > { %1533 = vrot.lane.b32.xlu0 %v5711_v44, %s5447_s6  ;;  %1535 = vrot.lane.b32.xlu1 %v5714_v45, %s5447_s6 }
 0x1a7   : > { %v1276_v41 = vpop.permute.xlu0 %1275  ;;  %v1278_v46 = vpop.permute.xlu1 %1277 }
 0x1a8   : > { %1384 = vst.msk [vmem:[#allocation2] sm:$0xff] %vm1383_vm5, %v1276_v41  ;;  %1385 = vst.msk [vmem:[#allocation2 + $0x8] sm:$0xff] %vm1383_vm5, %v1278_v46  ;;  %v5036_v46 = vld [vmem:[%s5504_s25 + $0xaa] sm:$0xff] }
 0x1a9   : > { %1537 = vrot.lane.b32.xlu0 %v5731_v48, %s5447_s6  ;;  %1539 = vrot.lane.b32.xlu1 %v5736_v49, %s5447_s6 }
 0x1ab   : > { %v1280_v42 = vpop.permute.xlu0 %1279  ;;  %v1282_v43 = vpop.permute.xlu1 %1281 }
 0x1ac   : > { %1386 = vst.msk [vmem:[#allocation2 + $0x10] sm:$0xff] %vm1383_vm5, %v1280_v42  ;;  %1387 = vst.msk [vmem:[#allocation2 + $0x18] sm:$0xff] %vm1383_vm5, %v1282_v43  ;;  %v5037_v42 = vld [vmem:[%s5504_s25 + $0xb2] sm:$0xff] }
 0x1ad   : > { %1541 = vrot.lane.b32.xlu0 %v5751_v52, %s5447_s6  ;;  %1543 = vrot.lane.b32.xlu1 %v5756_v53, %s5447_s6  ;;  %v2108_v52 = vld [vmem:[%s7912_s1] sm:$0xff]  ;;  %v2109_v53 = vld [vmem:[%s7912_s1 + $0x8] sm:$0xff] }
 0x1af   : > { %v1284_v44 = vpop.permute.xlu0 %1283  ;;  %v1286_v45 = vpop.permute.xlu1 %1285 }
 0x1b0   : > { %1388 = vst.msk [vmem:[#allocation2 + $0x20] sm:$0xff] %vm1383_vm5, %v1284_v44  ;;  %1389 = vst.msk [vmem:[#allocation2 + $0x28] sm:$0xff] %vm1383_vm5, %v1286_v45  ;;  %v5002_v45 = vld [vmem:[%s5504_s25 + $0xc1] sm:$0xff] }
 0x1b1   : > { %1545 = vrot.lane.b32.xlu0 %v5771_v56, %s5447_s6  ;;  %1547 = vrot.lane.b32.xlu1 %v5776_v57, %s5447_s6  ;;  %v5369_v56 = vpack.c.bf16 %v2109_v53, %v2108_v52  ;;  %v5038_v53 = vld [vmem:[%s5504_s25 + $0xc2] sm:$0xff] }
 0x1b3   : > { %v1288_v48 = vpop.permute.xlu0 %1287  ;;  %v1290_v49 = vpop.permute.xlu1 %1289  ;;  %5370 = vmatprep.subr.bf16.mxu0 %v5369_v56 }
 0x1b4   : > { %1390 = vst.msk [vmem:[#allocation2 + $0x30] sm:$0xff] %vm1383_vm5, %v1288_v48  ;;  %1391 = vst.msk [vmem:[#allocation2 + $0x38] sm:$0xff] %vm1383_vm5, %v1290_v49  ;;  %5372 = vmatpush3.bf16.msra.mxu0 %v5369_v56  ;;  %v5003_v48 = vld [vmem:[%s5504_s25 + $0xc9] sm:$0xff] }
 0x1b5   : > { %1549 = vrot.lane.b32.xlu0 %v5791_v60, %s5447_s6  ;;  %1551 = vrot.lane.b32.xlu1 %v5796_v61, %s5447_s6  ;;  %v2111_v60 = vld [vmem:[%s7912_s1 + $0x18] sm:$0xff]  ;;  %v5039_v56 = vld [vmem:[%s5504_s25 + $0xca] sm:$0xff] }
 0x1b6   : > { %v5373_v61 = vpack.c.bf16 %v2111_v60, %v2110_v37  ;;  %v5004_v37 = vld [vmem:[%s5504_s25 + $0xd9] sm:$0xff]  ;;  %v5005_v60 = vld [vmem:[%s5504_s25 + $0xe1] sm:$0xff] }
 0x1b7   : > { %v1292_v57 = vpop.permute.xlu0 %1291  ;;  %v1294_v47 = vpop.permute.xlu1 %1293 }
 0x1b8   : > { %1392 = vst.msk [vmem:[#allocation2 + $0x40] sm:$0xff] %vm1383_vm5, %v1292_v57  ;;  %1393 = vst.msk [vmem:[#allocation2 + $0x48] sm:$0xff] %vm1383_vm5, %v1294_v47  ;;  %5374 = vmatprep.subr.bf16.mxu0 %v5373_v61 }
 0x1b9   : > { %1553 = vrot.lane.b32.xlu0 %v5811_v0, %s5447_s6  ;;  %1555 = vrot.lane.b32.xlu1 %v5816_v2, %s5447_s6  ;;  %v2112_v0 = vld [vmem:[%s7912_s1 + $0x20] sm:$0xf]  ;;  %v4990_v2 = vld [vmem:[%s5504_s25 + $0x31] sm:$0xff] }
 0x1ba   : > { %5376 = vmatpush3.bf16.msra.mxu0 %v5373_v61 }
 0x1bb   : > { %v1296_v38 = vpop.permute.xlu0 %1295  ;;  %v1298_v51 = vpop.permute.xlu1 %1297  ;;  %5255 = vmatprep.subr.msk.mxu0 %vm2229_vm6, %v2112_v0 }
 0x1bc   : > { %1394 = vst.msk [vmem:[#allocation2 + $0x50] sm:$0xff] %vm1383_vm5, %v1296_v38  ;;  %1395 = vst.msk [vmem:[#allocation2 + $0x58] sm:$0xff] %vm1383_vm5, %v1298_v51  ;;  %v5040_v51 = vld [vmem:[%s5504_s25 + $0xda] sm:$0xff] }
 0x1bd   : > { %1557 = vrot.lane.b32.xlu0 %v6145_v23, %s5447_s6  ;;  %1559 = vrot.lane.b32.xlu1 %v6148_v24, %s5447_s6  ;;  %v5026_v23 = vld [vmem:[%s5504_s25 + $0x32] sm:$0xff]  ;;  %v5027_v24 = vld [vmem:[%s5504_s25 + $0x3a] sm:$0xff] }
 0x1be   : > { %5256 = vmatpush3.msk.msra.mxu0 %vm2229_vm6, %v2112_v0  ;;  %v5041_v0 = vld [vmem:[%s5504_s25 + $0xe2] sm:$0xff] }
 0x1bf   : > { %v1300_v55 = vpop.permute.xlu0 %1299  ;;  %v1302_v12 = vpop.permute.xlu1 %1301 }
 0x1c0   : > { %1396 = vst.msk [vmem:[#allocation2 + $0x60] sm:$0xff] %vm1383_vm5, %v1300_v55  ;;  %1397 = vst.msk [vmem:[#allocation2 + $0x68] sm:$0xff] %vm1383_vm5, %v1302_v12  ;;  %v5006_v55 = vld [vmem:[%s5504_s25 + $0xf1] sm:$0xff]  ;;  %v5007_v12 = vld [vmem:[%s5504_s25 + $0xf9] sm:$0xff] }
 0x1c1   : > { %1710 = vrot.lane.b32.xlu0 %v4990_v2, %s5448_s17  ;;  %1712 = vrot.lane.b32.xlu1 %v4991_v59, %s5448_s17 }
 0x1c3   : > { %v1304_v39 = vpop.permute.xlu0 %1303  ;;  %v1306_v40 = vpop.permute.xlu1 %1305 }
 0x1c4   : > { %1398 = vst.msk [vmem:[#allocation2 + $0x70] sm:$0xff] %vm1383_vm5, %v1304_v39  ;;  %1399 = vst.msk [vmem:[#allocation2 + $0x78] sm:$0xff] %vm1383_vm5, %v1306_v40  ;;  %v5042_v39 = vld [vmem:[%s5504_s25 + $0xf2] sm:$0xff]  ;;  %v5043_v40 = vld [vmem:[%s5504_s25 + $0xfa] sm:$0xff] }
 0x1c5   : > { %1927 = vrot.lane.b32.xlu0 %v5026_v23, %s5449_s22  ;;  %1929 = vrot.lane.b32.xlu1 %v5027_v24, %s5449_s22 }
 0x1c7   : > { %v1308_v54 = vpop.permute.xlu0 %1307  ;;  %v1310_v16 = vpop.permute.xlu1 %1309 }
 0x1c8   : > { %1400 = vst.msk [vmem:[#allocation2 + $0x80] sm:$0xff] %vm1383_vm5, %v1308_v54  ;;  %1401 = vst.msk [vmem:[#allocation2 + $0x88] sm:$0xff] %vm1383_vm5, %v1310_v16  ;;  %v5008_v54 = vld [vmem:[%s5504_s25 + $0x109] sm:$0xff]  ;;  %v5009_v16 = vld [vmem:[%s5504_s25 + $0x111] sm:$0xff] }
 0x1c9   : > { %1714 = vrot.lane.b32.xlu0 %v4992_v62, %s5448_s17  ;;  %1716 = vrot.lane.b32.xlu1 %v4993_v63, %s5448_s17 }
 0x1cb   : > { %v1312_v18 = vpop.permute.xlu0 %1311  ;;  %v1314_v19 = vpop.permute.xlu1 %1313 }
 0x1cc   : > { %1402 = vst.msk [vmem:[#allocation2 + $0x90] sm:$0xff] %vm1383_vm5, %v1312_v18  ;;  %1403 = vst.msk [vmem:[#allocation2 + $0x98] sm:$0xff] %vm1383_vm5, %v1314_v19  ;;  %v5044_v18 = vld [vmem:[%s5504_s25 + $0x10a] sm:$0xff]  ;;  %v5045_v19 = vld [vmem:[%s5504_s25 + $0x112] sm:$0xff] }
 0x1cd   : > { %1931 = vrot.lane.b32.xlu0 %v5028_v13, %s5449_s22  ;;  %1933 = vrot.lane.b32.xlu1 %v5029_v17, %s5449_s22 }
 0x1cf   : > { %v1316_v26 = vpop.permute.xlu0 %1315  ;;  %v1318_v27 = vpop.permute.xlu1 %1317 }
 0x1d0   : > { %1404 = vst.msk [vmem:[#allocation2 + $0xa0] sm:$0xff] %vm1383_vm5, %v1316_v26  ;;  %1405 = vst.msk [vmem:[#allocation2 + $0xa8] sm:$0xff] %vm1383_vm5, %v1318_v27  ;;  %v5010_v26 = vld [vmem:[%s5504_s25 + $0x121] sm:$0xff]  ;;  %v5011_v27 = vld [vmem:[%s5504_s25 + $0x129] sm:$0xff] }
 0x1d1   : > { %1718 = vrot.lane.b32.xlu0 %v4994_v20, %s5448_s17  ;;  %1720 = vrot.lane.b32.xlu1 %v4995_v25, %s5448_s17 }
 0x1d3   : > { %v1320_v32 = vpop.permute.xlu0 %1319  ;;  %v1322_v33 = vpop.permute.xlu1 %1321 }
 0x1d4   : > { %1406 = vst.msk [vmem:[#allocation2 + $0xb0] sm:$0xff] %vm1383_vm5, %v1320_v32  ;;  %1407 = vst.msk [vmem:[#allocation2 + $0xb8] sm:$0xff] %vm1383_vm5, %v1322_v33  ;;  %v5046_v32 = vld [vmem:[%s5504_s25 + $0x122] sm:$0xff]  ;;  %v5047_v33 = vld [vmem:[%s5504_s25 + $0x12a] sm:$0xff] }
 0x1d5   : > { %1935 = vrot.lane.b32.xlu0 %v5030_v30, %s5449_s22  ;;  %1937 = vrot.lane.b32.xlu1 %v5031_v31, %s5449_s22 }
 0x1d7   : > { %v1324_v3 = vpop.permute.xlu0 %1323  ;;  %v1326_v4 = vpop.permute.xlu1 %1325 }
 0x1d8   : > { %1408 = vst.msk [vmem:[#allocation2 + $0xc0] sm:$0xff] %vm1383_vm5, %v1324_v3  ;;  %1409 = vst.msk [vmem:[#allocation2 + $0xc8] sm:$0xff] %vm1383_vm5, %v1326_v4  ;;  %v5012_v3 = vld [vmem:[%s5504_s25 + $0x139] sm:$0xff]  ;;  %v5013_v4 = vld [vmem:[%s5504_s25 + $0x141] sm:$0xff] }
 0x1d9   : > { %1722 = vrot.lane.b32.xlu0 %v4996_v36, %s5448_s17  ;;  %1724 = vrot.lane.b32.xlu1 %v4997_v1, %s5448_s17 }
 0x1db   : > { %v1328_v7 = vpop.permute.xlu0 %1327  ;;  %v1330_v8 = vpop.permute.xlu1 %1329 }
 0x1dc   : > { %1410 = vst.msk [vmem:[#allocation2 + $0xd0] sm:$0xff] %vm1383_vm5, %v1328_v7  ;;  %1411 = vst.msk [vmem:[#allocation2 + $0xd8] sm:$0xff] %vm1383_vm5, %v1330_v8  ;;  %v5048_v7 = vld [vmem:[%s5504_s25 + $0x13a] sm:$0xff]  ;;  %v5049_v8 = vld [vmem:[%s5504_s25 + $0x142] sm:$0xff] }
 0x1dd   : > { %1939 = vrot.lane.b32.xlu0 %v5032_v5, %s5449_s22  ;;  %1941 = vrot.lane.b32.xlu1 %v5033_v6, %s5449_s22 }
 0x1df   : > { %v1332_v11 = vpop.permute.xlu0 %1331  ;;  %v1334_v14 = vpop.permute.xlu1 %1333 }
 0x1e0   : > { %1412 = vst.msk [vmem:[#allocation2 + $0xe0] sm:$0xff] %vm1383_vm5, %v1332_v11  ;;  %1413 = vst.msk [vmem:[#allocation2 + $0xe8] sm:$0xff] %vm1383_vm5, %v1334_v14  ;;  %v5014_v11 = vld [vmem:[%s5504_s25 + $0x151] sm:$0xff]  ;;  %v5015_v14 = vld [vmem:[%s5504_s25 + $0x159] sm:$0xff] }
 0x1e1   : > { %1726 = vrot.lane.b32.xlu0 %v4998_v9, %s5448_s17  ;;  %1728 = vrot.lane.b32.xlu1 %v4999_v10, %s5448_s17 }
 0x1e3   : > { %v1336_v22 = vpop.permute.xlu0 %1335  ;;  %v1338_v28 = vpop.permute.xlu1 %1337 }
 0x1e4   : > { %1414 = vst.msk [vmem:[#allocation2 + $0xf0] sm:$0xff] %vm1383_vm5, %v1336_v22  ;;  %1415 = vst.msk [vmem:[#allocation2 + $0xf8] sm:$0xff] %vm1383_vm5, %v1338_v28  ;;  %v5050_v22 = vld [vmem:[%s5504_s25 + $0x152] sm:$0xff]  ;;  %v5051_v28 = vld [vmem:[%s5504_s25 + $0x15a] sm:$0xff] }
 0x1e5   : > { %1943 = vrot.lane.b32.xlu0 %v5034_v15, %s5449_s22  ;;  %1945 = vrot.lane.b32.xlu1 %v5035_v21, %s5449_s22 }
 0x1e7   : > { %v1340_v35 = vpop.permute.xlu0 %1339  ;;  %v1342_v41 = vpop.permute.xlu1 %1341 }
 0x1e8   : > { %1416 = vst.msk [vmem:[#allocation2 + $0x100] sm:$0xff] %vm1383_vm5, %v1340_v35  ;;  %1417 = vst.msk [vmem:[#allocation2 + $0x108] sm:$0xff] %vm1383_vm5, %v1342_v41  ;;  %v5016_v35 = vld [vmem:[%s5504_s25 + $0x169] sm:$0xff]  ;;  %v5017_v41 = vld [vmem:[%s5504_s25 + $0x171] sm:$0xff] }
 0x1e9   : > { %1730 = vrot.lane.b32.xlu0 %v5000_v29, %s5448_s17  ;;  %1732 = vrot.lane.b32.xlu1 %v5001_v34, %s5448_s17 }
 0x1eb   : > { %v1344_v43 = vpop.permute.xlu0 %1343  ;;  %v1346_v44 = vpop.permute.xlu1 %1345 }
 0x1ec   : > { %1418 = vst.msk [vmem:[#allocation2 + $0x110] sm:$0xff] %vm1383_vm5, %v1344_v43  ;;  %1419 = vst.msk [vmem:[#allocation2 + $0x118] sm:$0xff] %vm1383_vm5, %v1346_v44  ;;  %v5052_v43 = vld [vmem:[%s5504_s25 + $0x16a] sm:$0xff]  ;;  %v5053_v44 = vld [vmem:[%s5504_s25 + $0x172] sm:$0xff] }
 0x1ed   : > { %1947 = vrot.lane.b32.xlu0 %v5036_v46, %s5449_s22  ;;  %1949 = vrot.lane.b32.xlu1 %v5037_v42, %s5449_s22 }
 0x1ef   : > { %v1494_v49 = vpop.permute.xlu0 %1493  ;;  %v1496_v52 = vpop.permute.xlu1 %1495 }
 0x1f0   : > { %1602 = vst.msk [vmem:[#allocation2] sm:$0xff] %vm1601_vm7, %v1494_v49  ;;  %1603 = vst.msk [vmem:[#allocation2 + $0x8] sm:$0xff] %vm1601_vm7, %v1496_v52  ;;  %v5018_v49 = vld [vmem:[%s5504_s25 + $0x181] sm:$0xff]  ;;  %v5019_v52 = vld [vmem:[%s5504_s25 + $0x189] sm:$0xff] }
 0x1f1   : > { %1734 = vrot.lane.b32.xlu0 %v5002_v45, %s5448_s17  ;;  %1736 = vrot.lane.b32.xlu1 %v5003_v48, %s5448_s17 }
 0x1f3   : > { %v1498_v57 = vpop.permute.xlu0 %1497  ;;  %v1500_v47 = vpop.permute.xlu1 %1499 }
 0x1f4   : > { %1604 = vst.msk [vmem:[#allocation2 + $0x10] sm:$0xff] %vm1601_vm7, %v1498_v57  ;;  %1605 = vst.msk [vmem:[#allocation2 + $0x18] sm:$0xff] %vm1601_vm7, %v1500_v47  ;;  %v5054_v57 = vld [vmem:[%s5504_s25 + $0x182] sm:$0xff]  ;;  %v5055_v47 = vld [vmem:[%s5504_s25 + $0x18a] sm:$0xff] }
 0x1f5   : > { %1951 = vrot.lane.b32.xlu0 %v5038_v53, %s5449_s22  ;;  %1953 = vrot.lane.b32.xlu1 %v5039_v56, %s5449_s22 }
 0x1f7   : > { %v1502_v61 = vpop.permute.xlu0 %1501  ;;  %v1504_v38 = vpop.permute.xlu1 %1503 }
 0x1f8   : > { %1606 = vst.msk [vmem:[#allocation2 + $0x20] sm:$0xff] %vm1601_vm7, %v1502_v61  ;;  %1607 = vst.msk [vmem:[#allocation2 + $0x28] sm:$0xff] %vm1601_vm7, %v1504_v38  ;;  %v5020_v61 = vld [vmem:[%s5504_s25 + $0x199] sm:$0xff]  ;;  %v5021_v38 = vld [vmem:[%s5504_s25 + $0x1a1] sm:$0xff] }
 0x1f9   : > { %1738 = vrot.lane.b32.xlu0 %v5004_v37, %s5448_s17  ;;  %1740 = vrot.lane.b32.xlu1 %v5005_v60, %s5448_s17 }
 0x1fb   : > { %v1506_v2 = vpop.permute.xlu0 %1505  ;;  %v1508_v59 = vpop.permute.xlu1 %1507 }
 0x1fc   : > { %1608 = vst.msk [vmem:[#allocation2 + $0x30] sm:$0xff] %vm1601_vm7, %v1506_v2  ;;  %1609 = vst.msk [vmem:[#allocation2 + $0x38] sm:$0xff] %vm1601_vm7, %v1508_v59  ;;  %v5056_v2 = vld [vmem:[%s5504_s25 + $0x19a] sm:$0xff]  ;;  %v5057_v59 = vld [vmem:[%s5504_s25 + $0x1a2] sm:$0xff] }
 0x1fd   : > { %1955 = vrot.lane.b32.xlu0 %v5040_v51, %s5449_s22  ;;  %1957 = vrot.lane.b32.xlu1 %v5041_v0, %s5449_s22 }
 0x1ff   : > { %v1510_v23 = vpop.permute.xlu0 %1509  ;;  %v1512_v24 = vpop.permute.xlu1 %1511 }
 0x200   : > { %1610 = vst.msk [vmem:[#allocation2 + $0x40] sm:$0xff] %vm1601_vm7, %v1510_v23  ;;  %1611 = vst.msk [vmem:[#allocation2 + $0x48] sm:$0xff] %vm1601_vm7, %v1512_v24  ;;  %v5022_v23 = vld [vmem:[%s5504_s25 + $0x1b1] sm:$0xff] }
 0x201   : > { %1742 = vrot.lane.b32.xlu0 %v5006_v55, %s5448_s17  ;;  %1744 = vrot.lane.b32.xlu1 %v5007_v12, %s5448_s17 }
 0x203   : > { %v1514_v62 = vpop.permute.xlu0 %1513  ;;  %v1516_v63 = vpop.permute.xlu1 %1515 }
 0x204   : > { %1612 = vst.msk [vmem:[#allocation2 + $0x50] sm:$0xff] %vm1601_vm7, %v1514_v62  ;;  %1613 = vst.msk [vmem:[#allocation2 + $0x58] sm:$0xff] %vm1601_vm7, %v1516_v63  ;;  %v5023_v63 = vld [vmem:[%s5504_s25 + $0x1b9] sm:$0xff] }
 0x205   : > { %1959 = vrot.lane.b32.xlu0 %v5042_v39, %s5449_s22  ;;  %1961 = vrot.lane.b32.xlu1 %v5043_v40, %s5449_s22 }
 0x207   : > { %v1518_v13 = vpop.permute.xlu0 %1517  ;;  %v1520_v17 = vpop.permute.xlu1 %1519 }
 0x208   : > { %1614 = vst.msk [vmem:[#allocation2 + $0x60] sm:$0xff] %vm1601_vm7, %v1518_v13  ;;  %1615 = vst.msk [vmem:[#allocation2 + $0x68] sm:$0xff] %vm1601_vm7, %v1520_v17  ;;  %v4988_v13 = vld [vmem:[%s5504_s25 + $0x1c8] sm:$0xff] }
 0x209   : > { %1746 = vrot.lane.b32.xlu0 %v5008_v54, %s5448_s17  ;;  %1748 = vrot.lane.b32.xlu1 %v5009_v16, %s5448_s17 }
 0x20b   : > { %v1522_v20 = vpop.permute.xlu0 %1521  ;;  %v1524_v25 = vpop.permute.xlu1 %1523 }
 0x20c   : > { %1616 = vst.msk [vmem:[#allocation2 + $0x70] sm:$0xff] %vm1601_vm7, %v1522_v20  ;;  %1617 = vst.msk [vmem:[#allocation2 + $0x78] sm:$0xff] %vm1601_vm7, %v1524_v25  ;;  %v4989_v25 = vld [vmem:[%s5504_s25 + $0x1d0] sm:$0xff] }
 0x20d   : > { %1963 = vrot.lane.b32.xlu0 %v5044_v18, %s5449_s22  ;;  %1965 = vrot.lane.b32.xlu1 %v5045_v19, %s5449_s22 }
 0x20f   : > { %v1526_v30 = vpop.permute.xlu0 %1525  ;;  %v1528_v31 = vpop.permute.xlu1 %1527 }
 0x210   : > { %1618 = vst.msk [vmem:[#allocation2 + $0x80] sm:$0xff] %vm1601_vm7, %v1526_v30  ;;  %1619 = vst.msk [vmem:[#allocation2 + $0x88] sm:$0xff] %vm1601_vm7, %v1528_v31  ;;  %v5060_v30 = vld [vmem:[%s5504_s25 + $0x1ca] sm:$0xff] }
 0x211   : > { %1750 = vrot.lane.b32.xlu0 %v5010_v26, %s5448_s17  ;;  %1752 = vrot.lane.b32.xlu1 %v5011_v27, %s5448_s17  ;;  %v5025_v27 = vld [vmem:[%s5504_s25 + $0x1d1] sm:$0xff] }
 0x213   : > { %v1530_v36 = vpop.permute.xlu0 %1529  ;;  %v1532_v1 = vpop.permute.xlu1 %1531 }
 0x214   : > { %1620 = vst.msk [vmem:[#allocation2 + $0x90] sm:$0xff] %vm1601_vm7, %v1530_v36  ;;  %1621 = vst.msk [vmem:[#allocation2 + $0x98] sm:$0xff] %vm1601_vm7, %v1532_v1  ;;  %v5061_v1 = vld [vmem:[%s5504_s25 + $0x1d2] sm:$0xff] }
 0x215   : > { %1967 = vrot.lane.b32.xlu0 %v5046_v32, %s5449_s22  ;;  %1969 = vrot.lane.b32.xlu1 %v5047_v33, %s5449_s22 }
 0x217   : > { %v1534_v5 = vpop.permute.xlu0 %1533  ;;  %v1536_v6 = vpop.permute.xlu1 %1535 }
 0x218   : > { %1622 = vst.msk [vmem:[#allocation2 + $0xa0] sm:$0xff] %vm1601_vm7, %v1534_v5  ;;  %1623 = vst.msk [vmem:[#allocation2 + $0xa8] sm:$0xff] %vm1601_vm7, %v1536_v6 }
 0x219   : > { %1754 = vrot.lane.b32.xlu0 %v5012_v3, %s5448_s17  ;;  %1756 = vrot.lane.b32.xlu1 %v5013_v4, %s5448_s17 }
 0x21b   : > { %v1538_v9 = vpop.permute.xlu0 %1537  ;;  %v1540_v10 = vpop.permute.xlu1 %1539 }
 0x21c   : > { %1624 = vst.msk [vmem:[#allocation2 + $0xb0] sm:$0xff] %vm1601_vm7, %v1538_v9  ;;  %1625 = vst.msk [vmem:[#allocation2 + $0xb8] sm:$0xff] %vm1601_vm7, %v1540_v10 }
 0x21d   : > { %1971 = vrot.lane.b32.xlu0 %v5048_v7, %s5449_s22  ;;  %1973 = vrot.lane.b32.xlu1 %v5049_v8, %s5449_s22 }
 0x21f   : > { %v1542_v15 = vpop.permute.xlu0 %1541  ;;  %v1544_v21 = vpop.permute.xlu1 %1543 }
 0x220   : > { %1626 = vst.msk [vmem:[#allocation2 + $0xc0] sm:$0xff] %vm1601_vm7, %v1542_v15  ;;  %1627 = vst.msk [vmem:[#allocation2 + $0xc8] sm:$0xff] %vm1601_vm7, %v1544_v21 }
 0x221   : > { %1758 = vrot.lane.b32.xlu0 %v5014_v11, %s5448_s17  ;;  %1760 = vrot.lane.b32.xlu1 %v5015_v14, %s5448_s17 }
 0x223   : > { %v1546_v29 = vpop.permute.xlu0 %1545  ;;  %v1548_v34 = vpop.permute.xlu1 %1547 }
 0x224   : > { %1628 = vst.msk [vmem:[#allocation2 + $0xd0] sm:$0xff] %vm1601_vm7, %v1546_v29  ;;  %1629 = vst.msk [vmem:[#allocation2 + $0xd8] sm:$0xff] %vm1601_vm7, %v1548_v34 }
 0x225   : > { %1975 = vrot.lane.b32.xlu0 %v5050_v22, %s5449_s22  ;;  %1977 = vrot.lane.b32.xlu1 %v5051_v28, %s5449_s22 }
 0x227   : > { %v1550_v46 = vpop.permute.xlu0 %1549  ;;  %v1552_v42 = vpop.permute.xlu1 %1551 }
 0x228   : > { %1630 = vst.msk [vmem:[#allocation2 + $0xe0] sm:$0xff] %vm1601_vm7, %v1550_v46  ;;  %1631 = vst.msk [vmem:[#allocation2 + $0xe8] sm:$0xff] %vm1601_vm7, %v1552_v42 }
 0x229   : > { %1762 = vrot.lane.b32.xlu0 %v5016_v35, %s5448_s17  ;;  %1764 = vrot.lane.b32.xlu1 %v5017_v41, %s5448_s17 }
 0x22b   : > { %v1554_v45 = vpop.permute.xlu0 %1553  ;;  %v1556_v48 = vpop.permute.xlu1 %1555 }
 0x22c   : > { %1632 = vst.msk [vmem:[#allocation2 + $0xf0] sm:$0xff] %vm1601_vm7, %v1554_v45  ;;  %1633 = vst.msk [vmem:[#allocation2 + $0xf8] sm:$0xff] %vm1601_vm7, %v1556_v48 }
 0x22d   : > { %1979 = vrot.lane.b32.xlu0 %v5052_v43, %s5449_s22  ;;  %1981 = vrot.lane.b32.xlu1 %v5053_v44, %s5449_s22 }
 0x22f   : > { %v1558_v53 = vpop.permute.xlu0 %1557  ;;  %v1560_v56 = vpop.permute.xlu1 %1559 }
 0x230   : > { %1634 = vst.msk [vmem:[#allocation2 + $0x100] sm:$0xff] %vm1601_vm7, %v1558_v53  ;;  %1635 = vst.msk [vmem:[#allocation2 + $0x108] sm:$0xff] %vm1601_vm7, %v1560_v56 }
 0x231   : > { %1766 = vrot.lane.b32.xlu0 %v5018_v49, %s5448_s17  ;;  %1768 = vrot.lane.b32.xlu1 %v5019_v52, %s5448_s17 }
 0x233   : > { %v1711_v37 = vpop.permute.xlu0 %1710  ;;  %v1713_v60 = vpop.permute.xlu1 %1712 }
 0x234   : > { %1819 = vst.msk [vmem:[#allocation2] sm:$0xff] %vm1818_vm8, %v1711_v37  ;;  %1820 = vst.msk [vmem:[#allocation2 + $0x8] sm:$0xff] %vm1818_vm8, %v1713_v60 }
 0x235   : > { %1983 = vrot.lane.b32.xlu0 %v5054_v57, %s5449_s22  ;;  %1985 = vrot.lane.b32.xlu1 %v5055_v47, %s5449_s22 }
 0x237   : > { %v1928_v51 = vpop.permute.xlu0 %1927  ;;  %v1930_v0 = vpop.permute.xlu1 %1929 }
 0x238   : > { %2036 = vst.msk [vmem:[#allocation2] sm:$0xff] %vm2035_vm9, %v1928_v51  ;;  %2037 = vst.msk [vmem:[#allocation2 + $0x8] sm:$0xff] %vm2035_vm9, %v1930_v0 }
 0x239   : > { %1770 = vrot.lane.b32.xlu0 %v5020_v61, %s5448_s17  ;;  %1772 = vrot.lane.b32.xlu1 %v5021_v38, %s5448_s17 }
 0x23b   : > { %v1715_v55 = vpop.permute.xlu0 %1714  ;;  %v1717_v12 = vpop.permute.xlu1 %1716 }
 0x23c   : > { %1821 = vst.msk [vmem:[#allocation2 + $0x10] sm:$0xff] %vm1818_vm8, %v1715_v55  ;;  %1822 = vst.msk [vmem:[#allocation2 + $0x18] sm:$0xff] %vm1818_vm8, %v1717_v12 }
 0x23d   : > { %1987 = vrot.lane.b32.xlu0 %v5056_v2, %s5449_s22  ;;  %1989 = vrot.lane.b32.xlu1 %v5057_v59, %s5449_s22 }
 0x23f   : > { %v1932_v24 = vpop.permute.xlu0 %1931  ;;  %v1934_v39 = vpop.permute.xlu1 %1933  ;;  %v2072_v40 = vld [vmem:[#allocation2] sm:$0xff]  ;;  %v2073_v62 = vld [vmem:[#allocation2 + $0x8] sm:$0xff] }
 0x240   : > { %2038 = vst.msk [vmem:[#allocation2 + $0x10] sm:$0xff] %vm2035_vm9, %v1932_v24  ;;  %2039 = vst.msk [vmem:[#allocation2 + $0x18] sm:$0xff] %vm2035_vm9, %v1934_v39  ;;  %5257 = vmatprep.mubr.msk.f32.mxu0 %vm7959_vm10, %v2072_v40 }
 0x241   : > { %1774 = vrot.lane.b32.xlu0 %v5022_v23, %s5448_s17  ;;  %5258 = vmatmul.mubr.msk.f32.vlgmr.msra.gmra.mrb[0].mxu0 %vm7959_vm10, %v2073_v62 }
 0x242   : > { %1776 = vrot.lane.b32.xlu1 %v5023_v63, %s5448_s17 }
 0x243   : > { %v1719_v54 = vpop.permute.xlu0 %1718  ;;  %v1721_v16 = vpop.permute.xlu1 %1720 }
 0x244   : > { %1823 = vst.msk [vmem:[#allocation2 + $0x20] sm:$0xff] %vm1818_vm8, %v1719_v54  ;;  %1824 = vst.msk [vmem:[#allocation2 + $0x28] sm:$0xff] %vm1818_vm8, %v1721_v16 }
 0x245   : > { %1991 = vrot.lane.b32.xlu0 %v6367_v50, %s5449_s22  ;;  %v5024_v50 = vld [vmem:[%s5504_s25 + $0x1c9] sm:$0xff] }
 0x246   : > { %1993 = vrot.lane.b32.xlu1 %v6370_v58, %s5449_s22 }
 0x247   : > { %v1936_v17 = vpop.permute.xlu0 %1935  ;;  %v1938_v18 = vpop.permute.xlu1 %1937  ;;  %v2074_v19 = vld [vmem:[#allocation2 + $0x10] sm:$0xff]  ;;  %v2075_v20 = vld [vmem:[#allocation2 + $0x18] sm:$0xff] }
 0x248   : > { %2040 = vst.msk [vmem:[#allocation2 + $0x20] sm:$0xff] %vm2035_vm9, %v1936_v17  ;;  %2041 = vst.msk [vmem:[#allocation2 + $0x28] sm:$0xff] %vm2035_vm9, %v1938_v18  ;;  %5260 = vmatprep.mubr.msk.f32.mxu0 %vm7959_vm10, %v2074_v19 }
 0x249   : > { %1561 = vrot.lane.b32.xlu0 %v4988_v13, %s5447_s6  ;;  %5261 = vmatmul.mubr.msk.f32.gmra.mrb[2].mxu0 %vm7959_vm10, %v2075_v20 }
 0x24a   : > { %1563 = vrot.lane.b32.xlu1 %v4989_v25, %s5447_s6 }
 0x24b   : > { %v1723_v58 = vpop.permute.xlu0 %1722  ;;  %v1725_v26 = vpop.permute.xlu1 %1724 }
 0x24c   : > { %1825 = vst.msk [vmem:[#allocation2 + $0x30] sm:$0xff] %vm1818_vm8, %v1723_v58  ;;  %1826 = vst.msk [vmem:[#allocation2 + $0x38] sm:$0xff] %vm1818_vm8, %v1725_v26 }
 0x24d   : > { %1778 = vrot.lane.b32.xlu0 %v5024_v50, %s5448_s17 }
 0x24e   : > { %1780 = vrot.lane.b32.xlu1 %v5025_v27, %s5448_s17 }
 0x24f   : > { %v1940_v31 = vpop.permute.xlu0 %1939  ;;  %v1942_v32 = vpop.permute.xlu1 %1941  ;;  %v2076_v33 = vld [vmem:[#allocation2 + $0x20] sm:$0xff]  ;;  %v2077_v36 = vld [vmem:[#allocation2 + $0x28] sm:$0xff] }
 0x250   : > { %2042 = vst.msk [vmem:[#allocation2 + $0x30] sm:$0xff] %vm2035_vm9, %v1940_v31  ;;  %2043 = vst.msk [vmem:[#allocation2 + $0x38] sm:$0xff] %vm2035_vm9, %v1942_v32  ;;  %5263 = vmatprep.mubr.msk.f32.mxu0 %vm7959_vm10, %v2076_v33 }
 0x251   : > { %1995 = vrot.lane.b32.xlu0 %v5060_v30, %s5449_s22  ;;  %5264 = vmatmul.mubr.msk.f32.gmra.mrb[4].mxu0 %vm7959_vm10, %v2077_v36 }
 0x252   : > { %1997 = vrot.lane.b32.xlu1 %v5061_v1, %s5449_s22 }
 0x253   : > { %v1727_v3 = vpop.permute.xlu0 %1726  ;;  %v1729_v4 = vpop.permute.xlu1 %1728 }
 0x254   : > { %1827 = vst.msk [vmem:[#allocation2 + $0x40] sm:$0xff] %vm1818_vm8, %v1727_v3  ;;  %1828 = vst.msk [vmem:[#allocation2 + $0x48] sm:$0xff] %vm1818_vm8, %v1729_v4 }
 0x257   : > { %v1944_v5 = vpop.permute.xlu0 %1943  ;;  %v1946_v6 = vpop.permute.xlu1 %1945  ;;  %v2078_v7 = vld [vmem:[#allocation2 + $0x30] sm:$0xff]  ;;  %v2079_v8 = vld [vmem:[#allocation2 + $0x38] sm:$0xff] }
 0x258   : > { %2044 = vst.msk [vmem:[#allocation2 + $0x40] sm:$0xff] %vm2035_vm9, %v1944_v5  ;;  %2045 = vst.msk [vmem:[#allocation2 + $0x48] sm:$0xff] %vm2035_vm9, %v1946_v6  ;;  %5266 = vmatprep.mubr.msk.f32.mxu0 %vm7959_vm10, %v2078_v7 }
 0x259   : > { %5267 = vmatmul.mubr.msk.f32.gmra.mrb[6].mxu0 %vm7959_vm10, %v2079_v8 }
 0x25b   : > { %v1731_v9 = vpop.permute.xlu0 %1730  ;;  %v1733_v10 = vpop.permute.xlu1 %1732 }
 0x25c   : > { %1829 = vst.msk [vmem:[#allocation2 + $0x50] sm:$0xff] %vm1818_vm8, %v1731_v9  ;;  %1830 = vst.msk [vmem:[#allocation2 + $0x58] sm:$0xff] %vm1818_vm8, %v1733_v10 }
 0x25f   : > { %v1948_v11 = vpop.permute.xlu0 %1947  ;;  %v1950_v14 = vpop.permute.xlu1 %1949  ;;  %v2080_v15 = vld [vmem:[#allocation2 + $0x40] sm:$0xff]  ;;  %v2081_v21 = vld [vmem:[#allocation2 + $0x48] sm:$0xff] }
 0x260   : > { %2046 = vst.msk [vmem:[#allocation2 + $0x50] sm:$0xff] %vm2035_vm9, %v1948_v11  ;;  %2047 = vst.msk [vmem:[#allocation2 + $0x58] sm:$0xff] %vm2035_vm9, %v1950_v14  ;;  %5269 = vmatprep.mubr.msk.f32.mxu0 %vm7959_vm10, %v2080_v15 }
 0x261   : > { %5270 = vmatmul.mubr.msk.f32.gmra.mrb[8].mxu0 %vm7959_vm10, %v2081_v21 }
 0x263   : > { %v1735_v22 = vpop.permute.xlu0 %1734  ;;  %v1737_v28 = vpop.permute.xlu1 %1736 }
 0x264   : > { %1831 = vst.msk [vmem:[#allocation2 + $0x60] sm:$0xff] %vm1818_vm8, %v1735_v22  ;;  %1832 = vst.msk [vmem:[#allocation2 + $0x68] sm:$0xff] %vm1818_vm8, %v1737_v28 }
 0x267   : > { %v1952_v29 = vpop.permute.xlu0 %1951  ;;  %v1954_v34 = vpop.permute.xlu1 %1953  ;;  %v2082_v35 = vld [vmem:[#allocation2 + $0x50] sm:$0xff]  ;;  %v2083_v41 = vld [vmem:[#allocation2 + $0x58] sm:$0xff] }
 0x268   : > { %2048 = vst.msk [vmem:[#allocation2 + $0x60] sm:$0xff] %vm2035_vm9, %v1952_v29  ;;  %2049 = vst.msk [vmem:[#allocation2 + $0x68] sm:$0xff] %vm2035_vm9, %v1954_v34  ;;  %5272 = vmatprep.mubr.msk.f32.mxu0 %vm7959_vm10, %v2082_v35 }
 0x269   : > { %5273 = vmatmul.mubr.msk.f32.gmra.mrb[10].mxu0 %vm7959_vm10, %v2083_v41 }
 0x26b   : > { %v1739_v46 = vpop.permute.xlu0 %1738  ;;  %v1741_v42 = vpop.permute.xlu1 %1740 }
 0x26c   : > { %1833 = vst.msk [vmem:[#allocation2 + $0x70] sm:$0xff] %vm1818_vm8, %v1739_v46  ;;  %1834 = vst.msk [vmem:[#allocation2 + $0x78] sm:$0xff] %vm1818_vm8, %v1741_v42 }
 0x26f   : > { %v1956_v43 = vpop.permute.xlu0 %1955  ;;  %v1958_v44 = vpop.permute.xlu1 %1957  ;;  %v2084_v45 = vld [vmem:[#allocation2 + $0x60] sm:$0xff]  ;;  %v2085_v48 = vld [vmem:[#allocation2 + $0x68] sm:$0xff] }
 0x270   : > { %2050 = vst.msk [vmem:[#allocation2 + $0x70] sm:$0xff] %vm2035_vm9, %v1956_v43  ;;  %2051 = vst.msk [vmem:[#allocation2 + $0x78] sm:$0xff] %vm2035_vm9, %v1958_v44  ;;  %5275 = vmatprep.mubr.msk.f32.mxu0 %vm7959_vm10, %v2084_v45 }
 0x271   : > { %5276 = vmatmul.mubr.msk.f32.gmra.mrb[12].mxu0 %vm7959_vm10, %v2085_v48 }
 0x273   : > { %v1743_v49 = vpop.permute.xlu0 %1742  ;;  %v1745_v52 = vpop.permute.xlu1 %1744 }
 0x274   : > { %1835 = vst.msk [vmem:[#allocation2 + $0x80] sm:$0xff] %vm1818_vm8, %v1743_v49  ;;  %1836 = vst.msk [vmem:[#allocation2 + $0x88] sm:$0xff] %vm1818_vm8, %v1745_v52  ;;  %v6816_v49 = vld [vmem:[%s7913_s2] ss:$0 sm:$0xff] }
 0x277   : > { %v1960_v53 = vpop.permute.xlu0 %1959  ;;  %v1962_v56 = vpop.permute.xlu1 %1961  ;;  %v2086_v57 = vld [vmem:[#allocation2 + $0x70] sm:$0xff]  ;;  %v2087_v47 = vld [vmem:[#allocation2 + $0x78] sm:$0xff] }
 0x278   : > { %2052 = vst.msk [vmem:[#allocation2 + $0x80] sm:$0xff] %vm2035_vm9, %v1960_v53  ;;  %2053 = vst.msk [vmem:[#allocation2 + $0x88] sm:$0xff] %vm2035_vm9, %v1962_v56  ;;  %5278 = vmatprep.mubr.msk.f32.mxu0 %vm7959_vm10, %v2086_v57 }
 0x279   : > { %5279 = vmatmul.mubr.msk.f32.gmra.mrb[14].mxu0 %vm7959_vm10, %v2087_v47 }
 0x27b   : > { %v1747_v37 = vpop.permute.xlu0 %1746  ;;  %v1749_v60 = vpop.permute.xlu1 %1748 }
 0x27c   : > { %1837 = vst.msk [vmem:[#allocation2 + $0x90] sm:$0xff] %vm1818_vm8, %v1747_v37  ;;  %1838 = vst.msk [vmem:[#allocation2 + $0x98] sm:$0xff] %vm1818_vm8, %v1749_v60 }
 0x27f   : > { %v1964_v61 = vpop.permute.xlu0 %1963  ;;  %v1966_v38 = vpop.permute.xlu1 %1965  ;;  %v2088_v51 = vld [vmem:[#allocation2 + $0x80] sm:$0xff]  ;;  %v2089_v0 = vld [vmem:[#allocation2 + $0x88] sm:$0xff] }
 0x280   : > { %2054 = vst.msk [vmem:[#allocation2 + $0x90] sm:$0xff] %vm2035_vm9, %v1964_v61  ;;  %2055 = vst.msk [vmem:[#allocation2 + $0x98] sm:$0xff] %vm2035_vm9, %v1966_v38  ;;  %5281 = vmatprep.mubr.msk.f32.mxu0 %vm7959_vm10, %v2088_v51 }
 0x281   : > { %5282 = vmatmul.mubr.msk.f32.gmra.mrb[16].mxu0 %vm7959_vm10, %v2089_v0 }
 0x283   : > { %v1751_v2 = vpop.permute.xlu0 %1750  ;;  %v1753_v59 = vpop.permute.xlu1 %1752 }
 0x284   : > { %1839 = vst.msk [vmem:[#allocation2 + $0xa0] sm:$0xff] %vm1818_vm8, %v1751_v2  ;;  %1840 = vst.msk [vmem:[#allocation2 + $0xa8] sm:$0xff] %vm1818_vm8, %v1753_v59 }
 0x287   : > { %v1968_v55 = vpop.permute.xlu0 %1967  ;;  %v1970_v12 = vpop.permute.xlu1 %1969  ;;  %v2090_v23 = vld [vmem:[#allocation2 + $0x90] sm:$0xff]  ;;  %v2091_v24 = vld [vmem:[#allocation2 + $0x98] sm:$0xff] }
 0x288   : > { %2056 = vst.msk [vmem:[#allocation2 + $0xa0] sm:$0xff] %vm2035_vm9, %v1968_v55  ;;  %2057 = vst.msk [vmem:[#allocation2 + $0xa8] sm:$0xff] %vm2035_vm9, %v1970_v12  ;;  %5284 = vmatprep.mubr.msk.f32.mxu0 %vm7959_vm10, %v2090_v23 }
 0x289   : > { %5285 = vmatmul.mubr.msk.f32.gmra.mrb[18].mxu0 %vm7959_vm10, %v2091_v24 }
 0x28b   : > { %v1755_v39 = vpop.permute.xlu0 %1754  ;;  %v1757_v40 = vpop.permute.xlu1 %1756 }
 0x28c   : > { %1841 = vst.msk [vmem:[#allocation2 + $0xb0] sm:$0xff] %vm1818_vm8, %v1755_v39  ;;  %1842 = vst.msk [vmem:[#allocation2 + $0xb8] sm:$0xff] %vm1818_vm8, %v1757_v40 }
 0x28f   : > { %v1972_v62 = vpop.permute.xlu0 %1971  ;;  %v1974_v63 = vpop.permute.xlu1 %1973  ;;  %v2092_v54 = vld [vmem:[#allocation2 + $0xa0] sm:$0xff]  ;;  %v2093_v16 = vld [vmem:[#allocation2 + $0xa8] sm:$0xff] }
 0x290   : > { %2058 = vst.msk [vmem:[#allocation2 + $0xb0] sm:$0xff] %vm2035_vm9, %v1972_v62  ;;  %2059 = vst.msk [vmem:[#allocation2 + $0xb8] sm:$0xff] %vm2035_vm9, %v1974_v63  ;;  %5287 = vmatprep.mubr.msk.f32.mxu0 %vm7959_vm10, %v2092_v54 }
 0x291   : > { %5288 = vmatmul.mubr.msk.f32.gmra.mrb[20].mxu0 %vm7959_vm10, %v2093_v16 }
 0x293   : > { %v1759_v13 = vpop.permute.xlu0 %1758  ;;  %v1761_v17 = vpop.permute.xlu1 %1760 }
 0x294   : > { %1843 = vst.msk [vmem:[#allocation2 + $0xc0] sm:$0xff] %vm1818_vm8, %v1759_v13  ;;  %1844 = vst.msk [vmem:[#allocation2 + $0xc8] sm:$0xff] %vm1818_vm8, %v1761_v17 }
 0x297   : > { %v1976_v18 = vpop.permute.xlu0 %1975  ;;  %v1978_v19 = vpop.permute.xlu1 %1977  ;;  %v2094_v20 = vld [vmem:[#allocation2 + $0xb0] sm:$0xff]  ;;  %v2095_v25 = vld [vmem:[#allocation2 + $0xb8] sm:$0xff] }
 0x298   : > { %2060 = vst.msk [vmem:[#allocation2 + $0xc0] sm:$0xff] %vm2035_vm9, %v1976_v18  ;;  %2061 = vst.msk [vmem:[#allocation2 + $0xc8] sm:$0xff] %vm2035_vm9, %v1978_v19  ;;  %5290 = vmatprep.mubr.msk.f32.mxu0 %vm7959_vm10, %v2094_v20 }
 0x299   : > { %5291 = vmatmul.mubr.msk.f32.gmra.mrb[22].mxu0 %vm7959_vm10, %v2095_v25 }
 0x29b   : > { %v1763_v50 = vpop.permute.xlu0 %1762  ;;  %v1765_v58 = vpop.permute.xlu1 %1764 }
 0x29c   : > { %1845 = vst.msk [vmem:[#allocation2 + $0xd0] sm:$0xff] %vm1818_vm8, %v1763_v50  ;;  %1846 = vst.msk [vmem:[#allocation2 + $0xd8] sm:$0xff] %vm1818_vm8, %v1765_v58 }
 0x29f   : > { %v1980_v26 = vpop.permute.xlu0 %1979  ;;  %v1982_v27 = vpop.permute.xlu1 %1981  ;;  %v2096_v30 = vld [vmem:[#allocation2 + $0xc0] sm:$0xff]  ;;  %v2097_v31 = vld [vmem:[#allocation2 + $0xc8] sm:$0xff] }
 0x2a0   : > { %2062 = vst.msk [vmem:[#allocation2 + $0xd0] sm:$0xff] %vm2035_vm9, %v1980_v26  ;;  %2063 = vst.msk [vmem:[#allocation2 + $0xd8] sm:$0xff] %vm2035_vm9, %v1982_v27  ;;  %5293 = vmatprep.mubr.msk.f32.mxu0 %vm7959_vm10, %v2096_v30 }
 0x2a1   : > { %5294 = vmatmul.mubr.msk.f32.gmra.mrb[24].mxu0 %vm7959_vm10, %v2097_v31 }
 0x2a3   : > { %v1767_v32 = vpop.permute.xlu0 %1766  ;;  %v1769_v33 = vpop.permute.xlu1 %1768 }
 0x2a4   : > { %1847 = vst.msk [vmem:[#allocation2 + $0xe0] sm:$0xff] %vm1818_vm8, %v1767_v32  ;;  %1848 = vst.msk [vmem:[#allocation2 + $0xe8] sm:$0xff] %vm1818_vm8, %v1769_v33 }
 0x2a7   : > { %v1984_v36 = vpop.permute.xlu0 %1983  ;;  %v1986_v1 = vpop.permute.xlu1 %1985  ;;  %v2098_v3 = vld [vmem:[#allocation2 + $0xd0] sm:$0xff]  ;;  %v2099_v4 = vld [vmem:[#allocation2 + $0xd8] sm:$0xff] }
 0x2a8   : > { %2064 = vst.msk [vmem:[#allocation2 + $0xe0] sm:$0xff] %vm2035_vm9, %v1984_v36  ;;  %2065 = vst.msk [vmem:[#allocation2 + $0xe8] sm:$0xff] %vm2035_vm9, %v1986_v1  ;;  %5296 = vmatprep.mubr.msk.f32.mxu0 %vm7959_vm10, %v2098_v3 }
 0x2a9   : > { %5297 = vmatmul.mubr.msk.f32.gmra.mrb[26].mxu0 %vm7959_vm10, %v2099_v4 }
 0x2ab   : > { %v1771_v5 = vpop.permute.xlu0 %1770  ;;  %v1773_v6 = vpop.permute.xlu1 %1772 }
 0x2ac   : > { %1849 = vst.msk [vmem:[#allocation2 + $0xf0] sm:$0xff] %vm1818_vm8, %v1771_v5  ;;  %1850 = vst.msk [vmem:[#allocation2 + $0xf8] sm:$0xff] %vm1818_vm8, %v1773_v6 }
 0x2af   : > { %v1988_v7 = vpop.permute.xlu0 %1987  ;;  %v1990_v8 = vpop.permute.xlu1 %1989  ;;  %v2100_v9 = vld [vmem:[#allocation2 + $0xe0] sm:$0xff]  ;;  %v2101_v10 = vld [vmem:[#allocation2 + $0xe8] sm:$0xff] }
 0x2b0   : > { %2066 = vst.msk [vmem:[#allocation2 + $0xf0] sm:$0xff] %vm2035_vm9, %v1988_v7  ;;  %2067 = vst.msk [vmem:[#allocation2 + $0xf8] sm:$0xff] %vm2035_vm9, %v1990_v8  ;;  %5299 = vmatprep.mubr.msk.f32.mxu0 %vm7959_vm10, %v2100_v9 }
 0x2b1   : > { %5300 = vmatmul.mubr.msk.f32.gmra.mrb[28].mxu0 %vm7959_vm10, %v2101_v10 }
 0x2b3   : > { %v1775_v11 = vpop.permute.xlu0 %1774 }
 0x2b4   : > { %1851 = vst.msk [vmem:[#allocation2 + $0x100] sm:$0xff] %vm1818_vm8, %v1775_v11  ;;  %v1777_v14 = vpop.permute.xlu1 %1776 }
 0x2b5   : > { %1852 = vst.msk [vmem:[#allocation2 + $0x108] sm:$0xff] %vm1818_vm8, %v1777_v14 }
 0x2b7   : > { %v1992_v15 = vpop.permute.xlu0 %1991  ;;  %v2102_v21 = vld [vmem:[#allocation2 + $0xf0] sm:$0xff]  ;;  %v2103_v22 = vld [vmem:[#allocation2 + $0xf8] sm:$0xff] }
 0x2b8   : > { %2068 = vst.msk [vmem:[#allocation2 + $0x100] sm:$0xff] %vm2035_vm9, %v1992_v15  ;;  %v1994_v28 = vpop.permute.xlu1 %1993  ;;  %5302 = vmatprep.mubr.msk.f32.mxu0 %vm7959_vm10, %v2102_v21 }
 0x2b9   : > { %2069 = vst.msk [vmem:[#allocation2 + $0x108] sm:$0xff] %vm2035_vm9, %v1994_v28  ;;  %5303 = vmatmul.mubr.msk.f32.gmra.mrb[30].mxu0 %vm7959_vm10, %v2103_v22 }
 0x2bb   : > { %v1562_v29 = vpop.permute.xlu0 %1561 }
 0x2bc   : > { %1636 = vst.msk [vmem:[#allocation2 + $0x110] sm:$0xff] %vm1601_vm7, %v1562_v29  ;;  %v1564_v34 = vpop.permute.xlu1 %1563 }
 0x2bd   : > { %1637 = vst.msk [vmem:[#allocation2 + $0x118] sm:$0xff] %vm1601_vm7, %v1564_v34 }
 0x2bf   : > { %v1779_v35 = vpop.permute.xlu0 %1778  ;;  %v2104_v41 = vld [vmem:[#allocation2 + $0x100] sm:$0xff] }
 0x2c0   : > { %1853 = vst.msk [vmem:[#allocation2 + $0x110] sm:$0xff] %vm1818_vm8, %v1779_v35  ;;  %v1781_v46 = vpop.permute.xlu1 %1780  ;;  %5305 = vmatprep.mubr.msk.f32.mxu0 %vm7959_vm10, %v2104_v41  ;;  %v2105_v42 = vld [vmem:[#allocation2 + $0x108] sm:$0xff] }
 0x2c1   : > { %1854 = vst.msk [vmem:[#allocation2 + $0x118] sm:$0xff] %vm1818_vm8, %v1781_v46  ;;  %5306 = vmatmul.mubr.msk.f32.gmra.mrb[32].mxu0 %vm7959_vm10, %v2105_v42 }
 0x2c3   : > { %v1996_v43 = vpop.permute.xlu0 %1995 }
 0x2c4   : > { %2070 = vst.msk [vmem:[#allocation2 + $0x110] sm:$0xff] %vm2035_vm9, %v1996_v43  ;;  %v1998_v44 = vpop.permute.xlu1 %1997 }
 0x2c5   : > { %2071 = vst.msk [vmem:[#allocation2 + $0x118] sm:$0xff] %vm2035_vm9, %v1998_v44 }
 0x2cb   : > { %v2106_v45 = vld [vmem:[#allocation2 + $0x110] sm:$0xff] }
 0x2cc   : > { %5308 = vmatprep.mubr.msk.f32.mxu0 %vm7959_vm10, %v2106_v45  ;;  %v2107_v48 = vld [vmem:[#allocation2 + $0x118] sm:$0xff] }
 0x2cd   : > { %5309 = vmatmul.mubr.msk.f32.gmra.mrb[34].mxu0 %vm7959_vm10, %v2107_v48 }
 0x314   : > { %v5259_v52 = vpop.f32.mrb[0].mxu0 }
 0x315   : > { %v2305_v53 = vadd.f32 %v5259_v52, %v6816_v49  ;;  %v2299_v56 = vpop.f32.mrb[1].mxu0 }
 0x316   : > { %v2300_v57 = vadd.f32 %v6816_v49, %v2299_v56 }
 0x317   : > { %vm2479_vm11 = vcmp.gt.f32.partialorder %v2305_v53, 0.0  ;;  %v2515_v47 = vmul.f32 0.01, %v2305_v53 }
 0x318   : > { %vm2478_vm13 = vcmp.gt.f32.partialorder %v2300_v57, 0.0  ;;  %v2514_v37 = vmul.f32 0.01, %v2300_v57 }
 0x319   : > { %v2551_v60 = vsel %vm2479_vm11, %v2305_v53, %v2515_v47 }
 0x31a   : > { %2587 = vst.msk [vmem:[#allocation3 + $0x9] sm:$0xff] %vm297_vm0, %v2551_v60  ;;  %v2550_v61 = vsel %vm2478_vm13, %v2300_v57, %v2514_v37 }
 0x31b   : > { %2642 = vst.msk [vmem:[#allocation3 + $0xb] sm:$0x40] %vm2641_vm12, %v2551_v60 }
 0x31c   : > { %2586 = vst.msk [vmem:[#allocation3 + $0x1] sm:$0xff] %vm297_vm0, %v2550_v61  ;;  %v5262_v38 = vpop.f32.mrb[2].mxu0 }
 0x31d   : > { %2623 = vst.msk [vmem:[#allocation3 - $0x1] sm:$0x2] %vm2622_vm14, %v2550_v61  ;;  %v2315_v51 = vadd.f32 %v5262_v38, %v6816_v49  ;;  %v2309_v0 = vpop.f32.mrb[3].mxu0 }
 0x31e   : > { %v2310_v2 = vadd.f32 %v6816_v49, %v2309_v0 }
 0x31f   : > { %vm2481_vm15 = vcmp.gt.f32.partialorder %v2315_v51, 0.0  ;;  %v2517_v59 = vmul.f32 0.01, %v2315_v51 }
 0x320   : > { %vm2480_vm10 = vcmp.gt.f32.partialorder %v2310_v2, 0.0  ;;  %v2516_v55 = vmul.f32 0.01, %v2310_v2 }
 0x321   : > { %v2553_v12 = vsel %vm2481_vm15, %v2315_v51, %v2517_v59  ;;  %vm2670_vm15 = vcmask 25600  }
 0x322   : > { %2589 = vst.msk [vmem:[#allocation3 + $0x21] sm:$0xff] %vm297_vm0, %v2553_v12  ;;  %v2552_v23 = vsel %vm2480_vm10, %v2310_v2, %v2516_v55 }
 0x323   : > { %2643 = vst.msk [vmem:[#allocation3 + $0x23] sm:$0x40] %vm2641_vm12, %v2553_v12 }
 0x324   : > { %2588 = vst.msk [vmem:[#allocation3 + $0x19] sm:$0xff] %vm297_vm0, %v2552_v23  ;;  %v5265_v24 = vpop.f32.mrb[4].mxu0 }
 0x325   : > { %2624 = vst.msk [vmem:[#allocation3 + $0x17] sm:$0x2] %vm2622_vm14, %v2552_v23  ;;  %v2325_v39 = vadd.f32 %v5265_v24, %v6816_v49  ;;  %v2319_v40 = vpop.f32.mrb[5].mxu0 }
 0x326   : > { %v2320_v62 = vadd.f32 %v6816_v49, %v2319_v40 }
 0x327   : > { %vm2483_vm11 = vcmp.gt.f32.partialorder %v2325_v39, 0.0  ;;  %v2519_v63 = vmul.f32 0.01, %v2325_v39 }
 0x328   : > { %vm2482_vm13 = vcmp.gt.f32.partialorder %v2320_v62, 0.0  ;;  %v2518_v54 = vmul.f32 0.01, %v2320_v62 }
 0x329   : > { %v2555_v16 = vsel %vm2483_vm11, %v2325_v39, %v2519_v63  ;;  %v6881_v35 = vld [vmem:[#allocation3 + $0x21] sm:$0xff] }
 0x32a   : > { %2591 = vst.msk [vmem:[#allocation3 + $0x39] sm:$0xff] %vm297_vm0, %v2555_v16  ;;  %v2554_v13 = vsel %vm2482_vm13, %v2320_v62, %v2518_v54 }
 0x32b   : > { %2644 = vst.msk [vmem:[#allocation3 + $0x3b] sm:$0x40] %vm2641_vm12, %v2555_v16  ;;  %v6834_v17 = vld [vmem:[#allocation3 + $0x20] sm:$0xff] }
 0x32c   : > { %2590 = vst.msk [vmem:[#allocation3 + $0x31] sm:$0xff] %vm297_vm0, %v2554_v13  ;;  %2715 = vst.msk [vmem:[#allocation2 + $0x18] sm:$0xff] %vm297_vm0, %v6834_v17  ;;  %v6840_v18 = vld [vmem:[#allocation3 + $0x18] sm:$0xff]  ;;  %v5268_v19 = vpop.f32.mrb[6].mxu0 }
 0x32d   : > { %2625 = vst.msk [vmem:[#allocation3 + $0x2f] sm:$0x2] %vm2622_vm14, %v2554_v13  ;;  %v2335_v20 = vadd.f32 %v5268_v19, %v6816_v49  ;;  %v2329_v25 = vpop.f32.mrb[7].mxu0  ;;  %v6883_v41 = vld [vmem:[#allocation3 + $0x19] sm:$0xff] }
 0x32e   : > { %2714 = vst.msk [vmem:[#allocation2 + $0x10] sm:$0xff] %vm297_vm0, %v6840_v18  ;;  %v2330_v50 = vadd.f32 %v6816_v49, %v2329_v25 }
 0x32f   : > { %vm2485_vm10 = vcmp.gt.f32.partialorder %v2335_v20, 0.0  ;;  %v2521_v58 = vmul.f32 0.01, %v2335_v20 }
 0x330   : > { %vm2484_vm11 = vcmp.gt.f32.partialorder %v2330_v50, 0.0  ;;  %v2520_v26 = vmul.f32 0.01, %v2330_v50 }
 0x331   : > { %v2557_v30 = vsel %vm2485_vm10, %v2335_v20, %v2521_v58  ;;  %v6893_v45 = vld [vmem:[#allocation3 + $0x39] sm:$0xff] }
 0x332   : > { %v2667_v27 = vld [vmem:[#allocation3 + $0x40] sm:$0x3]  ;;  %2593 = vst.msk [vmem:[#allocation3 + $0x51] sm:$0xff] %vm297_vm0, %v2557_v30  ;;  %v2556_v33 = vsel %vm2484_vm11, %v2330_v50, %v2520_v26 }
 0x333   : > { %v6848_v32 = vld [vmem:[#allocation3 + $0x38] sm:$0xff]  ;;  %2645 = vst.msk [vmem:[#allocation3 + $0x53] sm:$0x40] %vm2641_vm12, %v2557_v30 }
 0x334   : > { %v6846_v31 = vld [vmem:[#allocation3 + $0x30] sm:$0xff]  ;;  %2671 = vst.msk [vmem:[#allocation3 + $0x10] sm:$0x3] %vm2670_vm15, %v2667_v27  ;;  %v5271_v36 = vpop.f32.mrb[8].mxu0 }
 0x335   : > { %2668 = vst.msk [vmem:[#allocation3] sm:$0xff] %vm297_vm0, %v6846_v31  ;;  %2669 = vst.msk [vmem:[#allocation3 + $0x8] sm:$0xff] %vm297_vm0, %v6848_v32  ;;  %v2345_v1 = vadd.f32 %v5271_v36, %v6816_v49  ;;  %v2339_v3 = vpop.f32.mrb[9].mxu0  ;;  %v6895_v48 = vld [vmem:[#allocation3 + $0x31] sm:$0xff] }
 0x336   : > { %2592 = vst.msk [vmem:[#allocation3 + $0x49] sm:$0xff] %vm297_vm0, %v2556_v33  ;;  %2717 = vst.msk [vmem:[#allocation2 + $0x28] sm:$0xff] %vm297_vm0, %v6848_v32  ;;  %v2340_v4 = vadd.f32 %v6816_v49, %v2339_v3 }
 0x337   : > { %2626 = vst.msk [vmem:[#allocation3 + $0x47] sm:$0x2] %vm2622_vm14, %v2556_v33  ;;  %vm2487_vm13 = vcmp.gt.f32.partialorder %v2345_v1, 0.0  ;;  %v2523_v5 = vmul.f32 0.01, %v2345_v1 }
 0x338   : > { %2716 = vst.msk [vmem:[#allocation2 + $0x20] sm:$0xff] %vm297_vm0, %v6846_v31  ;;  %vm2486_vm10 = vcmp.gt.f32.partialorder %v2340_v4, 0.0  ;;  %v2522_v6 = vmul.f32 0.01, %v2340_v4 }
 0x339   : > { %v2559_v7 = vsel %vm2487_vm13, %v2345_v1, %v2523_v5  ;;  %v6913_v60 = vld [vmem:[#allocation3 + $0x51] sm:$0xff] }
 0x33a   : > { %2595 = vst.msk [vmem:[#allocation3 + $0x69] sm:$0xff] %vm297_vm0, %v2559_v7  ;;  %v2558_v8 = vsel %vm2486_vm10, %v2340_v4, %v2522_v6 }
 0x33b   : > { %2646 = vst.msk [vmem:[#allocation3 + $0x6b] sm:$0x40] %vm2641_vm12, %v2559_v7 }
 0x33c   : > { %v2745_v9 = vld [vmem:[#allocation3 + $0x9] sm:$0xff]  ;;  %v2744_v10 = vld [vmem:[#allocation3 + $0x1] sm:$0xff]  ;;  %2594 = vst.msk [vmem:[#allocation3 + $0x61] sm:$0xff] %vm297_vm0, %v2558_v8  ;;  %v5274_v11 = vpop.f32.mrb[10].mxu0 }
 0x33d   : > { %2627 = vst.msk [vmem:[#allocation3 + $0x5f] sm:$0x2] %vm2622_vm14, %v2558_v8  ;;  %2810 = vrot.lane.b32.xlu1 %v2745_v9, %s5442_s26  ;;  %2808 = vrot.lane.b32.xlu0 %v2744_v10, %s5442_s26  ;;  %v2681_v14 = vld [vmem:[#allocation3 + $0x8] sm:$0xff]  ;;  %v2680_v15 = vld [vmem:[#allocation3] sm:$0xff]  ;;  %v6871_v21 = vld [vmem:[#allocation3 + $0x50] sm:$0xff]  ;;  %v2355_v22 = vadd.f32 %v5274_v11, %v6816_v49  ;;  %v2349_v28 = vpop.f32.mrb[11].mxu0 }
 0x33e   : > { %2713 = vst.msk [vmem:[#allocation2 + $0x8] sm:$0xff] %vm297_vm0, %v2681_v14  ;;  %2712 = vst.msk [vmem:[#allocation2] sm:$0xff] %vm297_vm0, %v2680_v15  ;;  %v6878_v29 = vld [vmem:[#allocation3 + $0x48] sm:$0xff]  ;;  %v2350_v34 = vadd.f32 %v6816_v49, %v2349_v28 }
 0x33f   : > { %2719 = vst.msk [vmem:[#allocation2 + $0x38] sm:$0xff] %vm297_vm0, %v6871_v21  ;;  %2718 = vst.msk [vmem:[#allocation2 + $0x30] sm:$0xff] %vm297_vm0, %v6878_v29  ;;  %vm2489_vm11 = vcmp.gt.f32.partialorder %v2355_v22, 0.0  ;;  %v2525_v46 = vmul.f32 0.01, %v2355_v22  ;;  %v6915_v61 = vld [vmem:[#allocation3 + $0x49] sm:$0xff] }
 0x340   : > { %vm2488_vm13 = vcmp.gt.f32.partialorder %v2350_v34, 0.0  ;;  %v2524_v42 = vmul.f32 0.01, %v2350_v34 }
 0x341   : > { %2814 = vrot.lane.b32.xlu1 %v6881_v35, %s5442_s26  ;;  %2812 = vrot.lane.b32.xlu0 %v6883_v41, %s5442_s26  ;;  %v2561_v43 = vsel %vm2489_vm11, %v2355_v22, %v2525_v46  ;;  %v2753_v59 = vld [vmem:[#allocation3 + $0x69] sm:$0xff] }
 0x342   : > { %2597 = vst.msk [vmem:[#allocation3 + $0x81] sm:$0xff] %vm297_vm0, %v2561_v43  ;;  %v2560_v44 = vsel %vm2488_vm13, %v2350_v34, %v2524_v42 }
 0x343   : > { %2647 = vst.msk [vmem:[#allocation3 + $0x83] sm:$0x40] %vm2641_vm12, %v2561_v43  ;;  %v6897_v52 = vld [vmem:[#allocation3 + $0x68] sm:$0xff] }
 0x344   : > { %2596 = vst.msk [vmem:[#allocation3 + $0x79] sm:$0xff] %vm297_vm0, %v2560_v44  ;;  %2721 = vst.msk [vmem:[#allocation2 + $0x48] sm:$0xff] %vm297_vm0, %v6897_v52  ;;  %v6907_v53 = vld [vmem:[#allocation3 + $0x60] sm:$0xff]  ;;  %v5277_v56 = vpop.f32.mrb[12].mxu0 }
 0x345   : > { %2628 = vst.msk [vmem:[#allocation3 + $0x77] sm:$0x2] %vm2622_vm14, %v2560_v44  ;;  %2818 = vrot.lane.b32.xlu1 %v6893_v45, %s5442_s26  ;;  %2816 = vrot.lane.b32.xlu0 %v6895_v48, %s5442_s26  ;;  %v2365_v57 = vadd.f32 %v5277_v56, %v6816_v49  ;;  %v2359_v47 = vpop.f32.mrb[13].mxu0  ;;  %v2752_v55 = vld [vmem:[#allocation3 + $0x61] sm:$0xff] }
 0x346   : > { %2720 = vst.msk [vmem:[#allocation2 + $0x40] sm:$0xff] %vm297_vm0, %v6907_v53  ;;  %v2360_v37 = vadd.f32 %v6816_v49, %v2359_v47 }
 0x347   : > { %vm2491_vm10 = vcmp.gt.f32.partialorder %v2365_v57, 0.0  ;;  %v2527_v38 = vmul.f32 0.01, %v2365_v57 }
 0x348   : > { %vm2490_vm11 = vcmp.gt.f32.partialorder %v2360_v37, 0.0  ;;  %v2526_v51 = vmul.f32 0.01, %v2360_v37 }
 0x349   : > { %2822 = vrot.lane.b32.xlu1 %v6913_v60, %s5442_s26  ;;  %2820 = vrot.lane.b32.xlu0 %v6915_v61, %s5442_s26  ;;  %v2563_v0 = vsel %vm2491_vm10, %v2365_v57, %v2527_v38  ;;  %v2755_v63 = vld [vmem:[#allocation3 + $0x81] sm:$0xff] }
 0x34a   : > { %2599 = vst.msk [vmem:[#allocation3 + $0x99] sm:$0xff] %vm297_vm0, %v2563_v0  ;;  %v2562_v2 = vsel %vm2490_vm11, %v2360_v37, %v2526_v51 }
 0x34b   : > { %2648 = vst.msk [vmem:[#allocation3 + $0x9b] sm:$0x40] %vm2641_vm12, %v2563_v0  ;;  %v6923_v12 = vld [vmem:[#allocation3 + $0x80] sm:$0xff] }
 0x34c   : > { %2598 = vst.msk [vmem:[#allocation3 + $0x91] sm:$0xff] %vm297_vm0, %v2562_v2  ;;  %2723 = vst.msk [vmem:[#allocation2 + $0x58] sm:$0xff] %vm297_vm0, %v6923_v12  ;;  %v6931_v23 = vld [vmem:[#allocation3 + $0x78] sm:$0xff]  ;;  %v5280_v24 = vpop.f32.mrb[14].mxu0 }
 0x34d   : > { %2629 = vst.msk [vmem:[#allocation3 + $0x8f] sm:$0x2] %vm2622_vm14, %v2562_v2  ;;  %2826 = vrot.lane.b32.xlu1 %v2753_v59, %s5442_s26  ;;  %2824 = vrot.lane.b32.xlu0 %v2752_v55, %s5442_s26  ;;  %v2375_v39 = vadd.f32 %v5280_v24, %v6816_v49  ;;  %v2369_v40 = vpop.f32.mrb[15].mxu0  ;;  %v2754_v54 = vld [vmem:[#allocation3 + $0x79] sm:$0xff] }
 0x34e   : > { %2722 = vst.msk [vmem:[#allocation2 + $0x50] sm:$0xff] %vm297_vm0, %v6931_v23  ;;  %v2370_v62 = vadd.f32 %v6816_v49, %v2369_v40 }
 0x34f   : > { %vm2493_vm13 = vcmp.gt.f32.partialorder %v2375_v39, 0.0  ;;  %v2529_v16 = vmul.f32 0.01, %v2375_v39 }
 0x350   : > { %vm2492_vm10 = vcmp.gt.f32.partialorder %v2370_v62, 0.0  ;;  %v2528_v13 = vmul.f32 0.01, %v2370_v62 }
 0x351   : > { %2830 = vrot.lane.b32.xlu1 %v2755_v63, %s5442_s26  ;;  %2828 = vrot.lane.b32.xlu0 %v2754_v54, %s5442_s26  ;;  %v2565_v19 = vsel %vm2493_vm13, %v2375_v39, %v2529_v16  ;;  %v2757_v20 = vld [vmem:[#allocation3 + $0x99] sm:$0xff] }
 0x352   : > { %2601 = vst.msk [vmem:[#allocation3 + $0xb1] sm:$0xff] %vm297_vm0, %v2565_v19  ;;  %v2564_v25 = vsel %vm2492_vm10, %v2370_v62, %v2528_v13 }
 0x353   : > { %2649 = vst.msk [vmem:[#allocation3 + $0xb3] sm:$0x40] %vm2641_vm12, %v2565_v19  ;;  %v2756_v50 = vld [vmem:[#allocation3 + $0x91] sm:$0xff] }
 0x354   : > { %v6941_v58 = vld [vmem:[#allocation3 + $0x98] sm:$0xff]  ;;  %2600 = vst.msk [vmem:[#allocation3 + $0xa9] sm:$0xff] %vm297_vm0, %v2564_v25  ;;  %v6949_v26 = vld [vmem:[#allocation3 + $0x90] sm:$0xff]  ;;  %v5283_v27 = vpop.f32.mrb[16].mxu0 }
 0x355   : > { %2630 = vst.msk [vmem:[#allocation3 + $0xa7] sm:$0x2] %vm2622_vm14, %v2564_v25  ;;  %2834 = vrot.lane.b32.xlu1 %v2757_v20, %s5442_s26  ;;  %2832 = vrot.lane.b32.xlu0 %v2756_v50, %s5442_s26  ;;  %v2385_v30 = vadd.f32 %v5283_v27, %v6816_v49  ;;  %v2379_v33 = vpop.f32.mrb[17].mxu0 }
 0x356   : > { %2725 = vst.msk [vmem:[#allocation2 + $0x68] sm:$0xff] %vm297_vm0, %v6941_v58  ;;  %2724 = vst.msk [vmem:[#allocation2 + $0x60] sm:$0xff] %vm297_vm0, %v6949_v26  ;;  %v2380_v36 = vadd.f32 %v6816_v49, %v2379_v33 }
 0x357   : > { %vm2495_vm11 = vcmp.gt.f32.partialorder %v2385_v30, 0.0  ;;  %v2531_v1 = vmul.f32 0.01, %v2385_v30 }
 0x358   : > { %vm2494_vm13 = vcmp.gt.f32.partialorder %v2380_v36, 0.0  ;;  %v2530_v3 = vmul.f32 0.01, %v2380_v36 }
 0x359   : > { %v2567_v4 = vsel %vm2495_vm11, %v2385_v30, %v2531_v1  ;;  %v2759_v5 = vld [vmem:[#allocation3 + $0xb1] sm:$0xff] }
 0x35a   : > { %2603 = vst.msk [vmem:[#allocation3 + $0xc9] sm:$0xff] %vm297_vm0, %v2567_v4  ;;  %v2566_v6 = vsel %vm2494_vm13, %v2380_v36, %v2530_v3  ;;  %2838 = vrot.lane.b32.xlu1 %v2759_v5, %s5442_s26 }
 0x35b   : > { %2650 = vst.msk [vmem:[#allocation3 + $0xcb] sm:$0x40] %vm2641_vm12, %v2567_v4  ;;  %v2758_v7 = vld [vmem:[#allocation3 + $0xa9] sm:$0xff] }
 0x35c   : > { %v6958_v8 = vld [vmem:[#allocation3 + $0xb0] sm:$0xff]  ;;  %2602 = vst.msk [vmem:[#allocation3 + $0xc1] sm:$0xff] %vm297_vm0, %v2566_v6  ;;  %2836 = vrot.lane.b32.xlu0 %v2758_v7, %s5442_s26  ;;  %v6965_v9 = vld [vmem:[#allocation3 + $0xa8] sm:$0xff]  ;;  %v5286_v10 = vpop.f32.mrb[18].mxu0 }
 0x35d   : > { %2631 = vst.msk [vmem:[#allocation3 + $0xbf] sm:$0x2] %vm2622_vm14, %v2566_v6  ;;  %v2395_v11 = vadd.f32 %v5286_v10, %v6816_v49  ;;  %v2389_v14 = vpop.f32.mrb[19].mxu0 }
 0x35e   : > { %2727 = vst.msk [vmem:[#allocation2 + $0x78] sm:$0xff] %vm297_vm0, %v6958_v8  ;;  %2726 = vst.msk [vmem:[#allocation2 + $0x70] sm:$0xff] %vm297_vm0, %v6965_v9  ;;  %v2390_v15 = vadd.f32 %v6816_v49, %v2389_v14 }
 0x35f   : > { %vm2497_vm10 = vcmp.gt.f32.partialorder %v2395_v11, 0.0  ;;  %v2533_v22 = vmul.f32 0.01, %v2395_v11 }
 0x360   : > { %vm2496_vm11 = vcmp.gt.f32.partialorder %v2390_v15, 0.0  ;;  %v2532_v28 = vmul.f32 0.01, %v2390_v15 }
 0x361   : > { %v2569_v34 = vsel %vm2497_vm10, %v2395_v11, %v2533_v22  ;;  %v2761_v46 = vld [vmem:[#allocation3 + $0xc9] sm:$0xff] }
 0x362   : > { %2605 = vst.msk [vmem:[#allocation3 + $0xe1] sm:$0xff] %vm297_vm0, %v2569_v34  ;;  %v2568_v42 = vsel %vm2496_vm11, %v2390_v15, %v2532_v28  ;;  %2842 = vrot.lane.b32.xlu1 %v2761_v46, %s5442_s26 }
 0x363   : > { %2651 = vst.msk [vmem:[#allocation3 + $0xe3] sm:$0x40] %vm2641_vm12, %v2569_v34  ;;  %v2760_v43 = vld [vmem:[#allocation3 + $0xc1] sm:$0xff] }
 0x364   : > { %v6974_v44 = vld [vmem:[#allocation3 + $0xc8] sm:$0xff]  ;;  %2604 = vst.msk [vmem:[#allocation3 + $0xd9] sm:$0xff] %vm297_vm0, %v2568_v42  ;;  %2840 = vrot.lane.b32.xlu0 %v2760_v43, %s5442_s26  ;;  %v6981_v56 = vld [vmem:[#allocation3 + $0xc0] sm:$0xff]  ;;  %v5289_v57 = vpop.f32.mrb[20].mxu0 }
 0x365   : > { %2632 = vst.msk [vmem:[#allocation3 + $0xd7] sm:$0x2] %vm2622_vm14, %v2568_v42  ;;  %v2405_v47 = vadd.f32 %v5289_v57, %v6816_v49  ;;  %v2399_v37 = vpop.f32.mrb[21].mxu0 }
 0x366   : > { %2729 = vst.msk [vmem:[#allocation2 + $0x88] sm:$0xff] %vm297_vm0, %v6974_v44  ;;  %2728 = vst.msk [vmem:[#allocation2 + $0x80] sm:$0xff] %vm297_vm0, %v6981_v56  ;;  %v2400_v38 = vadd.f32 %v6816_v49, %v2399_v37 }
 0x367   : > { %vm2499_vm13 = vcmp.gt.f32.partialorder %v2405_v47, 0.0  ;;  %v2535_v51 = vmul.f32 0.01, %v2405_v47 }
 0x368   : > { %vm2498_vm10 = vcmp.gt.f32.partialorder %v2400_v38, 0.0  ;;  %v2534_v0 = vmul.f32 0.01, %v2400_v38 }
 0x369   : > { %v2571_v2 = vsel %vm2499_vm13, %v2405_v47, %v2535_v51  ;;  %v2763_v59 = vld [vmem:[#allocation3 + $0xe1] sm:$0xff] }
 0x36a   : > { %2607 = vst.msk [vmem:[#allocation3 + $0xf9] sm:$0xff] %vm297_vm0, %v2571_v2  ;;  %v2570_v55 = vsel %vm2498_vm10, %v2400_v38, %v2534_v0  ;;  %2846 = vrot.lane.b32.xlu1 %v2763_v59, %s5442_s26 }
 0x36b   : > { %2652 = vst.msk [vmem:[#allocation3 + $0xfb] sm:$0x40] %vm2641_vm12, %v2571_v2  ;;  %v2762_v24 = vld [vmem:[#allocation3 + $0xd9] sm:$0xff] }
 0x36c   : > { %v6990_v39 = vld [vmem:[#allocation3 + $0xe0] sm:$0xff]  ;;  %2606 = vst.msk [vmem:[#allocation3 + $0xf1] sm:$0xff] %vm297_vm0, %v2570_v55  ;;  %2844 = vrot.lane.b32.xlu0 %v2762_v24, %s5442_s26  ;;  %v6997_v40 = vld [vmem:[#allocation3 + $0xd8] sm:$0xff]  ;;  %v5292_v62 = vpop.f32.mrb[22].mxu0 }
 0x36d   : > { %2633 = vst.msk [vmem:[#allocation3 + $0xef] sm:$0x2] %vm2622_vm14, %v2570_v55  ;;  %v2415_v63 = vadd.f32 %v5292_v62, %v6816_v49  ;;  %v2409_v54 = vpop.f32.mrb[23].mxu0 }
 0x36e   : > { %2731 = vst.msk [vmem:[#allocation2 + $0x98] sm:$0xff] %vm297_vm0, %v6990_v39  ;;  %2730 = vst.msk [vmem:[#allocation2 + $0x90] sm:$0xff] %vm297_vm0, %v6997_v40  ;;  %v2410_v16 = vadd.f32 %v6816_v49, %v2409_v54 }
 0x36f   : > { %vm2501_vm11 = vcmp.gt.f32.partialorder %v2415_v63, 0.0  ;;  %v2537_v13 = vmul.f32 0.01, %v2415_v63 }
 0x370   : > { %vm2500_vm13 = vcmp.gt.f32.partialorder %v2410_v16, 0.0  ;;  %v2536_v19 = vmul.f32 0.01, %v2410_v16 }
 0x371   : > { %v2573_v20 = vsel %vm2501_vm11, %v2415_v63, %v2537_v13  ;;  %v2765_v25 = vld [vmem:[#allocation3 + $0xf9] sm:$0xff] }
 0x372   : > { %2609 = vst.msk [vmem:[#allocation3 + $0x111] sm:$0xff] %vm297_vm0, %v2573_v20  ;;  %v2572_v50 = vsel %vm2500_vm13, %v2410_v16, %v2536_v19  ;;  %2850 = vrot.lane.b32.xlu1 %v2765_v25, %s5442_s26 }
 0x373   : > { %2653 = vst.msk [vmem:[#allocation3 + $0x113] sm:$0x40] %vm2641_vm12, %v2573_v20  ;;  %v2764_v27 = vld [vmem:[#allocation3 + $0xf1] sm:$0xff] }
 0x374   : > { %v7006_v30 = vld [vmem:[#allocation3 + $0xf8] sm:$0xff]  ;;  %2608 = vst.msk [vmem:[#allocation3 + $0x109] sm:$0xff] %vm297_vm0, %v2572_v50  ;;  %2848 = vrot.lane.b32.xlu0 %v2764_v27, %s5442_s26  ;;  %v7013_v33 = vld [vmem:[#allocation3 + $0xf0] sm:$0xff]  ;;  %v5295_v36 = vpop.f32.mrb[24].mxu0 }
 0x375   : > { %2634 = vst.msk [vmem:[#allocation3 + $0x107] sm:$0x2] %vm2622_vm14, %v2572_v50  ;;  %v2425_v1 = vadd.f32 %v5295_v36, %v6816_v49  ;;  %v2419_v3 = vpop.f32.mrb[25].mxu0 }
 0x376   : > { %2733 = vst.msk [vmem:[#allocation2 + $0xa8] sm:$0xff] %vm297_vm0, %v7006_v30  ;;  %2732 = vst.msk [vmem:[#allocation2 + $0xa0] sm:$0xff] %vm297_vm0, %v7013_v33  ;;  %v2420_v4 = vadd.f32 %v6816_v49, %v2419_v3 }
 0x377   : > { %vm2503_vm10 = vcmp.gt.f32.partialorder %v2425_v1, 0.0  ;;  %v2539_v5 = vmul.f32 0.01, %v2425_v1 }
 0x378   : > { %vm2502_vm11 = vcmp.gt.f32.partialorder %v2420_v4, 0.0  ;;  %v2538_v6 = vmul.f32 0.01, %v2420_v4 }
 0x379   : > { %v2575_v7 = vsel %vm2503_vm10, %v2425_v1, %v2539_v5  ;;  %v2767_v10 = vld [vmem:[#allocation3 + $0x111] sm:$0xff] }
 0x37a   : > { %2611 = vst.msk [vmem:[#allocation3 + $0x129] sm:$0xff] %vm297_vm0, %v2575_v7  ;;  %v2574_v11 = vsel %vm2502_vm11, %v2420_v4, %v2538_v6  ;;  %2854 = vrot.lane.b32.xlu1 %v2767_v10, %s5442_s26 }
 0x37b   : > { %2654 = vst.msk [vmem:[#allocation3 + $0x12b] sm:$0x40] %vm2641_vm12, %v2575_v7  ;;  %v2766_v14 = vld [vmem:[#allocation3 + $0x109] sm:$0xff] }
 0x37c   : > { %v7022_v15 = vld [vmem:[#allocation3 + $0x110] sm:$0xff]  ;;  %2610 = vst.msk [vmem:[#allocation3 + $0x121] sm:$0xff] %vm297_vm0, %v2574_v11  ;;  %2852 = vrot.lane.b32.xlu0 %v2766_v14, %s5442_s26  ;;  %v7029_v22 = vld [vmem:[#allocation3 + $0x108] sm:$0xff]  ;;  %v5298_v28 = vpop.f32.mrb[26].mxu0 }
 0x37d   : > { %2635 = vst.msk [vmem:[#allocation3 + $0x11f] sm:$0x2] %vm2622_vm14, %v2574_v11  ;;  %v2435_v34 = vadd.f32 %v5298_v28, %v6816_v49  ;;  %v2429_v46 = vpop.f32.mrb[27].mxu0 }
 0x37e   : > { %2735 = vst.msk [vmem:[#allocation2 + $0xb8] sm:$0xff] %vm297_vm0, %v7022_v15  ;;  %2734 = vst.msk [vmem:[#allocation2 + $0xb0] sm:$0xff] %vm297_vm0, %v7029_v22  ;;  %v2430_v42 = vadd.f32 %v6816_v49, %v2429_v46 }
 0x37f   : > { %vm2505_vm13 = vcmp.gt.f32.partialorder %v2435_v34, 0.0  ;;  %v2541_v43 = vmul.f32 0.01, %v2435_v34 }
 0x380   : > { %vm2504_vm10 = vcmp.gt.f32.partialorder %v2430_v42, 0.0  ;;  %v2540_v57 = vmul.f32 0.01, %v2430_v42 }
 0x381   : > { %v2577_v47 = vsel %vm2505_vm13, %v2435_v34, %v2541_v43  ;;  %v2769_v37 = vld [vmem:[#allocation3 + $0x129] sm:$0xff] }
 0x382   : > { %2613 = vst.msk [vmem:[#allocation3 + $0x141] sm:$0xff] %vm297_vm0, %v2577_v47  ;;  %v2576_v38 = vsel %vm2504_vm10, %v2430_v42, %v2540_v57  ;;  %2858 = vrot.lane.b32.xlu1 %v2769_v37, %s5442_s26 }
 0x383   : > { %2655 = vst.msk [vmem:[#allocation3 + $0x143] sm:$0x40] %vm2641_vm12, %v2577_v47  ;;  %v2768_v51 = vld [vmem:[#allocation3 + $0x121] sm:$0xff] }
 0x384   : > { %v7038_v0 = vld [vmem:[#allocation3 + $0x128] sm:$0xff]  ;;  %2612 = vst.msk [vmem:[#allocation3 + $0x139] sm:$0xff] %vm297_vm0, %v2576_v38  ;;  %2856 = vrot.lane.b32.xlu0 %v2768_v51, %s5442_s26  ;;  %v7045_v2 = vld [vmem:[#allocation3 + $0x120] sm:$0xff]  ;;  %v5301_v59 = vpop.f32.mrb[28].mxu0 }
 0x385   : > { %2636 = vst.msk [vmem:[#allocation3 + $0x137] sm:$0x2] %vm2622_vm14, %v2576_v38  ;;  %v2445_v55 = vadd.f32 %v5301_v59, %v6816_v49  ;;  %v2439_v24 = vpop.f32.mrb[29].mxu0 }
 0x386   : > { %2737 = vst.msk [vmem:[#allocation2 + $0xc8] sm:$0xff] %vm297_vm0, %v7038_v0  ;;  %2736 = vst.msk [vmem:[#allocation2 + $0xc0] sm:$0xff] %vm297_vm0, %v7045_v2  ;;  %v2440_v62 = vadd.f32 %v6816_v49, %v2439_v24 }
 0x387   : > { %vm2507_vm11 = vcmp.gt.f32.partialorder %v2445_v55, 0.0  ;;  %v2543_v63 = vmul.f32 0.01, %v2445_v55 }
 0x388   : > { %vm2506_vm13 = vcmp.gt.f32.partialorder %v2440_v62, 0.0  ;;  %v2542_v54 = vmul.f32 0.01, %v2440_v62 }
 0x389   : > { %v2579_v16 = vsel %vm2507_vm11, %v2445_v55, %v2543_v63  ;;  %v2771_v13 = vld [vmem:[#allocation3 + $0x141] sm:$0xff] }
 0x38a   : > { %2615 = vst.msk [vmem:[#allocation3 + $0x159] sm:$0xff] %vm297_vm0, %v2579_v16  ;;  %v2578_v19 = vsel %vm2506_vm13, %v2440_v62, %v2542_v54  ;;  %2862 = vrot.lane.b32.xlu1 %v2771_v13, %s5442_s26  ;;  %v2937_v62 = vld [vmem:[#allocation3 + $0xa] sm:$0xff]  ;;  %v2936_v63 = vld [vmem:[#allocation3 + $0x2] sm:$0xff] }
 0x38b   : > { %2656 = vst.msk [vmem:[#allocation3 + $0x15b] sm:$0x40] %vm2641_vm12, %v2579_v16  ;;  %v2770_v20 = vld [vmem:[#allocation3 + $0x139] sm:$0xff] }
 0x38c   : > { %v2707_v25 = vld [vmem:[#allocation3 + $0x140] sm:$0xff]  ;;  %2614 = vst.msk [vmem:[#allocation3 + $0x151] sm:$0xff] %vm297_vm0, %v2578_v19  ;;  %2860 = vrot.lane.b32.xlu0 %v2770_v20, %s5442_s26  ;;  %v2706_v50 = vld [vmem:[#allocation3 + $0x138] sm:$0xff]  ;;  %v5304_v27 = vpop.f32.mrb[30].mxu0 }
 0x38d   : > { %2637 = vst.msk [vmem:[#allocation3 + $0x14f] sm:$0x2] %vm2622_vm14, %v2578_v19  ;;  %v2455_v36 = vadd.f32 %v5304_v27, %v6816_v49  ;;  %v2449_v1 = vpop.f32.mrb[31].mxu0  ;;  %v7082_v19 = vld [vmem:[#allocation3 + $0x22] sm:$0xff] }
 0x38e   : > { %2739 = vst.msk [vmem:[#allocation2 + $0xd8] sm:$0xff] %vm297_vm0, %v2707_v25  ;;  %2738 = vst.msk [vmem:[#allocation2 + $0xd0] sm:$0xff] %vm297_vm0, %v2706_v50  ;;  %v2450_v3 = vadd.f32 %v6816_v49, %v2449_v1  ;;  %v7087_v25 = vld [vmem:[#allocation3 + $0x1a] sm:$0xff] }
 0x38f   : > { %vm2509_vm10 = vcmp.gt.f32.partialorder %v2455_v36, 0.0  ;;  %v2545_v4 = vmul.f32 0.01, %v2455_v36  ;;  %v7091_v1 = vld [vmem:[#allocation3 + $0x3a] sm:$0xff] }
 0x390   : > { %vm2508_vm11 = vcmp.gt.f32.partialorder %v2450_v3, 0.0  ;;  %v2544_v5 = vmul.f32 0.01, %v2450_v3 }
 0x391   : > { %v2581_v6 = vsel %vm2509_vm10, %v2455_v36, %v2545_v4  ;;  %v2773_v7 = vld [vmem:[#allocation3 + $0x159] sm:$0xff] }
 0x392   : > { %2617 = vst.msk [vmem:[#allocation3 + $0x171] sm:$0xff] %vm297_vm0, %v2581_v6  ;;  %v2580_v10 = vsel %vm2508_vm11, %v2450_v3, %v2544_v5  ;;  %2866 = vrot.lane.b32.xlu1 %v2773_v7, %s5442_s26  ;;  %v7097_v4 = vld [vmem:[#allocation3 + $0x32] sm:$0xff] }
 0x393   : > { %2657 = vst.msk [vmem:[#allocation3 + $0x173] sm:$0x40] %vm2641_vm12, %v2581_v6  ;;  %v2772_v11 = vld [vmem:[#allocation3 + $0x151] sm:$0xff] }
 0x394   : > { %v2709_v14 = vld [vmem:[#allocation3 + $0x158] sm:$0xff]  ;;  %2616 = vst.msk [vmem:[#allocation3 + $0x169] sm:$0xff] %vm297_vm0, %v2580_v10  ;;  %2864 = vrot.lane.b32.xlu0 %v2772_v11, %s5442_s26  ;;  %v2708_v28 = vld [vmem:[#allocation3 + $0x150] sm:$0xff]  ;;  %v5307_v34 = vpop.f32.mrb[32].mxu0 }
 0x395   : > { %2638 = vst.msk [vmem:[#allocation3 + $0x167] sm:$0x2] %vm2622_vm14, %v2580_v10  ;;  %v2465_v46 = vadd.f32 %v5307_v34, %v6816_v49  ;;  %v2459_v42 = vpop.f32.mrb[33].mxu0  ;;  %v7106_v5 = vld [vmem:[#allocation3 + $0x52] sm:$0xff]  ;;  %v7110_v6 = vld [vmem:[#allocation3 + $0x4a] sm:$0xff] }
 0x396   : > { %2741 = vst.msk [vmem:[#allocation2 + $0xe8] sm:$0xff] %vm297_vm0, %v2709_v14  ;;  %2740 = vst.msk [vmem:[#allocation2 + $0xe0] sm:$0xff] %vm297_vm0, %v2708_v28  ;;  %v2460_v43 = vadd.f32 %v6816_v49, %v2459_v42  ;;  %v7114_v11 = vld [vmem:[#allocation3 + $0x6a] sm:$0xff]  ;;  %v7120_v14 = vld [vmem:[#allocation3 + $0x62] sm:$0xff] }
 0x397   : > { %vm2511_vm13 = vcmp.gt.f32.partialorder %v2465_v46, 0.0  ;;  %v2547_v57 = vmul.f32 0.01, %v2465_v46  ;;  %v7130_v42 = vld [vmem:[#allocation3 + $0x7a] sm:$0xff] }
 0x398   : > { %vm2510_vm10 = vcmp.gt.f32.partialorder %v2460_v43, 0.0  ;;  %v2546_v47 = vmul.f32 0.01, %v2460_v43 }
 0x399   : > { %v2775_v37 = vld [vmem:[#allocation3 + $0x171] sm:$0xff]  ;;  %v2583_v38 = vsel %vm2511_vm13, %v2465_v46, %v2547_v57  ;;  %v7124_v46 = vld [vmem:[#allocation3 + $0x82] sm:$0xff] }
 0x39a   : > { %2870 = vrot.lane.b32.xlu1 %v2775_v37, %s5442_s26  ;;  %2619 = vst.msk [vmem:[#allocation3 + $0x189] sm:$0xff] %vm297_vm0, %v2583_v38  ;;  %v2582_v59 = vsel %vm2510_vm10, %v2460_v43, %v2546_v47  ;;  %v7134_v47 = vld [vmem:[#allocation3 + $0x9a] sm:$0xff]  ;;  %v7140_v37 = vld [vmem:[#allocation3 + $0x92] sm:$0xff] }
 0x39b   : > { %v2774_v51 = vld [vmem:[#allocation3 + $0x169] sm:$0xff]  ;;  %2658 = vst.msk [vmem:[#allocation3 + $0x18b] sm:$0x40] %vm2641_vm12, %v2583_v38 }
 0x39c   : > { %v2673_v55 = vld [vmem:[#allocation3 + $0x168] sm:$0xff]  ;;  %v2674_v24 = vld [vmem:[#allocation3 + $0x170] sm:$0xff]  ;;  %2868 = vrot.lane.b32.xlu0 %v2774_v51, %s5442_s26  ;;  %2618 = vst.msk [vmem:[#allocation3 + $0x181] sm:$0xff] %vm297_vm0, %v2582_v59 }
 0x39d   : > { %2639 = vst.msk [vmem:[#allocation3 + $0x17f] sm:$0x2] %vm2622_vm14, %v2582_v59  ;;  %v7144_v59 = vld [vmem:[#allocation3 + $0xb2] sm:$0xff] }
 0x39e   : > { %2743 = vst.msk [vmem:[#allocation2 + $0xf8] sm:$0xff] %vm297_vm0, %v2674_v24  ;;  %2742 = vst.msk [vmem:[#allocation2 + $0xf0] sm:$0xff] %vm297_vm0, %v2673_v55  ;;  %3002 = vrot.lane.b32.xlu1 %v2937_v62, %s5443_s27 }
 0x3a0   : > { %3000 = vrot.lane.b32.xlu0 %v2936_v63, %s5443_s27  ;;  %v5310_v54 = vpop.f32.mrb[34].mxu0  ;;  %v7154_v63 = vld [vmem:[#allocation3 + $0xca] sm:$0xff] }
 0x3a1   : > { %v2475_v16 = vadd.f32 %v5310_v54, %v6816_v49  ;;  %v2469_v13 = vpop.f32.mrb[35].mxu0  ;;  %v7160_v54 = vld [vmem:[#allocation3 + $0xc2] sm:$0xff] }
 0x3a2   : > { %v2470_v20 = vadd.f32 %v6816_v49, %v2469_v13  ;;  %3006 = vrot.lane.b32.xlu1 %v7082_v19, %s5443_s27  ;;  %v2675_v49 = vld [vmem:[#allocation3 + $0x178] sm:$0x3] }
 0x3a3   : > { %vm2513_vm11 = vcmp.gt.f32.partialorder %v2475_v16, 0.0  ;;  %v2549_v50 = vmul.f32 0.01, %v2475_v16 }
 0x3a4   : > { %3004 = vrot.lane.b32.xlu0 %v7087_v25, %s5443_s27  ;;  %vm2512_vm13 = vcmp.gt.f32.partialorder %v2470_v20, 0.0  ;;  %v2548_v27 = vmul.f32 0.01, %v2470_v20 }
 0x3a5   : > { %v2585_v36 = vsel %vm2513_vm11, %v2475_v16, %v2549_v50  ;;  %v7170_v50 = vld [vmem:[#allocation3 + $0xda] sm:$0xff] }
 0x3a6   : > { %2621 = vst.msk [vmem:[#allocation3 + $0x1a1] sm:$0xff] %vm297_vm0, %v2585_v36  ;;  %v2584_v3 = vsel %vm2512_vm13, %v2470_v20, %v2548_v27  ;;  %3010 = vrot.lane.b32.xlu1 %v7091_v1, %s5443_s27  ;;  %v7164_v20 = vld [vmem:[#allocation3 + $0xe2] sm:$0xff] }
 0x3a7   : > { %2659 = vst.msk [vmem:[#allocation3 + $0x1a3] sm:$0x40] %vm2641_vm12, %v2585_v36 }
 0x3a8   : > { %2679 = vst.msk [vmem:[#allocation3 + $0x1a8] sm:$0x3] %vm2670_vm15, %v2675_v49  ;;  %3008 = vrot.lane.b32.xlu0 %v7097_v4, %s5443_s27  ;;  %v2957_v49 = vld [vmem:[#allocation3 + $0xfa] sm:$0xff] }
 0x3a9   : > { %2620 = vst.msk [vmem:[#allocation3 + $0x199] sm:$0xff] %vm297_vm0, %v2584_v3 }
 0x3aa   : > { %2640 = vst.msk [vmem:[#allocation3 + $0x197] sm:$0x2] %vm2622_vm14, %v2584_v3  ;;  %3014 = vrot.lane.b32.xlu1 %v7106_v5, %s5443_s27  ;;  %v7177_v3 = vld [vmem:[#allocation3 + $0xf2] sm:$0xff] }
 0x3ab   : > { %2677 = vst.msk [vmem:[#allocation3 + $0x198] sm:$0xff] %vm297_vm0, %v2673_v55  ;;  %2678 = vst.msk [vmem:[#allocation3 + $0x1a0] sm:$0xff] %vm297_vm0, %v2674_v24  ;;  %v7150_v55 = vld [vmem:[#allocation3 + $0xaa] sm:$0xff] }
 0x3ac   : > { %3012 = vrot.lane.b32.xlu0 %v7110_v6, %s5443_s27 }
 0x3ae   : > { %3018 = vrot.lane.b32.xlu1 %v7114_v11, %s5443_s27 }
 0x3af   : > { %v2811_v7 = vpop.permute.xlu1 %2810  ;;  %v2809_v10 = vpop.permute.xlu0 %2808 }
 0x3b0   : > { %2905 = vst.msk [vmem:[#allocation2 + $0x8] sm:$0xff] %vm514_vm1, %v2811_v7  ;;  %2904 = vst.msk [vmem:[#allocation2] sm:$0xff] %vm514_vm1, %v2809_v10  ;;  %3016 = vrot.lane.b32.xlu0 %v7120_v14, %s5443_s27  ;;  %v2959_v7 = vld [vmem:[#allocation3 + $0x112] sm:$0xff]  ;;  %v2958_v10 = vld [vmem:[#allocation3 + $0x10a] sm:$0xff] }
 0x3b2   : > { %3022 = vrot.lane.b32.xlu1 %v7124_v46, %s5443_s27 }
 0x3b3   : > { %v2815_v28 = vpop.permute.xlu1 %2814  ;;  %v2813_v34 = vpop.permute.xlu0 %2812 }
 0x3b4   : > { %2907 = vst.msk [vmem:[#allocation2 + $0x18] sm:$0xff] %vm514_vm1, %v2815_v28  ;;  %2906 = vst.msk [vmem:[#allocation2 + $0x10] sm:$0xff] %vm514_vm1, %v2813_v34  ;;  %3020 = vrot.lane.b32.xlu0 %v7130_v42, %s5443_s27 }
 0x3b6   : > { %3026 = vrot.lane.b32.xlu1 %v7134_v47, %s5443_s27 }
 0x3b7   : > { %v2819_v43 = vpop.permute.xlu1 %2818  ;;  %v2817_v57 = vpop.permute.xlu0 %2816 }
 0x3b8   : > { %2909 = vst.msk [vmem:[#allocation2 + $0x28] sm:$0xff] %vm514_vm1, %v2819_v43  ;;  %2908 = vst.msk [vmem:[#allocation2 + $0x20] sm:$0xff] %vm514_vm1, %v2817_v57  ;;  %3024 = vrot.lane.b32.xlu0 %v7140_v37, %s5443_s27  ;;  %v2961_v43 = vld [vmem:[#allocation3 + $0x12a] sm:$0xff]  ;;  %v2960_v57 = vld [vmem:[#allocation3 + $0x122] sm:$0xff] }
 0x3ba   : > { %3030 = vrot.lane.b32.xlu1 %v7144_v59, %s5443_s27 }
 0x3bb   : > { %v2823_v38 = vpop.permute.xlu1 %2822  ;;  %v2821_v51 = vpop.permute.xlu0 %2820 }
 0x3bc   : > { %2911 = vst.msk [vmem:[#allocation2 + $0x38] sm:$0xff] %vm514_vm1, %v2823_v38  ;;  %2910 = vst.msk [vmem:[#allocation2 + $0x30] sm:$0xff] %vm514_vm1, %v2821_v51  ;;  %3028 = vrot.lane.b32.xlu0 %v7150_v55, %s5443_s27  ;;  %v2963_v38 = vld [vmem:[#allocation3 + $0x142] sm:$0xff]  ;;  %v2962_v51 = vld [vmem:[#allocation3 + $0x13a] sm:$0xff] }
 0x3be   : > { %3034 = vrot.lane.b32.xlu1 %v7154_v63, %s5443_s27 }
 0x3bf   : > { %v2827_v24 = vpop.permute.xlu1 %2826  ;;  %v2825_v62 = vpop.permute.xlu0 %2824 }
 0x3c0   : > { %2913 = vst.msk [vmem:[#allocation2 + $0x48] sm:$0xff] %vm514_vm1, %v2827_v24  ;;  %2912 = vst.msk [vmem:[#allocation2 + $0x40] sm:$0xff] %vm514_vm1, %v2825_v62  ;;  %3032 = vrot.lane.b32.xlu0 %v7160_v54, %s5443_s27 }
 0x3c2   : > { %3038 = vrot.lane.b32.xlu1 %v7164_v20, %s5443_s27 }
 0x3c3   : > { %v2831_v16 = vpop.permute.xlu1 %2830  ;;  %v2829_v13 = vpop.permute.xlu0 %2828 }
 0x3c4   : > { %2915 = vst.msk [vmem:[#allocation2 + $0x58] sm:$0xff] %vm514_vm1, %v2831_v16  ;;  %2914 = vst.msk [vmem:[#allocation2 + $0x50] sm:$0xff] %vm514_vm1, %v2829_v13  ;;  %3036 = vrot.lane.b32.xlu0 %v7170_v50, %s5443_s27  ;;  %v2965_v16 = vld [vmem:[#allocation3 + $0x15a] sm:$0xff]  ;;  %v2964_v13 = vld [vmem:[#allocation3 + $0x152] sm:$0xff] }
 0x3c6   : > { %3042 = vrot.lane.b32.xlu1 %v2957_v49, %s5443_s27 }
 0x3c7   : > { %v2835_v27 = vpop.permute.xlu1 %2834  ;;  %v2833_v36 = vpop.permute.xlu0 %2832 }
 0x3c8   : > { %2917 = vst.msk [vmem:[#allocation2 + $0x68] sm:$0xff] %vm514_vm1, %v2835_v27  ;;  %2916 = vst.msk [vmem:[#allocation2 + $0x60] sm:$0xff] %vm514_vm1, %v2833_v36  ;;  %3040 = vrot.lane.b32.xlu0 %v7177_v3, %s5443_s27  ;;  %v2967_v27 = vld [vmem:[#allocation3 + $0x172] sm:$0xff]  ;;  %v2966_v36 = vld [vmem:[#allocation3 + $0x16a] sm:$0xff] }
 0x3ca   : > { %3046 = vrot.lane.b32.xlu1 %v2959_v7, %s5443_s27 }
 0x3cc   : > { %3044 = vrot.lane.b32.xlu0 %v2958_v10, %s5443_s27  ;;  %v2839_v28 = vpop.permute.xlu1 %2838 }
 0x3cd   : > { %2919 = vst.msk [vmem:[#allocation2 + $0x78] sm:$0xff] %vm514_vm1, %v2839_v28 }
 0x3ce   : > { %v2837_v34 = vpop.permute.xlu0 %2836  ;;  %3050 = vrot.lane.b32.xlu1 %v2961_v43, %s5443_s27 }
 0x3cf   : > { %2918 = vst.msk [vmem:[#allocation2 + $0x70] sm:$0xff] %vm514_vm1, %v2837_v34 }
 0x3d0   : > { %3048 = vrot.lane.b32.xlu0 %v2960_v57, %s5443_s27 }
 0x3d2   : > { %3054 = vrot.lane.b32.xlu1 %v2963_v38, %s5443_s27 }
 0x3d4   : > { %3052 = vrot.lane.b32.xlu0 %v2962_v51, %s5443_s27  ;;  %v2843_v24 = vpop.permute.xlu1 %2842  ;;  %v3707_v51 = vld [vmem:[#allocation3 + $0x38] sm:$0xff] }
 0x3d5   : > { %2921 = vst.msk [vmem:[#allocation2 + $0x88] sm:$0xff] %vm514_vm1, %v2843_v24  ;;  %v3706_v24 = vld [vmem:[#allocation3 + $0x30] sm:$0xff] }
 0x3d6   : > { %v2841_v62 = vpop.permute.xlu0 %2840  ;;  %3058 = vrot.lane.b32.xlu1 %v2965_v16, %s5443_s27 }
 0x3d7   : > { %2920 = vst.msk [vmem:[#allocation2 + $0x80] sm:$0xff] %vm514_vm1, %v2841_v62 }
 0x3d8   : > { %3056 = vrot.lane.b32.xlu0 %v2964_v13, %s5443_s27  ;;  %v4317_v13 = vld [vmem:[%s7914_s3 + $0x18] sm:$0xff] }
 0x3da   : > { %3062 = vrot.lane.b32.xlu1 %v2967_v27, %s5443_s27 }
 0x3dc   : > { %3060 = vrot.lane.b32.xlu0 %v2966_v36, %s5443_s27  ;;  %v2847_v49 = vpop.permute.xlu1 %2846 }
 0x3dd   : > { %2923 = vst.msk [vmem:[#allocation2 + $0x98] sm:$0xff] %vm514_vm1, %v2847_v49 }
 0x3de   : > { %v2845_v7 = vpop.permute.xlu0 %2844  ;;  %3195 = vrot.lane.b32.xlu1 %v6834_v17, %s5444_s28 }
 0x3df   : > { %2922 = vst.msk [vmem:[#allocation2 + $0x90] sm:$0xff] %vm514_vm1, %v2845_v7 }
 0x3e0   : > { %3193 = vrot.lane.b32.xlu0 %v6840_v18, %s5444_s28 }
 0x3e2   : > { %3199 = vrot.lane.b32.xlu1 %v6848_v32, %s5444_s28 }
 0x3e4   : > { %3197 = vrot.lane.b32.xlu0 %v6846_v31, %s5444_s28  ;;  %v2851_v10 = vpop.permute.xlu1 %2850 }
 0x3e5   : > { %2925 = vst.msk [vmem:[#allocation2 + $0xa8] sm:$0xff] %vm514_vm1, %v2851_v10 }
 0x3e6   : > { %v2849_v28 = vpop.permute.xlu0 %2848  ;;  %3203 = vrot.lane.b32.xlu1 %v6871_v21, %s5444_s28 }
 0x3e7   : > { %2924 = vst.msk [vmem:[#allocation2 + $0xa0] sm:$0xff] %vm514_vm1, %v2849_v28 }
 0x3e8   : > { %3201 = vrot.lane.b32.xlu0 %v6878_v29, %s5444_s28 }
 0x3ea   : > { %3207 = vrot.lane.b32.xlu1 %v6897_v52, %s5444_s28 }
 0x3ec   : > { %3205 = vrot.lane.b32.xlu0 %v6907_v53, %s5444_s28  ;;  %v2855_v17 = vpop.permute.xlu1 %2854 }
 0x3ed   : > { %2927 = vst.msk [vmem:[#allocation2 + $0xb8] sm:$0xff] %vm514_vm1, %v2855_v17 }
 0x3ee   : > { %v2853_v18 = vpop.permute.xlu0 %2852  ;;  %3211 = vrot.lane.b32.xlu1 %v6923_v12, %s5444_s28 }
 0x3ef   : > { %2926 = vst.msk [vmem:[#allocation2 + $0xb0] sm:$0xff] %vm514_vm1, %v2853_v18 }
 0x3f0   : > { %3209 = vrot.lane.b32.xlu0 %v6931_v23, %s5444_s28 }
 0x3f2   : > { %3215 = vrot.lane.b32.xlu1 %v6941_v58, %s5444_s28 }
 0x3f4   : > { %3213 = vrot.lane.b32.xlu0 %v6949_v26, %s5444_s28  ;;  %v2859_v31 = vpop.permute.xlu1 %2858 }
 0x3f5   : > { %2929 = vst.msk [vmem:[#allocation2 + $0xc8] sm:$0xff] %vm514_vm1, %v2859_v31 }
 0x3f6   : > { %v2857_v32 = vpop.permute.xlu0 %2856  ;;  %3219 = vrot.lane.b32.xlu1 %v6958_v8, %s5444_s28 }
 0x3f7   : > { %2928 = vst.msk [vmem:[#allocation2 + $0xc0] sm:$0xff] %vm514_vm1, %v2857_v32 }
 0x3f8   : > { %3217 = vrot.lane.b32.xlu0 %v6965_v9, %s5444_s28 }
 0x3fa   : > { %3223 = vrot.lane.b32.xlu1 %v6974_v44, %s5444_s28 }
 0x3fc   : > { %3221 = vrot.lane.b32.xlu0 %v6981_v56, %s5444_s28  ;;  %v2863_v34 = vpop.permute.xlu1 %2862 }
 0x3fd   : > { %2931 = vst.msk [vmem:[#allocation2 + $0xd8] sm:$0xff] %vm514_vm1, %v2863_v34 }
 0x3fe   : > { %v2861_v43 = vpop.permute.xlu0 %2860  ;;  %3227 = vrot.lane.b32.xlu1 %v6990_v39, %s5444_s28 }
 0x3ff   : > { %2930 = vst.msk [vmem:[#allocation2 + $0xd0] sm:$0xff] %vm514_vm1, %v2861_v43 }
 0x400   : > { %3225 = vrot.lane.b32.xlu0 %v6997_v40, %s5444_s28 }
 0x402   : > { %3387 = vrot.lane.b32.xlu1 %v6881_v35, %s5445_s29  ;;  %v4314_v35 = vld [vmem:[%s7914_s3] sm:$0xff] }
 0x404   : > { %3385 = vrot.lane.b32.xlu0 %v6883_v41, %s5445_s29  ;;  %v2867_v57 = vpop.permute.xlu1 %2866  ;;  %v4315_v41 = vld [vmem:[%s7914_s3 + $0x8] sm:$0xff] }
 0x405   : > { %2933 = vst.msk [vmem:[#allocation2 + $0xe8] sm:$0xff] %vm514_vm1, %v2867_v57  ;;  %v5377_v16 = vpack.c.bf16 %v4315_v41, %v4314_v35 }
 0x406   : > { %v2865_v38 = vpop.permute.xlu0 %2864  ;;  %3579 = vrot.lane.b32.xlu1 %v7082_v19, %s5446_s30 }
 0x407   : > { %2932 = vst.msk [vmem:[#allocation2 + $0xe0] sm:$0xff] %vm514_vm1, %v2865_v38  ;;  %5378 = vmatprep.subr.bf16.mxu1 %v5377_v16  ;;  %v3327_v38 = vld [vmem:[#allocation3 + $0x61] sm:$0xff] }
 0x408   : > { %3577 = vrot.lane.b32.xlu0 %v7087_v25, %s5446_s30  ;;  %5380 = vmatpush3.bf16.msra.mxu1 %v5377_v16  ;;  %v4316_v25 = vld [vmem:[%s7914_s3 + $0x10] sm:$0xff] }
 0x409   : > { %v5381_v36 = vpack.c.bf16 %v4317_v13, %v4316_v25  ;;  %v3329_v25 = vld [vmem:[#allocation3 + $0x79] sm:$0xff] }
 0x40a   : > { %3772 = vrot.lane.b32.xlu1 %v3707_v51, %s5447_s6 }
 0x40b   : > { %5382 = vmatprep.subr.bf16.mxu1 %v5381_v36 }
 0x40c   : > { %3770 = vrot.lane.b32.xlu0 %v3706_v24, %s5447_s6  ;;  %v2871_v62 = vpop.permute.xlu1 %2870  ;;  %5384 = vmatpush3.bf16.msra.mxu1 %v5381_v36 }
 0x40d   : > { %2935 = vst.msk [vmem:[#allocation2 + $0xf8] sm:$0xff] %vm514_vm1, %v2871_v62 }
 0x40e   : > { %v2869_v19 = vpop.permute.xlu0 %2868  ;;  %3389 = vrot.lane.b32.xlu1 %v6895_v48, %s5445_s29 }
 0x40f   : > { %2934 = vst.msk [vmem:[#allocation2 + $0xf0] sm:$0xff] %vm514_vm1, %v2869_v19  ;;  %vm8044_vm1 = vcmask 293888  }
 0x410   : > { %3962 = vrot.lane.b32.xlu0 %v6895_v48, %s5448_s17  ;;  %v3003_v27 = vpop.permute.xlu1 %3002  ;;  %v4318_v48 = vld [vmem:[%s7914_s3 + $0x20] sm:$0xf]  ;;  %vm8047_vm12 = vmmov %vm8044_vm1 }
 0x411   : > { %3097 = vst.msk [vmem:[#allocation2 + $0x8] sm:$0xff] %vm731_vm2, %v3003_v27  ;;  %5319 = vmatprep.subr.msk.mxu1 %vm2229_vm6, %v4318_v48  ;;  %vm8048_vm14 = vmmov %vm8044_vm1 }
 0x412   : > { %v3001_v49 = vpop.permute.xlu0 %3000  ;;  %4154 = vrot.lane.b32.xlu1 %v7097_v4, %s5449_s22  ;;  %5320 = vmatpush3.msk.msra.mxu1 %vm2229_vm6, %v4318_v48  ;;  %vm8046_vm6 = vmmov %vm8044_vm1 }
 0x413   : > { %3096 = vst.msk [vmem:[#allocation2] sm:$0xff] %vm731_vm2, %v3001_v49  ;;  %vm8049_vm15 = vmmov %vm8044_vm1 }
 0x414   : > { %3964 = vrot.lane.b32.xlu0 %v6893_v45, %s5448_s17  ;;  %v3007_v7 = vpop.permute.xlu1 %3006  ;;  %vm8050_vm10 = vmmov %vm8044_vm1 }
 0x415   : > { %3099 = vst.msk [vmem:[#allocation2 + $0x18] sm:$0xff] %vm731_vm2, %v3007_v7  ;;  %vm8051_vm11 = vmmov %vm8044_vm1 }
 0x416   : > { %v3005_v10 = vpop.permute.xlu0 %3004  ;;  %3581 = vrot.lane.b32.xlu1 %v7097_v4, %s5446_s30  ;;  %vm8052_vm13 = vmmov %vm8044_vm1 }
 0x417   : > { %3098 = vst.msk [vmem:[#allocation2 + $0x10] sm:$0xff] %vm731_vm2, %v3005_v10 }
 0x418   : > { %3391 = vrot.lane.b32.xlu0 %v6893_v45, %s5445_s29  ;;  %v3011_v28 = vpop.permute.xlu1 %3010 }
 0x419   : > { %3101 = vst.msk [vmem:[#allocation2 + $0x28] sm:$0xff] %vm731_vm2, %v3011_v28  ;;  %v3331_v28 = vld [vmem:[#allocation3 + $0x91] sm:$0xff] }
 0x41a   : > { %v3009_v17 = vpop.permute.xlu0 %3008  ;;  %3583 = vrot.lane.b32.xlu1 %v7091_v1, %s5446_s30 }
 0x41b   : > { %3100 = vst.msk [vmem:[#allocation2 + $0x20] sm:$0xff] %vm731_vm2, %v3009_v17 }
 0x41c   : > { %4156 = vrot.lane.b32.xlu0 %v7091_v1, %s5449_s22  ;;  %v3015_v18 = vpop.permute.xlu1 %3014 }
 0x41d   : > { %3103 = vst.msk [vmem:[#allocation2 + $0x38] sm:$0xff] %vm731_vm2, %v3015_v18 }
 0x41e   : > { %v3013_v4 = vpop.permute.xlu0 %3012  ;;  %3776 = vrot.lane.b32.xlu1 %v6871_v21, %s5447_s6 }
 0x41f   : > { %3102 = vst.msk [vmem:[#allocation2 + $0x30] sm:$0xff] %vm731_vm2, %v3013_v4 }
 0x420   : > { %3774 = vrot.lane.b32.xlu0 %v6878_v29, %s5447_s6  ;;  %v3019_v45 = vpop.permute.xlu1 %3018 }
 0x421   : > { %3105 = vst.msk [vmem:[#allocation2 + $0x48] sm:$0xff] %vm731_vm2, %v3019_v45 }
 0x422   : > { %v3017_v31 = vpop.permute.xlu0 %3016  ;;  %3393 = vrot.lane.b32.xlu1 %v6915_v61, %s5445_s29 }
 0x423   : > { %3104 = vst.msk [vmem:[#allocation2 + $0x40] sm:$0xff] %vm731_vm2, %v3017_v31 }
 0x424   : > { %3966 = vrot.lane.b32.xlu0 %v6915_v61, %s5448_s17  ;;  %v3023_v1 = vpop.permute.xlu1 %3022 }
 0x425   : > { %3107 = vst.msk [vmem:[#allocation2 + $0x58] sm:$0xff] %vm731_vm2, %v3023_v1 }
 0x426   : > { %v3021_v32 = vpop.permute.xlu0 %3020  ;;  %4158 = vrot.lane.b32.xlu1 %v7110_v6, %s5449_s22 }
 0x427   : > { %3106 = vst.msk [vmem:[#allocation2 + $0x50] sm:$0xff] %vm731_vm2, %v3021_v32 }
 0x428   : > { %3968 = vrot.lane.b32.xlu0 %v6913_v60, %s5448_s17  ;;  %v3027_v21 = vpop.permute.xlu1 %3026 }
 0x429   : > { %3109 = vst.msk [vmem:[#allocation2 + $0x68] sm:$0xff] %vm731_vm2, %v3027_v21  ;;  %v3333_v21 = vld [vmem:[#allocation3 + $0xa9] sm:$0xff] }
 0x42a   : > { %v3025_v29 = vpop.permute.xlu0 %3024  ;;  %3585 = vrot.lane.b32.xlu1 %v7110_v6, %s5446_s30 }
 0x42b   : > { %3108 = vst.msk [vmem:[#allocation2 + $0x60] sm:$0xff] %vm731_vm2, %v3025_v29 }
 0x42c   : > { %3395 = vrot.lane.b32.xlu0 %v6913_v60, %s5445_s29  ;;  %v3031_v61 = vpop.permute.xlu1 %3030 }
 0x42d   : > { %3111 = vst.msk [vmem:[#allocation2 + $0x78] sm:$0xff] %vm731_vm2, %v3031_v61 }
 0x42e   : > { %v3029_v34 = vpop.permute.xlu0 %3028  ;;  %3587 = vrot.lane.b32.xlu1 %v7106_v5, %s5446_s30 }
 0x42f   : > { %3110 = vst.msk [vmem:[#allocation2 + $0x70] sm:$0xff] %vm731_vm2, %v3029_v34 }
 0x430   : > { %4160 = vrot.lane.b32.xlu0 %v7106_v5, %s5449_s22  ;;  %v3035_v43 = vpop.permute.xlu1 %3034 }
 0x431   : > { %3113 = vst.msk [vmem:[#allocation2 + $0x88] sm:$0xff] %vm731_vm2, %v3035_v43 }
 0x432   : > { %v3033_v57 = vpop.permute.xlu0 %3032  ;;  %3780 = vrot.lane.b32.xlu1 %v6897_v52, %s5447_s6  ;;  %v3903_v52 = vld [vmem:[#allocation3 + $0x69] sm:$0xff] }
 0x433   : > { %3112 = vst.msk [vmem:[#allocation2 + $0x80] sm:$0xff] %vm731_vm2, %v3033_v57 }
 0x434   : > { %3778 = vrot.lane.b32.xlu0 %v6907_v53, %s5447_s6  ;;  %v3039_v60 = vpop.permute.xlu1 %3038 }
 0x435   : > { %3115 = vst.msk [vmem:[#allocation2 + $0x98] sm:$0xff] %vm731_vm2, %v3039_v60 }
 0x436   : > { %v3037_v6 = vpop.permute.xlu0 %3036  ;;  %3397 = vrot.lane.b32.xlu1 %v3327_v38, %s5445_s29 }
 0x437   : > { %3114 = vst.msk [vmem:[#allocation2 + $0x90] sm:$0xff] %vm731_vm2, %v3037_v6 }
 0x438   : > { %3970 = vrot.lane.b32.xlu0 %v3327_v38, %s5448_s17  ;;  %v3043_v5 = vpop.permute.xlu1 %3042  ;;  %v3335_v38 = vld [vmem:[#allocation3 + $0xc1] sm:$0xff] }
 0x439   : > { %3117 = vst.msk [vmem:[#allocation2 + $0xa8] sm:$0xff] %vm731_vm2, %v3043_v5 }
 0x43a   : > { %v3041_v51 = vpop.permute.xlu0 %3040  ;;  %4162 = vrot.lane.b32.xlu1 %v7120_v14, %s5449_s22 }
 0x43b   : > { %3116 = vst.msk [vmem:[#allocation2 + $0xa0] sm:$0xff] %vm731_vm2, %v3041_v51 }
 0x43c   : > { %3972 = vrot.lane.b32.xlu0 %v3903_v52, %s5448_s17  ;;  %v3047_v53 = vpop.permute.xlu1 %3046 }
 0x43d   : > { %3119 = vst.msk [vmem:[#allocation2 + $0xb8] sm:$0xff] %vm731_vm2, %v3047_v53 }
 0x43e   : > { %v3045_v24 = vpop.permute.xlu0 %3044  ;;  %3589 = vrot.lane.b32.xlu1 %v7120_v14, %s5446_s30 }
 0x43f   : > { %3118 = vst.msk [vmem:[#allocation2 + $0xb0] sm:$0xff] %vm731_vm2, %v3045_v24 }
 0x440   : > { %3399 = vrot.lane.b32.xlu0 %v3903_v52, %s5445_s29  ;;  %v3051_v35 = vpop.permute.xlu1 %3050 }
 0x441   : > { %3121 = vst.msk [vmem:[#allocation2 + $0xc8] sm:$0xff] %vm731_vm2, %v3051_v35 }
 0x442   : > { %v3049_v41 = vpop.permute.xlu0 %3048  ;;  %3591 = vrot.lane.b32.xlu1 %v7114_v11, %s5446_s30 }
 0x443   : > { %3120 = vst.msk [vmem:[#allocation2 + $0xc0] sm:$0xff] %vm731_vm2, %v3049_v41 }
 0x444   : > { %4164 = vrot.lane.b32.xlu0 %v7114_v11, %s5449_s22  ;;  %v3055_v62 = vpop.permute.xlu1 %3054 }
 0x445   : > { %3123 = vst.msk [vmem:[#allocation2 + $0xd8] sm:$0xff] %vm731_vm2, %v3055_v62 }
 0x446   : > { %v3053_v16 = vpop.permute.xlu0 %3052  ;;  %3784 = vrot.lane.b32.xlu1 %v6923_v12, %s5447_s6  ;;  %v3905_v12 = vld [vmem:[#allocation3 + $0x81] sm:$0xff] }
 0x447   : > { %3122 = vst.msk [vmem:[#allocation2 + $0xd0] sm:$0xff] %vm731_vm2, %v3053_v16 }
 0x448   : > { %3782 = vrot.lane.b32.xlu0 %v6931_v23, %s5447_s6  ;;  %v3059_v14 = vpop.permute.xlu1 %3058 }
 0x449   : > { %3125 = vst.msk [vmem:[#allocation2 + $0xe8] sm:$0xff] %vm731_vm2, %v3059_v14 }
 0x44a   : > { %v3057_v19 = vpop.permute.xlu0 %3056  ;;  %3401 = vrot.lane.b32.xlu1 %v3329_v25, %s5445_s29 }
 0x44b   : > { %3124 = vst.msk [vmem:[#allocation2 + $0xe0] sm:$0xff] %vm731_vm2, %v3057_v19 }
 0x44c   : > { %3974 = vrot.lane.b32.xlu0 %v3329_v25, %s5448_s17  ;;  %v3063_v11 = vpop.permute.xlu1 %3062 }
 0x44d   : > { %3127 = vst.msk [vmem:[#allocation2 + $0xf8] sm:$0xff] %vm731_vm2, %v3063_v11 }
 0x44e   : > { %v3061_v13 = vpop.permute.xlu0 %3060  ;;  %4166 = vrot.lane.b32.xlu1 %v7130_v42, %s5449_s22 }
 0x44f   : > { %3126 = vst.msk [vmem:[#allocation2 + $0xf0] sm:$0xff] %vm731_vm2, %v3061_v13  ;;  %vm8045_vm2 = vmmov %vm8044_vm1 }
 0x450   : > { %3976 = vrot.lane.b32.xlu0 %v3905_v12, %s5448_s17  ;;  %v3196_v23 = vpop.permute.xlu1 %3195 }
 0x451   : > { %3290 = vst.msk [vmem:[#allocation2 + $0x8] sm:$0xff] %vm949_vm3, %v3196_v23 }
 0x452   : > { %v3194_v27 = vpop.permute.xlu0 %3193  ;;  %3593 = vrot.lane.b32.xlu1 %v7130_v42, %s5446_s30 }
 0x453   : > { %3289 = vst.msk [vmem:[#allocation2] sm:$0xff] %vm949_vm3, %v3194_v27 }
 0x454   : > { %3403 = vrot.lane.b32.xlu0 %v3905_v12, %s5445_s29  ;;  %v3200_v36 = vpop.permute.xlu1 %3199 }
 0x455   : > { %3292 = vst.msk [vmem:[#allocation2 + $0x18] sm:$0xff] %vm949_vm3, %v3200_v36 }
 0x456   : > { %v3198_v49 = vpop.permute.xlu0 %3197  ;;  %3595 = vrot.lane.b32.xlu1 %v7124_v46, %s5446_s30 }
 0x457   : > { %3291 = vst.msk [vmem:[#allocation2 + $0x10] sm:$0xff] %vm949_vm3, %v3198_v49 }
 0x458   : > { %4168 = vrot.lane.b32.xlu0 %v7124_v46, %s5449_s22  ;;  %v3204_v48 = vpop.permute.xlu1 %3203 }
 0x459   : > { %3294 = vst.msk [vmem:[#allocation2 + $0x28] sm:$0xff] %vm949_vm3, %v3204_v48 }
 0x45a   : > { %v3202_v7 = vpop.permute.xlu0 %3201  ;;  %3788 = vrot.lane.b32.xlu1 %v6941_v58, %s5447_s6  ;;  %v3907_v58 = vld [vmem:[#allocation3 + $0x99] sm:$0xff] }
 0x45b   : > { %3293 = vst.msk [vmem:[#allocation2 + $0x20] sm:$0xff] %vm949_vm3, %v3202_v7 }
 0x45c   : > { %3786 = vrot.lane.b32.xlu0 %v6949_v26, %s5447_s6  ;;  %v3208_v42 = vpop.permute.xlu1 %3207 }
 0x45d   : > { %3296 = vst.msk [vmem:[#allocation2 + $0x38] sm:$0xff] %vm949_vm3, %v3208_v42 }
 0x45e   : > { %v3206_v10 = vpop.permute.xlu0 %3205  ;;  %3405 = vrot.lane.b32.xlu1 %v3331_v28, %s5445_s29 }
 0x45f   : > { %3295 = vst.msk [vmem:[#allocation2 + $0x30] sm:$0xff] %vm949_vm3, %v3206_v10 }
 0x460   : > { %3978 = vrot.lane.b32.xlu0 %v3331_v28, %s5448_s17  ;;  %v3212_v46 = vpop.permute.xlu1 %3211  ;;  %v3915_v28 = vld [vmem:[#allocation3 + $0xf9] sm:$0xff] }
 0x461   : > { %3298 = vst.msk [vmem:[#allocation2 + $0x48] sm:$0xff] %vm949_vm3, %v3212_v46 }
 0x462   : > { %v3210_v17 = vpop.permute.xlu0 %3209  ;;  %4170 = vrot.lane.b32.xlu1 %v7140_v37, %s5449_s22 }
 0x463   : > { %3297 = vst.msk [vmem:[#allocation2 + $0x40] sm:$0xff] %vm949_vm3, %v3210_v17 }
 0x464   : > { %3980 = vrot.lane.b32.xlu0 %v3907_v58, %s5448_s17  ;;  %v3216_v26 = vpop.permute.xlu1 %3215 }
 0x465   : > { %3300 = vst.msk [vmem:[#allocation2 + $0x58] sm:$0xff] %vm949_vm3, %v3216_v26  ;;  %v3532_v26 = vld [vmem:[#allocation3 + $0xfa] sm:$0xff] }
 0x466   : > { %v3214_v18 = vpop.permute.xlu0 %3213  ;;  %3597 = vrot.lane.b32.xlu1 %v7140_v37, %s5446_s30 }
 0x467   : > { %3299 = vst.msk [vmem:[#allocation2 + $0x50] sm:$0xff] %vm949_vm3, %v3214_v18 }
 0x468   : > { %3407 = vrot.lane.b32.xlu0 %v3907_v58, %s5445_s29  ;;  %v3220_v4 = vpop.permute.xlu1 %3219 }
 0x469   : > { %3302 = vst.msk [vmem:[#allocation2 + $0x68] sm:$0xff] %vm949_vm3, %v3220_v4 }
 0x46a   : > { %v3218_v45 = vpop.permute.xlu0 %3217  ;;  %3599 = vrot.lane.b32.xlu1 %v7134_v47, %s5446_s30 }
 0x46b   : > { %3301 = vst.msk [vmem:[#allocation2 + $0x60] sm:$0xff] %vm949_vm3, %v3218_v45 }
 0x46c   : > { %4172 = vrot.lane.b32.xlu0 %v7134_v47, %s5449_s22  ;;  %v3224_v31 = vpop.permute.xlu1 %3223 }
 0x46d   : > { %3304 = vst.msk [vmem:[#allocation2 + $0x78] sm:$0xff] %vm949_vm3, %v3224_v31 }
 0x46e   : > { %v3222_v1 = vpop.permute.xlu0 %3221  ;;  %3792 = vrot.lane.b32.xlu1 %v6958_v8, %s5447_s6  ;;  %v3909_v8 = vld [vmem:[#allocation3 + $0xb1] sm:$0xff] }
 0x46f   : > { %3303 = vst.msk [vmem:[#allocation2 + $0x70] sm:$0xff] %vm949_vm3, %v3222_v1  ;;  %v3916_v1 = vld [vmem:[#allocation3 + $0x109] sm:$0xff] }
 0x470   : > { %3790 = vrot.lane.b32.xlu0 %v6965_v9, %s5447_s6  ;;  %v3228_v37 = vpop.permute.xlu1 %3227 }
 0x471   : > { %3306 = vst.msk [vmem:[#allocation2 + $0x88] sm:$0xff] %vm949_vm3, %v3228_v37 }
 0x472   : > { %v3226_v32 = vpop.permute.xlu0 %3225  ;;  %3409 = vrot.lane.b32.xlu1 %v3333_v21, %s5445_s29 }
 0x473   : > { %3305 = vst.msk [vmem:[#allocation2 + $0x80] sm:$0xff] %vm949_vm3, %v3226_v32 }
 0x474   : > { %3982 = vrot.lane.b32.xlu0 %v3333_v21, %s5448_s17  ;;  %v3388_v47 = vpop.permute.xlu1 %3387 }
 0x475   : > { %3482 = vst.msk [vmem:[#allocation2 + $0x8] sm:$0xff] %vm1166_vm4, %v3388_v47 }
 0x476   : > { %v3386_v29 = vpop.permute.xlu0 %3385  ;;  %4174 = vrot.lane.b32.xlu1 %v7150_v55, %s5449_s22 }
 0x477   : > { %3481 = vst.msk [vmem:[#allocation2] sm:$0xff] %vm1166_vm4, %v3386_v29  ;;  %v4108_v29 = vld [vmem:[#allocation3 + $0x10a] sm:$0xff] }
 0x478   : > { %3984 = vrot.lane.b32.xlu0 %v3909_v8, %s5448_s17  ;;  %v3580_v9 = vpop.permute.xlu1 %3579 }
 0x479   : > { %3674 = vst.msk [vmem:[#allocation2 + $0x8] sm:$0xff] %vm1383_vm5, %v3580_v9 }
 0x47a   : > { %v3578_v61 = vpop.permute.xlu0 %3577  ;;  %3601 = vrot.lane.b32.xlu1 %v7150_v55, %s5446_s30 }
 0x47b   : > { %3673 = vst.msk [vmem:[#allocation2] sm:$0xff] %vm1383_vm5, %v3578_v61 }
 0x47c   : > { %3411 = vrot.lane.b32.xlu0 %v3909_v8, %s5445_s29  ;;  %v3773_v34 = vpop.permute.xlu1 %3772  ;;  %v3917_v8 = vld [vmem:[#allocation3 + $0x111] sm:$0xff] }
 0x47d   : > { %3867 = vst.msk [vmem:[#allocation2 + $0x8] sm:$0xff] %vm1601_vm7, %v3773_v34 }
 0x47e   : > { %v3771_v43 = vpop.permute.xlu0 %3770  ;;  %3603 = vrot.lane.b32.xlu1 %v7144_v59, %s5446_s30 }
 0x47f   : > { %3866 = vst.msk [vmem:[#allocation2] sm:$0xff] %vm1601_vm7, %v3771_v43 }
 0x480   : > { %4176 = vrot.lane.b32.xlu0 %v7144_v59, %s5449_s22  ;;  %v3390_v57 = vpop.permute.xlu1 %3389 }
 0x481   : > { %3483 = vst.msk [vmem:[#allocation2 + $0x10] sm:$0xff] %vm1166_vm4, %v3390_v57  ;;  %v3534_v57 = vld [vmem:[#allocation3 + $0x112] sm:$0xff] }
 0x482   : > { %v3963_v60 = vpop.permute.xlu0 %3962  ;;  %3796 = vrot.lane.b32.xlu1 %v6974_v44, %s5447_s6  ;;  %v3911_v44 = vld [vmem:[#allocation3 + $0xc9] sm:$0xff] }
 0x483   : > { %4058 = vst.msk [vmem:[#allocation2] sm:$0xff] %vm1818_vm8, %v3963_v60 }
 0x484   : > { %3794 = vrot.lane.b32.xlu0 %v6981_v56, %s5447_s6  ;;  %v4155_v55 = vpop.permute.xlu1 %4154 }
 0x485   : > { %4250 = vst.msk [vmem:[#allocation2] sm:$0xff] %vm2035_vm9, %v4155_v55 }
 0x486   : > { %v3965_v6 = vpop.permute.xlu0 %3964  ;;  %3413 = vrot.lane.b32.xlu1 %v3335_v38, %s5445_s29 }
 0x487   : > { %4059 = vst.msk [vmem:[#allocation2 + $0x8] sm:$0xff] %vm1818_vm8, %v3965_v6 }
 0x488   : > { %3986 = vrot.lane.b32.xlu0 %v3335_v38, %s5448_s17  ;;  %v3582_v59 = vpop.permute.xlu1 %3581 }
 0x489   : > { %3675 = vst.msk [vmem:[#allocation2 + $0x10] sm:$0xff] %vm1383_vm5, %v3582_v59 }
 0x48a   : > { %v3392_v5 = vpop.permute.xlu0 %3391  ;;  %4178 = vrot.lane.b32.xlu1 %v7160_v54, %s5449_s22 }
 0x48b   : > { %3484 = vst.msk [vmem:[#allocation2 + $0x18] sm:$0xff] %vm1166_vm4, %v3392_v5  ;;  %v3918_v5 = vld [vmem:[#allocation3 + $0x121] sm:$0xff] }
 0x48c   : > { %3988 = vrot.lane.b32.xlu0 %v3911_v44, %s5448_s17  ;;  %v3584_v56 = vpop.permute.xlu1 %3583  ;;  %v4282_v51 = vld [vmem:[#allocation2] sm:$0xff] }
 0x48d   : > { %3676 = vst.msk [vmem:[#allocation2 + $0x18] sm:$0xff] %vm1383_vm5, %v3584_v56  ;;  %5321 = vmatprep.mubr.msk.f32.mxu1 %vm8044_vm1, %v4282_v51 }
 0x48e   : > { %v4157_v52 = vpop.permute.xlu0 %4156  ;;  %3605 = vrot.lane.b32.xlu1 %v7160_v54, %s5446_s30 }
 0x48f   : > { %4251 = vst.msk [vmem:[#allocation2 + $0x8] sm:$0xff] %vm2035_vm9, %v4157_v52 }
 0x490   : > { %3415 = vrot.lane.b32.xlu0 %v3911_v44, %s5445_s29  ;;  %v3777_v53 = vpop.permute.xlu1 %3776 }
 0x491   : > { %3869 = vst.msk [vmem:[#allocation2 + $0x18] sm:$0xff] %vm1601_vm7, %v3777_v53  ;;  %v4110_v53 = vld [vmem:[#allocation3 + $0x122] sm:$0xff] }
 0x492   : > { %v3775_v24 = vpop.permute.xlu0 %3774  ;;  %3607 = vrot.lane.b32.xlu1 %v7154_v63, %s5446_s30 }
 0x493   : > { %3868 = vst.msk [vmem:[#allocation2 + $0x10] sm:$0xff] %vm1601_vm7, %v3775_v24 }
 0x494   : > { %4180 = vrot.lane.b32.xlu0 %v7154_v63, %s5449_s22  ;;  %v3394_v35 = vpop.permute.xlu1 %3393  ;;  %v3337_v63 = vld [vmem:[#allocation3 + $0xd9] sm:$0xff] }
 0x495   : > { %3485 = vst.msk [vmem:[#allocation2 + $0x20] sm:$0xff] %vm1166_vm4, %v3394_v35 }
 0x496   : > { %v3967_v41 = vpop.permute.xlu0 %3966  ;;  %v4283_v62 = vld [vmem:[#allocation2 + $0x8] sm:$0xff]  ;;  %3800 = vrot.lane.b32.xlu1 %v6990_v39, %s5447_s6 }
 0x497   : > { %4060 = vst.msk [vmem:[#allocation2 + $0x10] sm:$0xff] %vm1818_vm8, %v3967_v41  ;;  %5322 = vmatmul.mubr.msk.f32.vlgmr.msra.gmra.mrb[0].mxu1 %vm8045_vm2, %v4283_v62  ;;  %vm8053_vm2 = vmmov %vm8044_vm1 }
 0x498   : > { %3798 = vrot.lane.b32.xlu0 %v6997_v40, %s5447_s6  ;;  %v4159_v54 = vpop.permute.xlu1 %4158  ;;  %v3913_v40 = vld [vmem:[#allocation3 + $0xe1] sm:$0xff] }
 0x499   : > { %4252 = vst.msk [vmem:[#allocation2 + $0x10] sm:$0xff] %vm2035_vm9, %v4159_v54 }
 0x49a   : > { %v3969_v16 = vpop.permute.xlu0 %3968  ;;  %3417 = vrot.lane.b32.xlu1 %v3337_v63, %s5445_s29 }
 0x49b   : > { %4061 = vst.msk [vmem:[#allocation2 + $0x18] sm:$0xff] %vm1818_vm8, %v3969_v16  ;;  %v3536_v16 = vld [vmem:[#allocation3 + $0x12a] sm:$0xff] }
 0x49c   : > { %3990 = vrot.lane.b32.xlu0 %v3337_v63, %s5448_s17  ;;  %v3586_v14 = vpop.permute.xlu1 %3585 }
 0x49d   : > { %3677 = vst.msk [vmem:[#allocation2 + $0x20] sm:$0xff] %vm1383_vm5, %v3586_v14 }
 0x49e   : > { %v3396_v39 = vpop.permute.xlu0 %3395  ;;  %4182 = vrot.lane.b32.xlu1 %v7170_v50, %s5449_s22 }
 0x49f   : > { %3486 = vst.msk [vmem:[#allocation2 + $0x28] sm:$0xff] %vm1166_vm4, %v3396_v39 }
 0x4a0   : > { %3992 = vrot.lane.b32.xlu0 %v3913_v40, %s5448_s17  ;;  %v3588_v19 = vpop.permute.xlu1 %3587  ;;  %v4284_v25 = vld [vmem:[#allocation2 + $0x10] sm:$0xff] }
 0x4a1   : > { %3678 = vst.msk [vmem:[#allocation2 + $0x28] sm:$0xff] %vm1383_vm5, %v3588_v19  ;;  %5324 = vmatprep.mubr.msk.f32.mxu1 %vm8046_vm6, %v4284_v25  ;;  %vm8054_vm6 = vmmov %vm8044_vm1 }
 0x4a2   : > { %v4161_v11 = vpop.permute.xlu0 %4160  ;;  %3609 = vrot.lane.b32.xlu1 %v7170_v50, %s5446_s30 }
 0x4a3   : > { %4253 = vst.msk [vmem:[#allocation2 + $0x18] sm:$0xff] %vm2035_vm9, %v4161_v11  ;;  %v3920_v11 = vld [vmem:[#allocation3 + $0x139] sm:$0xff] }
 0x4a4   : > { %3419 = vrot.lane.b32.xlu0 %v3913_v40, %s5445_s29  ;;  %v3781_v13 = vpop.permute.xlu1 %3780  ;;  %v3153_v40 = vld [vmem:[#allocation3 + $0x138] sm:$0xff] }
 0x4a5   : > { %3871 = vst.msk [vmem:[#allocation2 + $0x28] sm:$0xff] %vm1601_vm7, %v3781_v13  ;;  %v3729_v13 = vld [vmem:[#allocation3 + $0x140] sm:$0xff] }
 0x4a6   : > { %v3779_v12 = vpop.permute.xlu0 %3778  ;;  %3611 = vrot.lane.b32.xlu1 %v7164_v20, %s5446_s30 }
 0x4a7   : > { %3870 = vst.msk [vmem:[#allocation2 + $0x20] sm:$0xff] %vm1601_vm7, %v3779_v12 }
 0x4a8   : > { %4184 = vrot.lane.b32.xlu0 %v7164_v20, %s5449_s22  ;;  %v3398_v23 = vpop.permute.xlu1 %3397  ;;  %v3914_v20 = vld [vmem:[#allocation3 + $0xf1] sm:$0xff] }
 0x4a9   : > { %3487 = vst.msk [vmem:[#allocation2 + $0x30] sm:$0xff] %vm1166_vm4, %v3398_v23 }
 0x4aa   : > { %v3971_v27 = vpop.permute.xlu0 %3970  ;;  %v4285_v36 = vld [vmem:[#allocation2 + $0x18] sm:$0xff]  ;;  %3229 = vrot.lane.b32.xlu1 %v7013_v33, %s5444_s28 }
 0x4ab   : > { %4062 = vst.msk [vmem:[#allocation2 + $0x20] sm:$0xff] %vm1818_vm8, %v3971_v27  ;;  %5325 = vmatmul.mubr.msk.f32.gmra.mrb[2].mxu1 %vm8047_vm12, %v4285_v36  ;;  %vm8055_vm12 = vmmov %vm8044_vm1 }
 0x4ac   : > { %3802 = vrot.lane.b32.xlu0 %v7013_v33, %s5447_s6  ;;  %v4163_v50 = vpop.permute.xlu1 %4162 }
 0x4ad   : > { %4254 = vst.msk [vmem:[#allocation2 + $0x20] sm:$0xff] %vm2035_vm9, %v4163_v50 }
 0x4ae   : > { %v3973_v49 = vpop.permute.xlu0 %3972  ;;  %3994 = vrot.lane.b32.xlu1 %v3914_v20, %s5448_s17 }
 0x4af   : > { %4063 = vst.msk [vmem:[#allocation2 + $0x28] sm:$0xff] %vm1818_vm8, %v3973_v49  ;;  %v4112_v49 = vld [vmem:[#allocation3 + $0x13a] sm:$0xff] }
 0x4b0   : > { %3804 = vrot.lane.b32.xlu0 %v7006_v30, %s5447_s6  ;;  %v3590_v48 = vpop.permute.xlu1 %3589 }
 0x4b1   : > { %3679 = vst.msk [vmem:[#allocation2 + $0x30] sm:$0xff] %vm1383_vm5, %v3590_v48 }
 0x4b2   : > { %v3400_v7 = vpop.permute.xlu0 %3399  ;;  %3421 = vrot.lane.b32.xlu1 %v3914_v20, %s5445_s29  ;;  %v3921_v20 = vld [vmem:[#allocation3 + $0x141] sm:$0xff] }
 0x4b3   : > { %3488 = vst.msk [vmem:[#allocation2 + $0x38] sm:$0xff] %vm1166_vm4, %v3400_v7 }
 0x4b4   : > { %3231 = vrot.lane.b32.xlu0 %v7006_v30, %s5444_s28  ;;  %v3592_v33 = vpop.permute.xlu1 %3591  ;;  %v4286_v42 = vld [vmem:[#allocation2 + $0x20] sm:$0xff] }
 0x4b5   : > { %3680 = vst.msk [vmem:[#allocation2 + $0x38] sm:$0xff] %vm1383_vm5, %v3592_v33  ;;  %5327 = vmatprep.mubr.msk.f32.mxu1 %vm8048_vm14, %v4286_v42  ;;  %vm8056_vm14 = vmmov %vm8044_vm1 }
 0x4b6   : > { %v4165_v10 = vpop.permute.xlu0 %4164  ;;  %4186 = vrot.lane.b32.xlu1 %v7177_v3, %s5449_s22 }
 0x4b7   : > { %4255 = vst.msk [vmem:[#allocation2 + $0x28] sm:$0xff] %vm2035_vm9, %v4165_v10 }
 0x4b8   : > { %3996 = vrot.lane.b32.xlu0 %v3915_v28, %s5448_s17  ;;  %v3785_v46 = vpop.permute.xlu1 %3784 }
 0x4b9   : > { %3873 = vst.msk [vmem:[#allocation2 + $0x38] sm:$0xff] %vm1601_vm7, %v3785_v46 }
 0x4ba   : > { %v3783_v17 = vpop.permute.xlu0 %3782  ;;  %3613 = vrot.lane.b32.xlu1 %v7177_v3, %s5446_s30 }
 0x4bb   : > { %3872 = vst.msk [vmem:[#allocation2 + $0x30] sm:$0xff] %vm1601_vm7, %v3783_v17 }
 0x4bc   : > { %3423 = vrot.lane.b32.xlu0 %v3915_v28, %s5445_s29  ;;  %v3402_v30 = vpop.permute.xlu1 %3401  ;;  %v3538_v28 = vld [vmem:[#allocation3 + $0x142] sm:$0xff] }
 0x4bd   : > { %3489 = vst.msk [vmem:[#allocation2 + $0x40] sm:$0xff] %vm1166_vm4, %v3402_v30  ;;  %v3155_v30 = vld [vmem:[#allocation3 + $0x150] sm:$0xff] }
 0x4be   : > { %v3975_v58 = vpop.permute.xlu0 %3974  ;;  %v4287_v18 = vld [vmem:[#allocation2 + $0x28] sm:$0xff]  ;;  %3615 = vrot.lane.b32.xlu1 %v3532_v26, %s5446_s30 }
 0x4bf   : > { %4064 = vst.msk [vmem:[#allocation2 + $0x30] sm:$0xff] %vm1818_vm8, %v3975_v58  ;;  %5328 = vmatmul.mubr.msk.f32.gmra.mrb[4].mxu1 %vm8049_vm15, %v4287_v18  ;;  %v3922_v18 = vld [vmem:[#allocation3 + $0x151] sm:$0xff]  ;;  %vm8057_vm15 = vmmov %vm8044_vm1 }
 0x4c0   : > { %4188 = vrot.lane.b32.xlu0 %v3532_v26, %s5449_s22  ;;  %v4167_v4 = vpop.permute.xlu1 %4166 }
 0x4c1   : > { %4256 = vst.msk [vmem:[#allocation2 + $0x30] sm:$0xff] %vm2035_vm9, %v4167_v4 }
 0x4c2   : > { %v3977_v3 = vpop.permute.xlu0 %3976  ;;  %3233 = vrot.lane.b32.xlu1 %v7029_v22, %s5444_s28 }
 0x4c3   : > { %4065 = vst.msk [vmem:[#allocation2 + $0x38] sm:$0xff] %vm1818_vm8, %v3977_v3  ;;  %v3731_v3 = vld [vmem:[#allocation3 + $0x158] sm:$0xff] }
 0x4c4   : > { %3806 = vrot.lane.b32.xlu0 %v7029_v22, %s5447_s6  ;;  %v3594_v45 = vpop.permute.xlu1 %3593 }
 0x4c5   : > { %3681 = vst.msk [vmem:[#allocation2 + $0x40] sm:$0xff] %vm1383_vm5, %v3594_v45 }
 0x4c6   : > { %v3404_v31 = vpop.permute.xlu0 %3403  ;;  %3998 = vrot.lane.b32.xlu1 %v3916_v1, %s5448_s17 }
 0x4c7   : > { %3490 = vst.msk [vmem:[#allocation2 + $0x48] sm:$0xff] %vm1166_vm4, %v3404_v31 }
 0x4c8   : > { %3808 = vrot.lane.b32.xlu0 %v7022_v15, %s5447_s6  ;;  %v3596_v37 = vpop.permute.xlu1 %3595  ;;  %v4288_v32 = vld [vmem:[#allocation2 + $0x30] sm:$0xff] }
 0x4c9   : > { %3682 = vst.msk [vmem:[#allocation2 + $0x48] sm:$0xff] %vm1383_vm5, %v3596_v37  ;;  %5330 = vmatprep.mubr.msk.f32.mxu1 %vm8050_vm10, %v4288_v32  ;;  %v4114_v32 = vld [vmem:[#allocation3 + $0x152] sm:$0xff]  ;;  %vm8058_vm10 = vmmov %vm8044_vm1 }
 0x4ca   : > { %v4169_v21 = vpop.permute.xlu0 %4168  ;;  %3425 = vrot.lane.b32.xlu1 %v3916_v1, %s5445_s29 }
 0x4cb   : > { %4257 = vst.msk [vmem:[#allocation2 + $0x38] sm:$0xff] %vm2035_vm9, %v4169_v21  ;;  %v3923_v21 = vld [vmem:[#allocation3 + $0x159] sm:$0xff] }
 0x4cc   : > { %3235 = vrot.lane.b32.xlu0 %v7022_v15, %s5444_s28  ;;  %v3789_v22 = vpop.permute.xlu1 %3788 }
 0x4cd   : > { %3875 = vst.msk [vmem:[#allocation2 + $0x48] sm:$0xff] %vm1601_vm7, %v3789_v22 }
 0x4ce   : > { %v3787_v47 = vpop.permute.xlu0 %3786  ;;  %4190 = vrot.lane.b32.xlu1 %v4108_v29, %s5449_s22 }
 0x4cf   : > { %3874 = vst.msk [vmem:[#allocation2 + $0x40] sm:$0xff] %vm1601_vm7, %v3787_v47 }
 0x4d0   : > { %4000 = vrot.lane.b32.xlu0 %v3917_v8, %s5448_s17  ;;  %v3406_v9 = vpop.permute.xlu1 %3405 }
 0x4d1   : > { %3491 = vst.msk [vmem:[#allocation2 + $0x50] sm:$0xff] %vm1166_vm4, %v3406_v9 }
 0x4d2   : > { %v3979_v61 = vpop.permute.xlu0 %3978  ;;  %v4289_v34 = vld [vmem:[#allocation2 + $0x38] sm:$0xff]  ;;  %3617 = vrot.lane.b32.xlu1 %v4108_v29, %s5446_s30 }
 0x4d3   : > { %4066 = vst.msk [vmem:[#allocation2 + $0x40] sm:$0xff] %vm1818_vm8, %v3979_v61  ;;  %5331 = vmatmul.mubr.msk.f32.gmra.mrb[6].mxu1 %vm8051_vm11, %v4289_v34  ;;  %v3540_v61 = vld [vmem:[#allocation3 + $0x15a] sm:$0xff]  ;;  %vm8059_vm11 = vmmov %vm8044_vm1 }
 0x4d4   : > { %3427 = vrot.lane.b32.xlu0 %v3917_v8, %s5445_s29  ;;  %v4171_v15 = vpop.permute.xlu1 %4170 }
 0x4d5   : > { %4258 = vst.msk [vmem:[#allocation2 + $0x40] sm:$0xff] %vm2035_vm9, %v4171_v15 }
 0x4d6   : > { %v3981_v43 = vpop.permute.xlu0 %3980  ;;  %3619 = vrot.lane.b32.xlu1 %v3534_v57, %s5446_s30 }
 0x4d7   : > { %4067 = vst.msk [vmem:[#allocation2 + $0x48] sm:$0xff] %vm1818_vm8, %v3981_v43  ;;  %v3157_v43 = vld [vmem:[#allocation3 + $0x168] sm:$0xff] }
 0x4d8   : > { %4192 = vrot.lane.b32.xlu0 %v3534_v57, %s5449_s22  ;;  %v3598_v60 = vpop.permute.xlu1 %3597 }
 0x4d9   : > { %3683 = vst.msk [vmem:[#allocation2 + $0x50] sm:$0xff] %vm1383_vm5, %v3598_v60 }
 0x4da   : > { %v3408_v55 = vpop.permute.xlu0 %3407  ;;  %3237 = vrot.lane.b32.xlu1 %v7045_v2, %s5444_s28 }
 0x4db   : > { %3492 = vst.msk [vmem:[#allocation2 + $0x58] sm:$0xff] %vm1166_vm4, %v3408_v55 }
 0x4dc   : > { %3810 = vrot.lane.b32.xlu0 %v7045_v2, %s5447_s6  ;;  %v3600_v6 = vpop.permute.xlu1 %3599  ;;  %v4290_v38 = vld [vmem:[#allocation2 + $0x40] sm:$0xff]  ;;  %v3152_v2 = vld [vmem:[#allocation3 + $0x128] sm:$0xff] }
 0x4dd   : > { %3684 = vst.msk [vmem:[#allocation2 + $0x58] sm:$0xff] %vm1383_vm5, %v3600_v6  ;;  %5333 = vmatprep.mubr.msk.f32.mxu1 %vm8052_vm13, %v4290_v38  ;;  %v3924_v6 = vld [vmem:[#allocation3 + $0x169] sm:$0xff]  ;;  %vm8060_vm13 = vmmov %vm8044_vm1 }
 0x4de   : > { %v4173_v59 = vpop.permute.xlu0 %4172  ;;  %4002 = vrot.lane.b32.xlu1 %v3918_v5, %s5448_s17  ;;  %v3733_v38 = vld [vmem:[#allocation3 + $0x170] sm:$0xff] }
 0x4df   : > { %4259 = vst.msk [vmem:[#allocation2 + $0x48] sm:$0xff] %vm2035_vm9, %v4173_v59 }
 0x4e0   : > { %3812 = vrot.lane.b32.xlu0 %v7038_v0, %s5447_s6  ;;  %v3793_v44 = vpop.permute.xlu1 %3792  ;;  %v3919_v0 = vld [vmem:[#allocation3 + $0x129] sm:$0xff] }
 0x4e1   : > { %3877 = vst.msk [vmem:[#allocation2 + $0x58] sm:$0xff] %vm1601_vm7, %v3793_v44 }
 0x4e2   : > { %v3791_v56 = vpop.permute.xlu0 %3790  ;;  %3429 = vrot.lane.b32.xlu1 %v3918_v5, %s5445_s29 }
 0x4e3   : > { %3876 = vst.msk [vmem:[#allocation2 + $0x50] sm:$0xff] %vm1601_vm7, %v3791_v56 }
 0x4e4   : > { %3239 = vrot.lane.b32.xlu0 %v3152_v2, %s5444_s28  ;;  %v3410_v51 = vpop.permute.xlu1 %3409  ;;  %v4116_v2 = vld [vmem:[#allocation3 + $0x16a] sm:$0xff] }
 0x4e5   : > { %3493 = vst.msk [vmem:[#allocation2 + $0x60] sm:$0xff] %vm1166_vm4, %v3410_v51  ;;  %v3925_v51 = vld [vmem:[#allocation3 + $0x171] sm:$0xff] }
 0x4e6   : > { %v3983_v52 = vpop.permute.xlu0 %3982  ;;  %v4291_v24 = vld [vmem:[#allocation2 + $0x48] sm:$0xff]  ;;  %4194 = vrot.lane.b32.xlu1 %v4110_v53, %s5449_s22 }
 0x4e7   : > { %4068 = vst.msk [vmem:[#allocation2 + $0x50] sm:$0xff] %vm1818_vm8, %v3983_v52  ;;  %5334 = vmatmul.mubr.msk.f32.gmra.mrb[8].mxu1 %vm8044_vm1, %v4291_v24 }
 0x4e8   : > { %4004 = vrot.lane.b32.xlu0 %v3919_v0, %s5448_s17  ;;  %v4175_v35 = vpop.permute.xlu1 %4174 }
 0x4e9   : > { %4260 = vst.msk [vmem:[#allocation2 + $0x50] sm:$0xff] %vm2035_vm9, %v4175_v35 }
 0x4ea   : > { %v3985_v41 = vpop.permute.xlu0 %3984  ;;  %3621 = vrot.lane.b32.xlu1 %v4110_v53, %s5446_s30 }
 0x4eb   : > { %4069 = vst.msk [vmem:[#allocation2 + $0x58] sm:$0xff] %vm1818_vm8, %v3985_v41  ;;  %v3542_v41 = vld [vmem:[#allocation3 + $0x172] sm:$0xff] }
 0x4ec   : > { %3431 = vrot.lane.b32.xlu0 %v3919_v0, %s5445_s29  ;;  %v3602_v62 = vpop.permute.xlu1 %3601 }
 0x4ed   : > { %3685 = vst.msk [vmem:[#allocation2 + $0x60] sm:$0xff] %vm1383_vm5, %v3602_v62 }
 0x4ee   : > { %v3412_v54 = vpop.permute.xlu0 %3411  ;;  %3623 = vrot.lane.b32.xlu1 %v3536_v16, %s5446_s30 }
 0x4ef   : > { %3494 = vst.msk [vmem:[#allocation2 + $0x68] sm:$0xff] %vm1166_vm4, %v3412_v54 }
 0x4f0   : > { %4196 = vrot.lane.b32.xlu0 %v3536_v16, %s5449_s22  ;;  %v3604_v63 = vpop.permute.xlu1 %3603  ;;  %v4292_v14 = vld [vmem:[#allocation2 + $0x50] sm:$0xff]  ;;  %v3159_v16 = vld [vmem:[#allocation3 + $0x180] sm:$0xff] }
 0x4f1   : > { %3686 = vst.msk [vmem:[#allocation2 + $0x68] sm:$0xff] %vm1383_vm5, %v3604_v63  ;;  %5336 = vmatprep.mubr.msk.f32.mxu1 %vm8053_vm2, %v4292_v14  ;;  %vm8061_vm2 = vmmov %vm8044_vm1 }
 0x4f2   : > { %v4177_v39 = vpop.permute.xlu0 %4176  ;;  %3241 = vrot.lane.b32.xlu1 %v3153_v40, %s5444_s28 }
 0x4f3   : > { %4261 = vst.msk [vmem:[#allocation2 + $0x58] sm:$0xff] %vm2035_vm9, %v4177_v39 }
 0x4f4   : > { %3814 = vrot.lane.b32.xlu0 %v3153_v40, %s5447_s6  ;;  %v3797_v19 = vpop.permute.xlu1 %3796  ;;  %v3926_v40 = vld [vmem:[#allocation3 + $0x181] sm:$0xff] }
 0x4f5   : > { %3879 = vst.msk [vmem:[#allocation2 + $0x68] sm:$0xff] %vm1601_vm7, %v3797_v19  ;;  %v3735_v19 = vld [vmem:[#allocation3 + $0x188] sm:$0xff] }
 0x4f6   : > { %v3795_v25 = vpop.permute.xlu0 %3794  ;;  %4006 = vrot.lane.b32.xlu1 %v3920_v11, %s5448_s17 }
 0x4f7   : > { %3878 = vst.msk [vmem:[#allocation2 + $0x60] sm:$0xff] %vm1601_vm7, %v3795_v25 }
 0x4f8   : > { %3816 = vrot.lane.b32.xlu0 %v3729_v13, %s5447_s6  ;;  %v3414_v12 = vpop.permute.xlu1 %3413 }
 0x4f9   : > { %3495 = vst.msk [vmem:[#allocation2 + $0x70] sm:$0xff] %vm1166_vm4, %v3414_v12 }
 0x4fa   : > { %v3987_v23 = vpop.permute.xlu0 %3986  ;;  %v4293_v27 = vld [vmem:[#allocation2 + $0x58] sm:$0xff]  ;;  %3433 = vrot.lane.b32.xlu1 %v3920_v11, %s5445_s29 }
 0x4fb   : > { %4070 = vst.msk [vmem:[#allocation2 + $0x60] sm:$0xff] %vm1818_vm8, %v3987_v23  ;;  %5337 = vmatmul.mubr.msk.f32.gmra.mrb[10].mxu1 %vm8054_vm6, %v4293_v27  ;;  %v4118_v23 = vld [vmem:[#allocation3 + $0x182] sm:$0xff]  ;;  %vm8062_vm6 = vmmov %vm8044_vm1 }
 0x4fc   : > { %3243 = vrot.lane.b32.xlu0 %v3729_v13, %s5444_s28  ;;  %v4179_v36 = vpop.permute.xlu1 %4178  ;;  %v3927_v27 = vld [vmem:[#allocation3 + $0x189] sm:$0xff] }
 0x4fd   : > { %4262 = vst.msk [vmem:[#allocation2 + $0x60] sm:$0xff] %vm2035_vm9, %v4179_v36 }
 0x4fe   : > { %v3989_v50 = vpop.permute.xlu0 %3988  ;;  %4198 = vrot.lane.b32.xlu1 %v4112_v49, %s5449_s22 }
 0x4ff   : > { %4071 = vst.msk [vmem:[#allocation2 + $0x68] sm:$0xff] %vm1818_vm8, %v3989_v50 }
 0x500   : > { %4008 = vrot.lane.b32.xlu0 %v3921_v20, %s5448_s17  ;;  %v3606_v48 = vpop.permute.xlu1 %3605 }
 0x501   : > { %3687 = vst.msk [vmem:[#allocation2 + $0x70] sm:$0xff] %vm1383_vm5, %v3606_v48 }
 0x502   : > { %v3416_v7 = vpop.permute.xlu0 %3415  ;;  %3625 = vrot.lane.b32.xlu1 %v4112_v49, %s5446_s30 }
 0x503   : > { %3496 = vst.msk [vmem:[#allocation2 + $0x78] sm:$0xff] %vm1166_vm4, %v3416_v7  ;;  %v3544_v7 = vld [vmem:[#allocation3 + $0x18a] sm:$0xff] }
 0x504   : > { %3435 = vrot.lane.b32.xlu0 %v3921_v20, %s5445_s29  ;;  %v3608_v33 = vpop.permute.xlu1 %3607  ;;  %v4294_v42 = vld [vmem:[#allocation2 + $0x60] sm:$0xff] }
 0x505   : > { %3688 = vst.msk [vmem:[#allocation2 + $0x78] sm:$0xff] %vm1383_vm5, %v3608_v33  ;;  %5339 = vmatprep.mubr.msk.f32.mxu1 %vm8055_vm12, %v4294_v42  ;;  %vm8063_vm12 = vmmov %vm8044_vm1 }
 0x506   : > { %v4181_v10 = vpop.permute.xlu0 %4180  ;;  %3627 = vrot.lane.b32.xlu1 %v3538_v28, %s5446_s30 }
 0x507   : > { %4263 = vst.msk [vmem:[#allocation2 + $0x68] sm:$0xff] %vm2035_vm9, %v4181_v10  ;;  %v3737_v10 = vld [vmem:[#allocation3 + $0x1a0] sm:$0xff] }
 0x508   : > { %4200 = vrot.lane.b32.xlu0 %v3538_v28, %s5449_s22  ;;  %v3801_v46 = vpop.permute.xlu1 %3800 }
 0x509   : > { %3881 = vst.msk [vmem:[#allocation2 + $0x78] sm:$0xff] %vm1601_vm7, %v3801_v46  ;;  %v3736_v46 = vld [vmem:[#allocation3 + $0x198] sm:$0xff] }
 0x50a   : > { %v3799_v17 = vpop.permute.xlu0 %3798  ;;  %3245 = vrot.lane.b32.xlu1 %v3155_v30, %s5444_s28 }
 0x50b   : > { %3880 = vst.msk [vmem:[#allocation2 + $0x70] sm:$0xff] %vm1601_vm7, %v3799_v17 }
 0x50c   : > { %3818 = vrot.lane.b32.xlu0 %v3155_v30, %s5447_s6  ;;  %v3418_v58 = vpop.permute.xlu1 %3417 }
 0x50d   : > { %3497 = vst.msk [vmem:[#allocation2 + $0x80] sm:$0xff] %vm1166_vm4, %v3418_v58  ;;  %v3929_v58 = vld [vmem:[#allocation3 + $0x1a1] sm:$0xff] }
 0x50e   : > { %v3991_v26 = vpop.permute.xlu0 %3990  ;;  %v4295_v4 = vld [vmem:[#allocation2 + $0x68] sm:$0xff]  ;;  %4010 = vrot.lane.b32.xlu1 %v3922_v18, %s5448_s17 }
 0x50f   : > { %4072 = vst.msk [vmem:[#allocation2 + $0x70] sm:$0xff] %vm1818_vm8, %v3991_v26  ;;  %5340 = vmatmul.mubr.msk.f32.gmra.mrb[12].mxu1 %vm8056_vm14, %v4295_v4  ;;  %v3928_v26 = vld [vmem:[#allocation3 + $0x199] sm:$0xff]  ;;  %vm8064_vm14 = vmmov %vm8044_vm1 }
 0x510   : > { %3820 = vrot.lane.b32.xlu0 %v3731_v3, %s5447_s6  ;;  %v4183_v45 = vpop.permute.xlu1 %4182 }
 0x511   : > { %4264 = vst.msk [vmem:[#allocation2 + $0x70] sm:$0xff] %vm2035_vm9, %v4183_v45  ;;  %v4120_v45 = vld [vmem:[#allocation3 + $0x19a] sm:$0xff] }
 0x512   : > { %v3993_v31 = vpop.permute.xlu0 %3992  ;;  %3437 = vrot.lane.b32.xlu1 %v3922_v18, %s5445_s29 }
 0x513   : > { %4073 = vst.msk [vmem:[#allocation2 + $0x78] sm:$0xff] %vm1818_vm8, %v3993_v31 }
 0x514   : > { %3247 = vrot.lane.b32.xlu0 %v3731_v3, %s5444_s28  ;;  %v3610_v1 = vpop.permute.xlu1 %3609  ;;  %v4121_v3 = vld [vmem:[#allocation3 + $0x1a2] sm:$0xff] }
 0x515   : > { %3689 = vst.msk [vmem:[#allocation2 + $0x80] sm:$0xff] %vm1383_vm5, %v3610_v1 }
 0x516   : > { %v3420_v37 = vpop.permute.xlu0 %3419  ;;  %4202 = vrot.lane.b32.xlu1 %v4114_v32, %s5449_s22 }
 0x517   : > { %3498 = vst.msk [vmem:[#allocation2 + $0x88] sm:$0xff] %vm1166_vm4, %v3420_v37 }
 0x518   : > { %4012 = vrot.lane.b32.xlu0 %v3923_v21, %s5448_s17  ;;  %v3612_v22 = vpop.permute.xlu1 %3611  ;;  %v4296_v47 = vld [vmem:[#allocation2 + $0x70] sm:$0xff] }
 0x519   : > { %3690 = vst.msk [vmem:[#allocation2 + $0x88] sm:$0xff] %vm1383_vm5, %v3612_v22  ;;  %5342 = vmatprep.mubr.msk.f32.mxu1 %vm8057_vm15, %v4296_v47  ;;  %vm8065_vm15 = vmmov %vm8044_vm1 }
 0x51a   : > { %v4185_v29 = vpop.permute.xlu0 %4184  ;;  %3629 = vrot.lane.b32.xlu1 %v4114_v32, %s5446_s30 }
 0x51b   : > { %4265 = vst.msk [vmem:[#allocation2 + $0x78] sm:$0xff] %vm2035_vm9, %v4185_v29  ;;  %v7703_v29 = vld [vmem:[%s7915_s4] ss:$0 sm:$0xff] }
 0x51c   : > { %3439 = vrot.lane.b32.xlu0 %v3923_v21, %s5445_s29  ;;  %v3230_v8 = vpop.permute.xlu1 %3229 }
 0x51d   : > { %3307 = vst.msk [vmem:[#allocation2 + $0x90] sm:$0xff] %vm949_vm3, %v3230_v8 }
 0x51e   : > { %v3803_v9 = vpop.permute.xlu0 %3802  ;;  %3631 = vrot.lane.b32.xlu1 %v3540_v61, %s5446_s30 }
 0x51f   : > { %3882 = vst.msk [vmem:[#allocation2 + $0x80] sm:$0xff] %vm1601_vm7, %v3803_v9 }
 0x520   : > { %4204 = vrot.lane.b32.xlu0 %v3540_v61, %s5449_s22  ;;  %v3995_v34 = vpop.permute.xlu1 %3994 }
 0x521   : > { %4074 = vst.msk [vmem:[#allocation2 + $0x80] sm:$0xff] %vm1818_vm8, %v3995_v34  ;;  %v5135_v34 = vld [vmem:[%s5504_s25 + $0x39] sm:$0xff] }
 0x522   : > { %v3805_v15 = vpop.permute.xlu0 %3804  ;;  %v4297_v57 = vld [vmem:[#allocation2 + $0x78] sm:$0xff]  ;;  %3249 = vrot.lane.b32.xlu1 %v3157_v43, %s5444_s28 }
 0x523   : > { %3883 = vst.msk [vmem:[#allocation2 + $0x88] sm:$0xff] %vm1601_vm7, %v3805_v15  ;;  %5343 = vmatmul.mubr.msk.f32.gmra.mrb[14].mxu1 %vm8058_vm10, %v4297_v57  ;;  %vm8066_vm10 = vmmov %vm8044_vm1 }
 0x524   : > { %3822 = vrot.lane.b32.xlu0 %v3157_v43, %s5447_s6  ;;  %v3422_v60 = vpop.permute.xlu1 %3421 }
 0x525   : > { %3499 = vst.msk [vmem:[#allocation2 + $0x90] sm:$0xff] %vm1166_vm4, %v3422_v60  ;;  %v5134_v60 = vld [vmem:[%s5504_s25 + $0x31] sm:$0xff] }
 0x526   : > { %v3232_v55 = vpop.permute.xlu0 %3231  ;;  %4014 = vrot.lane.b32.xlu1 %v3924_v6, %s5448_s17 }
 0x527   : > { %3308 = vst.msk [vmem:[#allocation2 + $0x98] sm:$0xff] %vm949_vm3, %v3232_v55 }
 0x528   : > { %3824 = vrot.lane.b32.xlu0 %v3733_v38, %s5447_s6  ;;  %v4187_v59 = vpop.permute.xlu1 %4186 }
 0x529   : > { %4266 = vst.msk [vmem:[#allocation2 + $0x80] sm:$0xff] %vm2035_vm9, %v4187_v59 }
 0x52a   : > { %v3997_v5 = vpop.permute.xlu0 %3996  ;;  %3441 = vrot.lane.b32.xlu1 %v3924_v6, %s5445_s29 }
 0x52b   : > { %4075 = vst.msk [vmem:[#allocation2 + $0x88] sm:$0xff] %vm1818_vm8, %v3997_v5 }
 0x52c   : > { %3251 = vrot.lane.b32.xlu0 %v3733_v38, %s5444_s28  ;;  %v3614_v44 = vpop.permute.xlu1 %3613 }
 0x52d   : > { %3691 = vst.msk [vmem:[#allocation2 + $0x90] sm:$0xff] %vm1383_vm5, %v3614_v44 }
 0x52e   : > { %v3424_v56 = vpop.permute.xlu0 %3423  ;;  %4206 = vrot.lane.b32.xlu1 %v4116_v2, %s5449_s22 }
 0x52f   : > { %3500 = vst.msk [vmem:[#allocation2 + $0x98] sm:$0xff] %vm1166_vm4, %v3424_v56 }
 0x530   : > { %4016 = vrot.lane.b32.xlu0 %v3925_v51, %s5448_s17  ;;  %v3616_v52 = vpop.permute.xlu1 %3615  ;;  %v4298_v53 = vld [vmem:[#allocation2 + $0x80] sm:$0xff] }
 0x531   : > { %3692 = vst.msk [vmem:[#allocation2 + $0x98] sm:$0xff] %vm1383_vm5, %v3616_v52  ;;  %5345 = vmatprep.mubr.msk.f32.mxu1 %vm8059_vm11, %v4298_v53  ;;  %vm8067_vm11 = vmmov %vm8044_vm1 }
 0x532   : > { %v4189_v24 = vpop.permute.xlu0 %4188  ;;  %3633 = vrot.lane.b32.xlu1 %v4116_v2, %s5446_s30 }
 0x533   : > { %4267 = vst.msk [vmem:[#allocation2 + $0x88] sm:$0xff] %vm2035_vm9, %v4189_v24 }
 0x534   : > { %3443 = vrot.lane.b32.xlu0 %v3925_v51, %s5445_s29  ;;  %v3234_v0 = vpop.permute.xlu1 %3233 }
 0x535   : > { %3309 = vst.msk [vmem:[#allocation2 + $0xa0] sm:$0xff] %vm949_vm3, %v3234_v0 }
 0x536   : > { %v3807_v35 = vpop.permute.xlu0 %3806  ;;  %3635 = vrot.lane.b32.xlu1 %v3542_v41, %s5446_s30 }
 0x537   : > { %3884 = vst.msk [vmem:[#allocation2 + $0x90] sm:$0xff] %vm1601_vm7, %v3807_v35 }
 0x538   : > { %4208 = vrot.lane.b32.xlu0 %v3542_v41, %s5449_s22  ;;  %v3999_v62 = vpop.permute.xlu1 %3998 }
 0x539   : > { %4076 = vst.msk [vmem:[#allocation2 + $0x90] sm:$0xff] %vm1818_vm8, %v3999_v62  ;;  %v5137_v62 = vld [vmem:[%s5504_s25 + $0x51] sm:$0xff] }
 0x53a   : > { %v3809_v54 = vpop.permute.xlu0 %3808  ;;  %v4299_v63 = vld [vmem:[#allocation2 + $0x88] sm:$0xff]  ;;  %3253 = vrot.lane.b32.xlu1 %v3159_v16, %s5444_s28 }
 0x53b   : > { %3885 = vst.msk [vmem:[#allocation2 + $0x98] sm:$0xff] %vm1601_vm7, %v3809_v54  ;;  %5346 = vmatmul.mubr.msk.f32.gmra.mrb[16].mxu1 %vm8060_vm13, %v4299_v63  ;;  %v5136_v63 = vld [vmem:[%s5504_s25 + $0x49] sm:$0xff]  ;;  %vm8068_vm13 = vmmov %vm8044_vm1 }
 0x53c   : > { %3826 = vrot.lane.b32.xlu0 %v3159_v16, %s5447_s6  ;;  %v3426_v14 = vpop.permute.xlu1 %3425 }
 0x53d   : > { %3501 = vst.msk [vmem:[#allocation2 + $0xa0] sm:$0xff] %vm1166_vm4, %v3426_v14 }
 0x53e   : > { %v3236_v39 = vpop.permute.xlu0 %3235  ;;  %4018 = vrot.lane.b32.xlu1 %v3926_v40, %s5448_s17 }
 0x53f   : > { %3310 = vst.msk [vmem:[#allocation2 + $0xa8] sm:$0xff] %vm949_vm3, %v3236_v39 }
 0x540   : > { %3828 = vrot.lane.b32.xlu0 %v3735_v19, %s5447_s6  ;;  %v4191_v25 = vpop.permute.xlu1 %4190 }
 0x541   : > { %4268 = vst.msk [vmem:[#allocation2 + $0x90] sm:$0xff] %vm2035_vm9, %v4191_v25 }
 0x542   : > { %v4001_v11 = vpop.permute.xlu0 %4000  ;;  %3445 = vrot.lane.b32.xlu1 %v3926_v40, %s5445_s29 }
 0x543   : > { %4077 = vst.msk [vmem:[#allocation2 + $0x98] sm:$0xff] %vm1818_vm8, %v4001_v11 }
 0x544   : > { %3255 = vrot.lane.b32.xlu0 %v3735_v19, %s5444_s28  ;;  %v3618_v13 = vpop.permute.xlu1 %3617 }
 0x545   : > { %3693 = vst.msk [vmem:[#allocation2 + $0xa0] sm:$0xff] %vm1383_vm5, %v3618_v13 }
 0x546   : > { %v3428_v12 = vpop.permute.xlu0 %3427  ;;  %4210 = vrot.lane.b32.xlu1 %v4118_v23, %s5449_s22 }
 0x547   : > { %3502 = vst.msk [vmem:[#allocation2 + $0xa8] sm:$0xff] %vm1166_vm4, %v3428_v12 }
 0x548   : > { %4020 = vrot.lane.b32.xlu0 %v3927_v27, %s5448_s17  ;;  %v3620_v36 = vpop.permute.xlu1 %3619  ;;  %v4300_v50 = vld [vmem:[#allocation2 + $0x90] sm:$0xff] }
 0x549   : > { %3694 = vst.msk [vmem:[#allocation2 + $0xa8] sm:$0xff] %vm1383_vm5, %v3620_v36  ;;  %5348 = vmatprep.mubr.msk.f32.mxu1 %vm8044_vm1, %v4300_v50 }
 0x54a   : > { %v4193_v49 = vpop.permute.xlu0 %4192  ;;  %3637 = vrot.lane.b32.xlu1 %v4118_v23, %s5446_s30 }
 0x54b   : > { %4269 = vst.msk [vmem:[#allocation2 + $0x98] sm:$0xff] %vm2035_vm9, %v4193_v49 }
 0x54c   : > { %3447 = vrot.lane.b32.xlu0 %v3927_v27, %s5445_s29  ;;  %v3238_v20 = vpop.permute.xlu1 %3237 }
 0x54d   : > { %3311 = vst.msk [vmem:[#allocation2 + $0xb0] sm:$0xff] %vm949_vm3, %v3238_v20 }
 0x54e   : > { %v3811_v48 = vpop.permute.xlu0 %3810  ;;  %3639 = vrot.lane.b32.xlu1 %v3544_v7, %s5446_s30  ;;  %s5168_s30 = sshll.u32 %s8078_s18, 8 }
 0x54f   : > { %3886 = vst.msk [vmem:[#allocation2 + $0xa0] sm:$0xff] %vm1601_vm7, %v3811_v48  ;;  %s7715_s16 = scalar_lea.vmem %s7916_s5, %s5168_s30 }
 0x550   : > { %4212 = vrot.lane.b32.xlu0 %v3544_v7, %s5449_s22  ;;  %v4003_v33 = vpop.permute.xlu1 %4002 }
 0x551   : > { %4078 = vst.msk [vmem:[#allocation2 + $0xa0] sm:$0xff] %vm1818_vm8, %v4003_v33  ;;  %v5139_v33 = vld [vmem:[%s5504_s25 + $0x69] sm:$0xff] }
 0x552   : > { %v3813_v42 = vpop.permute.xlu0 %3812  ;;  %v4301_v28 = vld [vmem:[#allocation2 + $0x98] sm:$0xff]  ;;  %3832 = vrot.lane.b32.xlu1 %v3737_v10, %s5447_s6 }
 0x553   : > { %3887 = vst.msk [vmem:[#allocation2 + $0xa8] sm:$0xff] %vm1601_vm7, %v3813_v42  ;;  %5349 = vmatmul.mubr.msk.f32.gmra.mrb[18].mxu1 %vm8061_vm2, %v4301_v28  ;;  %v5138_v28 = vld [vmem:[%s5504_s25 + $0x61] sm:$0xff] }
 0x554   : > { %3830 = vrot.lane.b32.xlu0 %v3736_v46, %s5447_s6  ;;  %v3430_v17 = vpop.permute.xlu1 %3429 }
 0x555   : > { %3503 = vst.msk [vmem:[#allocation2 + $0xb0] sm:$0xff] %vm1166_vm4, %v3430_v17 }
 0x556   : > { %v3240_v30 = vpop.permute.xlu0 %3239  ;;  %4024 = vrot.lane.b32.xlu1 %v3929_v58, %s5448_s17 }
 0x557   : > { %3312 = vst.msk [vmem:[#allocation2 + $0xb8] sm:$0xff] %vm949_vm3, %v3240_v30 }
 0x558   : > { %4022 = vrot.lane.b32.xlu0 %v3928_v26, %s5448_s17  ;;  %v4195_v18 = vpop.permute.xlu1 %4194 }
 0x559   : > { %4270 = vst.msk [vmem:[#allocation2 + $0xa0] sm:$0xff] %vm2035_vm9, %v4195_v18 }
 0x55a   : > { %v4005_v4 = vpop.permute.xlu0 %4004  ;;  %4216 = vrot.lane.b32.xlu1 %v4121_v3, %s5449_s22 }
 0x55b   : > { %4079 = vst.msk [vmem:[#allocation2 + $0xa8] sm:$0xff] %vm1818_vm8, %v4005_v4 }
 0x55c   : > { %4214 = vrot.lane.b32.xlu0 %v4120_v45, %s5449_s22  ;;  %v3622_v31 = vpop.permute.xlu1 %3621 }
 0x55d   : > { %3695 = vst.msk [vmem:[#allocation2 + $0xb0] sm:$0xff] %vm1383_vm5, %v3622_v31 }
 0x55e   : > { %v3432_v1 = vpop.permute.xlu0 %3431 }
 0x55f   : > { %3504 = vst.msk [vmem:[#allocation2 + $0xb8] sm:$0xff] %vm1166_vm4, %v3432_v1 }
 0x560   : > { %v3624_v37 = vpop.permute.xlu1 %3623  ;;  %v4302_v32 = vld [vmem:[#allocation2 + $0xa0] sm:$0xff] }
 0x561   : > { %3696 = vst.msk [vmem:[#allocation2 + $0xb8] sm:$0xff] %vm1383_vm5, %v3624_v37  ;;  %5351 = vmatprep.mubr.msk.f32.mxu1 %vm8062_vm6, %v4302_v32 }
 0x562   : > { %v4197_v21 = vpop.permute.xlu0 %4196 }
 0x563   : > { %4271 = vst.msk [vmem:[#allocation2 + $0xa8] sm:$0xff] %vm2035_vm9, %v4197_v21 }
 0x564   : > { %v3242_v22 = vpop.permute.xlu1 %3241 }
 0x565   : > { %3313 = vst.msk [vmem:[#allocation2 + $0xc0] sm:$0xff] %vm949_vm3, %v3242_v22 }
 0x566   : > { %v3815_v47 = vpop.permute.xlu0 %3814 }
 0x567   : > { %3888 = vst.msk [vmem:[#allocation2 + $0xb0] sm:$0xff] %vm1601_vm7, %v3815_v47  ;;  %v5141_v47 = vld [vmem:[%s5504_s25 + $0x81] sm:$0xff] }
 0x568   : > { %v4007_v8 = vpop.permute.xlu1 %4006 }
 0x569   : > { %4080 = vst.msk [vmem:[#allocation2 + $0xb0] sm:$0xff] %vm1818_vm8, %v4007_v8 }
 0x56a   : > { %v3817_v9 = vpop.permute.xlu0 %3816  ;;  %v5323_v61 = vpop.f32.mrb[0].mxu1  ;;  %v4303_v15 = vld [vmem:[#allocation2 + $0xa8] sm:$0xff] }
 0x56b   : > { %3889 = vst.msk [vmem:[#allocation2 + $0xb8] sm:$0xff] %vm1601_vm7, %v3817_v9  ;;  %v4497_v43 = vadd.f32 %v5323_v61, %v7703_v29  ;;  %v4491_v57 = vpop.f32.mrb[1].mxu1  ;;  %5352 = vmatmul.mubr.msk.f32.gmra.mrb[20].mxu1 %vm8063_vm12, %v4303_v15  ;;  %v5140_v61 = vld [vmem:[%s5504_s25 + $0x79] sm:$0xff] }
 0x56c   : > { %v4492_v55 = vadd.f32 %v7703_v29, %v4491_v57  ;;  %v3434_v38 = vpop.permute.xlu1 %3433 }
 0x56d   : > { %v4683_v6 = vadd.f32 %v5135_v34, %v4497_v43  ;;  %3505 = vst.msk [vmem:[#allocation2 + $0xc0] sm:$0xff] %vm1166_vm4, %v3434_v38 }
 0x56e   : > { %v4682_v59 = vadd.f32 %v5134_v60, %v4492_v55  ;;  %v3244_v5 = vpop.permute.xlu0 %3243 }
 0x56f   : > { %4715 = vst.msk [vmem:[%s7715_s16 + $0x8] sm:$0xff] %vm297_vm0, %v4683_v6 }
 0x570   : > { %3314 = vst.msk [vmem:[#allocation2 + $0xc8] sm:$0xff] %vm949_vm3, %v3244_v5  ;;  %v4199_v44 = vpop.permute.xlu1 %4198 }
 0x571   : > { %4714 = vst.msk [vmem:[%s7715_s16] sm:$0xff] %vm297_vm0, %v4682_v59 }
 0x572   : > { %4272 = vst.msk [vmem:[#allocation2 + $0xb0] sm:$0xff] %vm2035_vm9, %v4199_v44  ;;  %v4009_v56 = vpop.permute.xlu0 %4008 }
 0x573   : > { %4081 = vst.msk [vmem:[#allocation2 + $0xb8] sm:$0xff] %vm1818_vm8, %v4009_v56 }
 0x574   : > { %v3626_v2 = vpop.permute.xlu1 %3625 }
 0x575   : > { %3697 = vst.msk [vmem:[#allocation2 + $0xc0] sm:$0xff] %vm1383_vm5, %v3626_v2 }
 0x576   : > { %v3436_v51 = vpop.permute.xlu0 %3435 }
 0x577   : > { %3506 = vst.msk [vmem:[#allocation2 + $0xc8] sm:$0xff] %vm1166_vm4, %v3436_v51 }
 0x578   : > { %v3628_v52 = vpop.permute.xlu1 %3627 }
 0x579   : > { %v4304_v53 = vld [vmem:[#allocation2 + $0xb0] sm:$0xff]  ;;  %3698 = vst.msk [vmem:[#allocation2 + $0xc8] sm:$0xff] %vm1383_vm5, %v3628_v52 }
 0x57a   : > { %v4201_v24 = vpop.permute.xlu0 %4200  ;;  %5354 = vmatprep.mubr.msk.f32.mxu1 %vm8064_vm14, %v4304_v53 }
 0x57b   : > { %4273 = vst.msk [vmem:[#allocation2 + $0xb8] sm:$0xff] %vm2035_vm9, %v4201_v24  ;;  %v5143_v24 = vld [vmem:[%s5504_s25 + $0x99] sm:$0xff] }
 0x57c   : > { %v3246_v0 = vpop.permute.xlu1 %3245 }
 0x57d   : > { %3315 = vst.msk [vmem:[#allocation2 + $0xd0] sm:$0xff] %vm949_vm3, %v3246_v0 }
 0x57e   : > { %v3819_v35 = vpop.permute.xlu0 %3818  ;;  %v5326_v41 = vpop.f32.mrb[2].mxu1 }
 0x57f   : > { %3890 = vst.msk [vmem:[#allocation2 + $0xc0] sm:$0xff] %vm1601_vm7, %v3819_v35  ;;  %v4507_v54 = vadd.f32 %v5326_v41, %v7703_v29  ;;  %v4501_v16 = vpop.f32.mrb[3].mxu1  ;;  %v5142_v41 = vld [vmem:[%s5504_s25 + $0x91] sm:$0xff] }
 0x580   : > { %v4502_v14 = vadd.f32 %v7703_v29, %v4501_v16  ;;  %v4011_v40 = vpop.permute.xlu1 %4010 }
 0x581   : > { %v4685_v39 = vadd.f32 %v5137_v62, %v4507_v54  ;;  %4082 = vst.msk [vmem:[#allocation2 + $0xc0] sm:$0xff] %vm1818_vm8, %v4011_v40 }
 0x582   : > { %v4684_v19 = vadd.f32 %v5136_v63, %v4502_v14  ;;  %v3821_v25 = vpop.permute.xlu0 %3820  ;;  %v4305_v11 = vld [vmem:[#allocation2 + $0xb8] sm:$0xff] }
 0x583   : > { %4717 = vst.msk [vmem:[%s7715_s16 + $0x18] sm:$0xff] %vm297_vm0, %v4685_v39  ;;  %5355 = vmatmul.mubr.msk.f32.gmra.mrb[22].mxu1 %vm8065_vm15, %v4305_v11 }
 0x584   : > { %3891 = vst.msk [vmem:[#allocation2 + $0xc8] sm:$0xff] %vm1601_vm7, %v3821_v25  ;;  %v3438_v13 = vpop.permute.xlu1 %3437 }
 0x585   : > { %4716 = vst.msk [vmem:[%s7715_s16 + $0x10] sm:$0xff] %vm297_vm0, %v4684_v19 }
 0x586   : > { %3507 = vst.msk [vmem:[#allocation2 + $0xd0] sm:$0xff] %vm1166_vm4, %v3438_v13  ;;  %v3248_v12 = vpop.permute.xlu0 %3247 }
 0x587   : > { %3316 = vst.msk [vmem:[#allocation2 + $0xd8] sm:$0xff] %vm949_vm3, %v3248_v12 }
 0x588   : > { %v4203_v23 = vpop.permute.xlu1 %4202 }
 0x589   : > { %4274 = vst.msk [vmem:[#allocation2 + $0xc0] sm:$0xff] %vm2035_vm9, %v4203_v23 }
 0x58a   : > { %v4013_v27 = vpop.permute.xlu0 %4012 }
 0x58b   : > { %4083 = vst.msk [vmem:[#allocation2 + $0xc8] sm:$0xff] %vm1818_vm8, %v4013_v27 }
 0x58c   : > { %v3630_v36 = vpop.permute.xlu1 %3629 }
 0x58d   : > { %3699 = vst.msk [vmem:[#allocation2 + $0xd0] sm:$0xff] %vm1383_vm5, %v3630_v36 }
 0x58e   : > { %v3440_v50 = vpop.permute.xlu0 %3439 }
 0x58f   : > { %3508 = vst.msk [vmem:[#allocation2 + $0xd8] sm:$0xff] %vm1166_vm4, %v3440_v50 }
 0x590   : > { %v3632_v49 = vpop.permute.xlu1 %3631  ;;  %v4306_v20 = vld [vmem:[#allocation2 + $0xc0] sm:$0xff] }
 0x591   : > { %3700 = vst.msk [vmem:[#allocation2 + $0xd8] sm:$0xff] %vm1383_vm5, %v3632_v49  ;;  %5357 = vmatprep.mubr.msk.f32.mxu1 %vm8066_vm10, %v4306_v20  ;;  %v5145_v49 = vld [vmem:[%s5504_s25 + $0xb1] sm:$0xff] }
 0x592   : > { %v4205_v48 = vpop.permute.xlu0 %4204  ;;  %v5329_v7 = vpop.f32.mrb[4].mxu1 }
 0x593   : > { %4275 = vst.msk [vmem:[#allocation2 + $0xc8] sm:$0xff] %vm2035_vm9, %v4205_v48  ;;  %v4517_v42 = vadd.f32 %v5329_v7, %v7703_v29  ;;  %v4511_v10 = vpop.f32.mrb[5].mxu1  ;;  %v5144_v7 = vld [vmem:[%s5504_s25 + $0xa9] sm:$0xff] }
 0x594   : > { %v4512_v46 = vadd.f32 %v7703_v29, %v4511_v10  ;;  %v3250_v30 = vpop.permute.xlu1 %3249 }
 0x595   : > { %v4687_v17 = vadd.f32 %v5139_v33, %v4517_v42  ;;  %3317 = vst.msk [vmem:[#allocation2 + $0xe0] sm:$0xff] %vm949_vm3, %v3250_v30  ;;  %v5147_v30 = vld [vmem:[%s5504_s25 + $0xc9] sm:$0xff] }
 0x596   : > { %v4686_v58 = vadd.f32 %v5138_v28, %v4512_v46  ;;  %v3823_v26 = vpop.permute.xlu0 %3822 }
 0x597   : > { %4719 = vst.msk [vmem:[%s7715_s16 + $0x28] sm:$0xff] %vm297_vm0, %v4687_v17 }
 0x598   : > { %3892 = vst.msk [vmem:[#allocation2 + $0xd0] sm:$0xff] %vm1601_vm7, %v3823_v26  ;;  %v4015_v18 = vpop.permute.xlu1 %4014 }
 0x599   : > { %4718 = vst.msk [vmem:[%s7715_s16 + $0x20] sm:$0xff] %vm297_vm0, %v4686_v58 }
 0x59a   : > { %4084 = vst.msk [vmem:[#allocation2 + $0xd0] sm:$0xff] %vm1818_vm8, %v4015_v18  ;;  %v3825_v4 = vpop.permute.xlu0 %3824  ;;  %v4307_v3 = vld [vmem:[#allocation2 + $0xc8] sm:$0xff] }
 0x59b   : > { %3893 = vst.msk [vmem:[#allocation2 + $0xd8] sm:$0xff] %vm1601_vm7, %v3825_v4  ;;  %5358 = vmatmul.mubr.msk.f32.gmra.mrb[24].mxu1 %vm8067_vm11, %v4307_v3  ;;  %v5146_v18 = vld [vmem:[%s5504_s25 + $0xc1] sm:$0xff] }
 0x59c   : > { %v3442_v45 = vpop.permute.xlu1 %3441 }
 0x59d   : > { %3509 = vst.msk [vmem:[#allocation2 + $0xe0] sm:$0xff] %vm1166_vm4, %v3442_v45 }
 0x59e   : > { %v3252_v31 = vpop.permute.xlu0 %3251 }
 0x59f   : > { %3318 = vst.msk [vmem:[#allocation2 + $0xe8] sm:$0xff] %vm949_vm3, %v3252_v31 }
 0x5a0   : > { %v4207_v1 = vpop.permute.xlu1 %4206 }
 0x5a1   : > { %4276 = vst.msk [vmem:[#allocation2 + $0xd0] sm:$0xff] %vm2035_vm9, %v4207_v1  ;;  %v5149_v1 = vld [vmem:[%s5504_s25 + $0xe1] sm:$0xff] }
 0x5a2   : > { %v4017_v37 = vpop.permute.xlu0 %4016 }
 0x5a3   : > { %4085 = vst.msk [vmem:[#allocation2 + $0xd8] sm:$0xff] %vm1818_vm8, %v4017_v37 }
 0x5a4   : > { %v3634_v32 = vpop.permute.xlu1 %3633 }
 0x5a5   : > { %3701 = vst.msk [vmem:[#allocation2 + $0xe0] sm:$0xff] %vm1383_vm5, %v3634_v32 }
 0x5a6   : > { %v3444_v21 = vpop.permute.xlu0 %3443  ;;  %v5332_v22 = vpop.f32.mrb[6].mxu1 }
 0x5a7   : > { %3510 = vst.msk [vmem:[#allocation2 + $0xe8] sm:$0xff] %vm1166_vm4, %v3444_v21  ;;  %v4527_v8 = vadd.f32 %v5332_v22, %v7703_v29  ;;  %v4521_v9 = vpop.f32.mrb[7].mxu1  ;;  %v5148_v21 = vld [vmem:[%s5504_s25 + $0xd9] sm:$0xff] }
 0x5a8   : > { %v4522_v34 = vadd.f32 %v7703_v29, %v4521_v9  ;;  %v3636_v43 = vpop.permute.xlu1 %3635  ;;  %v4308_v57 = vld [vmem:[#allocation2 + $0xd0] sm:$0xff] }
 0x5a9   : > { %v4689_v15 = vadd.f32 %v5141_v47, %v4527_v8  ;;  %3702 = vst.msk [vmem:[#allocation2 + $0xe8] sm:$0xff] %vm1383_vm5, %v3636_v43  ;;  %5360 = vmatprep.mubr.msk.f32.mxu1 %vm8068_vm13, %v4308_v57  ;;  %v5150_v43 = vld [vmem:[%s5504_s25 + $0xf1] sm:$0xff] }
 0x5aa   : > { %v4688_v60 = vadd.f32 %v5140_v61, %v4522_v34  ;;  %v4209_v55 = vpop.permute.xlu0 %4208  ;;  %v5151_v61 = vld [vmem:[%s5504_s25 + $0xf9] sm:$0xff] }
 0x5ab   : > { %4721 = vst.msk [vmem:[%s7715_s16 + $0x38] sm:$0xff] %vm297_vm0, %v4689_v15 }
 0x5ac   : > { %4277 = vst.msk [vmem:[#allocation2 + $0xd8] sm:$0xff] %vm2035_vm9, %v4209_v55  ;;  %v3254_v6 = vpop.permute.xlu1 %3253 }
 0x5ad   : > { %4720 = vst.msk [vmem:[%s7715_s16 + $0x30] sm:$0xff] %vm297_vm0, %v4688_v60 }
 0x5ae   : > { %3319 = vst.msk [vmem:[#allocation2 + $0xf0] sm:$0xff] %vm949_vm3, %v3254_v6  ;;  %v3827_v38 = vpop.permute.xlu0 %3826 }
 0x5af   : > { %3894 = vst.msk [vmem:[#allocation2 + $0xe0] sm:$0xff] %vm1601_vm7, %v3827_v38  ;;  %v5153_v38 = vld [vmem:[%s5504_s25 + $0x111] sm:$0xff] }
 0x5b0   : > { %v4019_v59 = vpop.permute.xlu1 %4018 }
 0x5b1   : > { %4086 = vst.msk [vmem:[#allocation2 + $0xe0] sm:$0xff] %vm1818_vm8, %v4019_v59 }
 0x5b2   : > { %v3829_v5 = vpop.permute.xlu0 %3828 }
 0x5b3   : > { %v4309_v44 = vld [vmem:[#allocation2 + $0xd8] sm:$0xff]  ;;  %3895 = vst.msk [vmem:[#allocation2 + $0xe8] sm:$0xff] %vm1601_vm7, %v3829_v5 }
 0x5b4   : > { %5361 = vmatmul.mubr.msk.f32.gmra.mrb[26].mxu1 %vm8044_vm1, %v4309_v44  ;;  %v3446_v56 = vpop.permute.xlu1 %3445  ;;  %v5152_v44 = vld [vmem:[%s5504_s25 + $0x109] sm:$0xff] }
 0x5b5   : > { %3511 = vst.msk [vmem:[#allocation2 + $0xf0] sm:$0xff] %vm1166_vm4, %v3446_v56 }
 0x5b6   : > { %v3256_v2 = vpop.permute.xlu0 %3255 }
 0x5b7   : > { %3320 = vst.msk [vmem:[#allocation2 + $0xf8] sm:$0xff] %vm949_vm3, %v3256_v2  ;;  %vm8069_vm3 = vmmov %vm8044_vm1 }
 0x5b8   : > { %v4211_v51 = vpop.permute.xlu1 %4210 }
 0x5b9   : > { %4278 = vst.msk [vmem:[#allocation2 + $0xe0] sm:$0xff] %vm2035_vm9, %v4211_v51 }
 0x5ba   : > { %v4021_v52 = vpop.permute.xlu0 %4020  ;;  %v5335_v53 = vpop.f32.mrb[8].mxu1 }
 0x5bb   : > { %4087 = vst.msk [vmem:[#allocation2 + $0xe8] sm:$0xff] %vm1818_vm8, %v4021_v52  ;;  %v4537_v0 = vadd.f32 %v5335_v53, %v7703_v29  ;;  %v4531_v35 = vpop.f32.mrb[9].mxu1  ;;  %v5155_v53 = vld [vmem:[%s5504_s25 + $0x129] sm:$0xff] }
 0x5bc   : > { %v4532_v62 = vadd.f32 %v7703_v29, %v4531_v35  ;;  %v3638_v16 = vpop.permute.xlu1 %3637  ;;  %v5154_v35 = vld [vmem:[%s5504_s25 + $0x121] sm:$0xff] }
 0x5bd   : > { %v4691_v54 = vadd.f32 %v5143_v24, %v4537_v0  ;;  %3703 = vst.msk [vmem:[#allocation2 + $0xf0] sm:$0xff] %vm1383_vm5, %v3638_v16 }
 0x5be   : > { %v4690_v63 = vadd.f32 %v5142_v41, %v4532_v62  ;;  %v3448_v14 = vpop.permute.xlu0 %3447 }
 0x5bf   : > { %4723 = vst.msk [vmem:[%s7715_s16 + $0x48] sm:$0xff] %vm297_vm0, %v4691_v54 }
 0x5c0   : > { %3512 = vst.msk [vmem:[#allocation2 + $0xf8] sm:$0xff] %vm1166_vm4, %v3448_v14  ;;  %v3640_v39 = vpop.permute.xlu1 %3639  ;;  %v4310_v40 = vld [vmem:[#allocation2 + $0xe0] sm:$0xff]  ;;  %vm8070_vm4 = vmmov %vm8044_vm1 }
 0x5c1   : > { %4722 = vst.msk [vmem:[%s7715_s16 + $0x40] sm:$0xff] %vm297_vm0, %v4690_v63  ;;  %5363 = vmatprep.mubr.msk.f32.mxu1 %vm8069_vm3, %v4310_v40  ;;  %v5157_v63 = vld [vmem:[%s5504_s25 + $0x141] sm:$0xff]  ;;  %v5156_v40 = vld [vmem:[%s5504_s25 + $0x139] sm:$0xff] }
 0x5c2   : > { %3704 = vst.msk [vmem:[#allocation2 + $0xf8] sm:$0xff] %vm1383_vm5, %v3640_v39  ;;  %v4213_v19 = vpop.permute.xlu0 %4212  ;;  %vm8071_vm5 = vmmov %vm8044_vm1 }
 0x5c3   : > { %4279 = vst.msk [vmem:[#allocation2 + $0xe8] sm:$0xff] %vm2035_vm9, %v4213_v19 }
 0x5c4   : > { %v3833_v25 = vpop.permute.xlu1 %3832 }
 0x5c5   : > { %3897 = vst.msk [vmem:[#allocation2 + $0xf8] sm:$0xff] %vm1601_vm7, %v3833_v25 }
 0x5c6   : > { %v3831_v11 = vpop.permute.xlu0 %3830 }
 0x5c7   : > { %3896 = vst.msk [vmem:[#allocation2 + $0xf0] sm:$0xff] %vm1601_vm7, %v3831_v11  ;;  %vm8072_vm7 = vmmov %vm8044_vm1 }
 0x5c8   : > { %v4025_v13 = vpop.permute.xlu1 %4024 }
 0x5c9   : > { %4089 = vst.msk [vmem:[#allocation2 + $0xf8] sm:$0xff] %vm1818_vm8, %v4025_v13 }
 0x5ca   : > { %v4023_v12 = vpop.permute.xlu0 %4022  ;;  %v4311_v23 = vld [vmem:[#allocation2 + $0xe8] sm:$0xff] }
 0x5cb   : > { %4088 = vst.msk [vmem:[#allocation2 + $0xf0] sm:$0xff] %vm1818_vm8, %v4023_v12  ;;  %5364 = vmatmul.mubr.msk.f32.gmra.mrb[28].mxu1 %vm8070_vm4, %v4311_v23  ;;  %v5159_v12 = vld [vmem:[%s5504_s25 + $0x159] sm:$0xff] }
 0x5cc   : > { %v4217_v27 = vpop.permute.xlu1 %4216 }
 0x5cd   : > { %4281 = vst.msk [vmem:[#allocation2 + $0xf8] sm:$0xff] %vm2035_vm9, %v4217_v27 }
 0x5ce   : > { %v4215_v36 = vpop.permute.xlu0 %4214  ;;  %v5338_v50 = vpop.f32.mrb[10].mxu1 }
 0x5cf   : > { %4280 = vst.msk [vmem:[#allocation2 + $0xf0] sm:$0xff] %vm2035_vm9, %v4215_v36  ;;  %v4547_v20 = vadd.f32 %v5338_v50, %v7703_v29  ;;  %v4541_v48 = vpop.f32.mrb[11].mxu1  ;;  %v5158_v36 = vld [vmem:[%s5504_s25 + $0x151] sm:$0xff] }
 0x5d0   : > { %v4542_v33 = vadd.f32 %v7703_v29, %v4541_v48 }
 0x5d1   : > { %v4693_v42 = vadd.f32 %v5145_v49, %v4547_v20 }
 0x5d2   : > { %v4692_v10 = vadd.f32 %v5144_v7, %v4542_v33  ;;  %v5161_v7 = vld [vmem:[%s5504_s25 + $0x171] sm:$0xff] }
 0x5d3   : > { %4725 = vst.msk [vmem:[%s7715_s16 + $0x58] sm:$0xff] %vm297_vm0, %v4693_v42 }
 0x5d4   : > { %4724 = vst.msk [vmem:[%s7715_s16 + $0x50] sm:$0xff] %vm297_vm0, %v4692_v10  ;;  %v4313_v46 = vld [vmem:[#allocation2 + $0xf8] sm:$0xff]  ;;  %v5160_v10 = vld [vmem:[%s5504_s25 + $0x169] sm:$0xff] }
 0x5d6   : > { %v4312_v28 = vld [vmem:[#allocation2 + $0xf0] sm:$0xff] }
 0x5d7   : > { %5366 = vmatprep.mubr.msk.f32.mxu1 %vm8071_vm5, %v4312_v28 }
 0x5d8   : > { %5367 = vmatmul.mubr.msk.f32.gmra.mrb[30].mxu1 %vm8072_vm7, %v4313_v46 }
 0x5e2   : > { %v5341_v17 = vpop.f32.mrb[12].mxu1 }
 0x5e3   : > { %v4557_v58 = vadd.f32 %v5341_v17, %v7703_v29  ;;  %v4551_v26 = vpop.f32.mrb[13].mxu1 }
 0x5e4   : > { %v4552_v4 = vadd.f32 %v7703_v29, %v4551_v26 }
 0x5e5   : > { %v4695_v3 = vadd.f32 %v5147_v30, %v4557_v58  ;;  %v5163_v58 = vld [vmem:[%s5504_s25 + $0x189] sm:$0xff] }
 0x5e6   : > { %v4694_v45 = vadd.f32 %v5146_v18, %v4552_v4  ;;  %v5162_v4 = vld [vmem:[%s5504_s25 + $0x181] sm:$0xff] }
 0x5e7   : > { %4727 = vst.msk [vmem:[%s7715_s16 + $0x68] sm:$0xff] %vm297_vm0, %v4695_v3 }
 0x5e8   : > { %4726 = vst.msk [vmem:[%s7715_s16 + $0x60] sm:$0xff] %vm297_vm0, %v4694_v45 }
 0x5f6   : > { %v5344_v31 = vpop.f32.mrb[14].mxu1 }
 0x5f7   : > { %v4567_v37 = vadd.f32 %v5344_v31, %v7703_v29  ;;  %v4561_v32 = vpop.f32.mrb[15].mxu1 }
 0x5f8   : > { %v4562_v22 = vadd.f32 %v7703_v29, %v4561_v32 }
 0x5f9   : > { %v4697_v47 = vadd.f32 %v5149_v1, %v4567_v37  ;;  %v5165_v37 = vld [vmem:[%s5504_s25 + $0x1a1] sm:$0xff] }
 0x5fa   : > { %v4696_v8 = vadd.f32 %v5148_v21, %v4562_v22  ;;  %v5164_v22 = vld [vmem:[%s5504_s25 + $0x199] sm:$0xff] }
 0x5fb   : > { %4729 = vst.msk [vmem:[%s7715_s16 + $0x78] sm:$0xff] %vm297_vm0, %v4697_v47 }
 0x5fc   : > { %4728 = vst.msk [vmem:[%s7715_s16 + $0x70] sm:$0xff] %vm297_vm0, %v4696_v8 }
 0x60e   : > { %v5347_v9 = vpop.f32.mrb[16].mxu1 }
 0x60f   : > { %v4577_v34 = vadd.f32 %v5347_v9, %v7703_v29  ;;  %v4571_v15 = vpop.f32.mrb[17].mxu1 }
 0x610   : > { %v4572_v57 = vadd.f32 %v7703_v29, %v4571_v15 }
 0x611   : > { %v4699_v60 = vadd.f32 %v5151_v61, %v4577_v34 }
 0x612   : > { %v4698_v55 = vadd.f32 %v5150_v43, %v4572_v57 }
 0x613   : > { %4731 = vst.msk [vmem:[%s7715_s16 + $0x88] sm:$0xff] %vm297_vm0, %v4699_v60 }
 0x614   : > { %4730 = vst.msk [vmem:[%s7715_s16 + $0x80] sm:$0xff] %vm297_vm0, %v4698_v55 }
 0x626   : > { %v5350_v6 = vpop.f32.mrb[18].mxu1 }
 0x627   : > { %v4587_v59 = vadd.f32 %v5350_v6, %v7703_v29  ;;  %v4581_v5 = vpop.f32.mrb[19].mxu1 }
 0x628   : > { %v4582_v56 = vadd.f32 %v7703_v29, %v4581_v5 }
 0x629   : > { %v4701_v2 = vadd.f32 %v5153_v38, %v4587_v59 }
 0x62a   : > { %v4700_v51 = vadd.f32 %v5152_v44, %v4582_v56 }
 0x62b   : > { %4733 = vst.msk [vmem:[%s7715_s16 + $0x98] sm:$0xff] %vm297_vm0, %v4701_v2 }
 0x62c   : > { %4732 = vst.msk [vmem:[%s7715_s16 + $0x90] sm:$0xff] %vm297_vm0, %v4700_v51 }
 0x63e   : > { %v5353_v52 = vpop.f32.mrb[20].mxu1 }
 0x63f   : > { %v4597_v24 = vadd.f32 %v5353_v52, %v7703_v29  ;;  %v4591_v0 = vpop.f32.mrb[21].mxu1 }
 0x640   : > { %v4592_v41 = vadd.f32 %v7703_v29, %v4591_v0 }
 0x641   : > { %v4703_v62 = vadd.f32 %v5155_v53, %v4597_v24 }
 0x642   : > { %v4702_v54 = vadd.f32 %v5154_v35, %v4592_v41 }
 0x643   : > { %4735 = vst.msk [vmem:[%s7715_s16 + $0xa8] sm:$0xff] %vm297_vm0, %v4703_v62 }
 0x644   : > { %4734 = vst.msk [vmem:[%s7715_s16 + $0xa0] sm:$0xff] %vm297_vm0, %v4702_v54 }
 0x656   : > { %v5356_v16 = vpop.f32.mrb[22].mxu1 }
 0x657   : > { %v4607_v14 = vadd.f32 %v5356_v16, %v7703_v29  ;;  %v4601_v39 = vpop.f32.mrb[23].mxu1 }
 0x658   : > { %v4602_v19 = vadd.f32 %v7703_v29, %v4601_v39 }
 0x659   : > { %v4705_v25 = vadd.f32 %v5157_v63, %v4607_v14 }
 0x65a   : > { %v4704_v11 = vadd.f32 %v5156_v40, %v4602_v19 }
 0x65b   : > { %4737 = vst.msk [vmem:[%s7715_s16 + $0xb8] sm:$0xff] %vm297_vm0, %v4705_v25 }
 0x65c   : > { %4736 = vst.msk [vmem:[%s7715_s16 + $0xb0] sm:$0xff] %vm297_vm0, %v4704_v11 }
 0x66e   : > { %v5359_v13 = vpop.f32.mrb[24].mxu1 }
 0x66f   : > { %v4617_v23 = vadd.f32 %v5359_v13, %v7703_v29  ;;  %v4611_v27 = vpop.f32.mrb[25].mxu1 }
 0x670   : > { %v4612_v50 = vadd.f32 %v7703_v29, %v4611_v27 }
 0x671   : > { %v4707_v49 = vadd.f32 %v5159_v12, %v4617_v23 }
 0x672   : > { %v4706_v20 = vadd.f32 %v5158_v36, %v4612_v50 }
 0x673   : > { %4739 = vst.msk [vmem:[%s7715_s16 + $0xc8] sm:$0xff] %vm297_vm0, %v4707_v49 }
 0x674   : > { %4738 = vst.msk [vmem:[%s7715_s16 + $0xc0] sm:$0xff] %vm297_vm0, %v4706_v20 }
 0x687   : > { %v5362_v48 = vpop.f32.mrb[26].mxu1 }
 0x688   : > { %v4627_v33 = vadd.f32 %v5362_v48, %v7703_v29  ;;  %v4621_v42 = vpop.f32.mrb[27].mxu1 }
 0x689   : > { %v4622_v28 = vadd.f32 %v7703_v29, %v4621_v42 }
 0x68a   : > { %v4709_v46 = vadd.f32 %v5161_v7, %v4627_v33 }
 0x68b   : > { %v4708_v17 = vadd.f32 %v5160_v10, %v4622_v28 }
 0x68c   : > { %4741 = vst.msk [vmem:[%s7715_s16 + $0xd8] sm:$0xff] %vm297_vm0, %v4709_v46 }
 0x68d   : > { %4740 = vst.msk [vmem:[%s7715_s16 + $0xd0] sm:$0xff] %vm297_vm0, %v4708_v17 }
 0x69e   : > { %v5365_v30 = vpop.f32.mrb[28].mxu1 }
 0x69f   : > { %v4637_v26 = vadd.f32 %v5365_v30, %v7703_v29  ;;  %v4631_v18 = vpop.f32.mrb[29].mxu1 }
 0x6a0   : > { %v4632_v3 = vadd.f32 %v7703_v29, %v4631_v18 }
 0x6a1   : > { %v4711_v45 = vadd.f32 %v5163_v58, %v4637_v26 }
 0x6a2   : > { %v4710_v31 = vadd.f32 %v5162_v4, %v4632_v3 }
 0x6a3   : > { %4743 = vst.msk [vmem:[%s7715_s16 + $0xe8] sm:$0xff] %vm297_vm0, %v4711_v45 }
 0x6a4   : > { %4742 = vst.msk [vmem:[%s7715_s16 + $0xe0] sm:$0xff] %vm297_vm0, %v4710_v31 }
 0x6ab   : > { %v5368_v1 = vpop.f32.mrb[30].mxu1 }
 0x6ac   : > { %v4647_v32 = vadd.f32 %v5368_v1, %v7703_v29  ;;  %v4641_v21 = vpop.f32.mrb[31].mxu1 }
 0x6ad   : > { %v4642_v47 = vadd.f32 %v7703_v29, %v4641_v21 }
 0x6ae   : > { %v4713_v8 = vadd.f32 %v5165_v37, %v4647_v32 }
 0x6af   : > { %v4712_v9 = vadd.f32 %v5164_v22, %v4642_v47 }
 0x6b0   : > { %4745 = vst.msk [vmem:[%s7715_s16 + $0xf8] sm:$0xff] %vm297_vm0, %v4713_v8 }
 0x6b1   : > { %4744 = vst.msk [vmem:[%s7715_s16 + $0xf0] sm:$0xff] %vm297_vm0, %v4712_v9 }
 0x6b2 PF: > { %s15_s20 = sadd.s32 1, %s5440_s20   ;;  %s8073_s18 = smov %s5436_s19 }
 0x6b3   : > { %p12_p5 = scmp.ge.s32.totalorder %s15_s20, 4   ;;  %s8074_s19 = smov %s8076_s21 }
 0x6b5   :  { %14 = sbr.rel (!%p12_p5) target bundleno = 2 (0x2), region = 81 }

</bundles_post_ra>
